<compile_context>
chip_gen: v5e
topology: v5e:2x2
jax: 0.10.0
libtpu: 0.0.40
codegen_flags: <defaults>
</compile_context>

<pallas_src>
import functools

import numpy as np
import jax
import jax.numpy as jnp
from jax.experimental import pallas as pl
from jax.experimental.pallas import tpu as pltpu


W_OFF = 8  # sublane-aligned column offset of the conv interior inside scratch


# ---------------------------------------------------------------------------
# Fused decoder kernel (one grid step == one frame)
# ---------------------------------------------------------------------------

def funet_decoder_kernel(low_ref, high_ref, fw_ref, w0_ref, wdil_ref, wlow_ref,
                         wref_ref, wseg_ref, aff_ref, r1_ref, rh2_ref,
                         rw2t_ref, out_ref, pad2_ref, pad1_ref, *, Hl, Wl,
                         w_off):
    M = Hl * Wl
    f32 = jnp.float32

    aff = aff_ref[...]                       # [8, 16] packed affine params
    bn1_s, bn1_b = aff[0:1, :], aff[1:2, :]  # up2_high.bn (folded, eval)
    bn2_s, bn2_b = aff[2:3, :], aff[3:4, :]  # up2_bn2     (folded, eval)
    act_a = aff[4:5, :]                      # up2_act PReLU(16) alpha
    bnr_s, bnr_b = aff[5:6, :], aff[6:7, :]  # refine BN   (folded, eval)
    ref_a = aff[7:8, :]                      # refine PReLU alpha (shared)

    # (1) bilinear resize high_feature (Hh,Wh)->(Hl,Wl) as one matmul with the
    #     precomputed kron(Rh, Rw) matrix:  [M, Mh] @ [Mh, 32] -> [M, 32].
    high_r = jnp.dot(r1_ref[...], high_ref[0], preferred_element_type=f32)

    # (2) up2_high.conv0: 1x1, 32 -> 16.     [M, 32] @ [32, 16] -> [M, 16]
    in0 = jnp.dot(high_r, w0_ref[...], preferred_element_type=f32)

    # (3) DilatedParallelConvBlockD2 3x3 branches (dil 1 and 2) as ONE
    #     288-deep im2col matmul.  Halo padding lives in VMEM scratch; the
    #     interior sits at column `w_off` (multiple of 8) -> unmasked store.
    x0 = in0.reshape(Hl, Wl, 16)
    pad2_ref[...] = jnp.zeros(pad2_ref.shape, f32)
    pad2_ref[2:2 + Hl, w_off:w_off + Wl, :] = x0
    xp2 = pad2_ref[...]
    cols = []
    for dy in range(3):                      # branch 1: dilation 1, pad 1
        for dx in range(3):
            cols.append(xp2[1 + dy:1 + dy + Hl,
                            w_off - 1 + dx:w_off - 1 + dx + Wl, :]
                        .reshape(M, 16))
    for dy in range(3):                      # branch 2: dilation 2, pad 2
        for dx in range(3):
            cols.append(xp2[2 * dy:2 * dy + Hl,
                            w_off - 2 + 2 * dx:w_off - 2 + 2 * dx + Wl, :]
                        .reshape(M, 16))
    xcol = jnp.concatenate(cols, axis=1)                           # [M, 288]
    hi = jnp.dot(xcol, wdil_ref[...], preferred_element_type=f32)  # [M, 16]
    hi = hi * bn1_s + bn1_b                  # cat([b1, b2]) then folded BN

    # (4) up2_low: 1x1, 24 -> 16, + folded BN.
    lo = jnp.dot(low_ref[0], wlow_ref[...], preferred_element_type=f32)
    lo = lo * bn2_s + bn2_b

    # (5) up2_act: PReLU(16) on the sum.
    s = hi + lo
    s = jnp.where(s >= 0, s, act_a * s)

    # (6) refine: 3x3 (16 -> 16, pad 1) + BN + PReLU as one 144-deep matmul.
    s3 = s.reshape(Hl, Wl, 16)
    pad1_ref[...] = jnp.zeros(pad1_ref.shape, f32)
    pad1_ref[1:1 + Hl, w_off:w_off + Wl, :] = s3
    xp1 = pad1_ref[...]
    cols = []
    for dy in range(3):
        for dx in range(3):
            cols.append(xp1[dy:dy + Hl,
                            w_off - 1 + dx:w_off - 1 + dx + Wl, :]
                        .reshape(M, 16))
    xcol1 = jnp.concatenate(cols, axis=1)                          # [M, 144]
    r = jnp.dot(xcol1, wref_ref[...], preferred_element_type=f32)  # [M, 16]
    r = r * bnr_s + bnr_b
    r = jnp.where(r >= 0, r, ref_a * r)

    # (7) SegNIN 1x1 (16 -> 1) as a lane reduction, then frame-weight multiply.
    #     (Dropout2d is identity in eval mode.)
    seg = jnp.sum(r.reshape(Hl, Wl, 16) * wseg_ref[...], axis=-1)  # [Hl, Wl]
    seg = seg * fw_ref[0]

    # (8) final bilinear resize (Hl,Wl)->(H0,W0) + sigmoid; W-axis contraction
    #     first so the intermediate is lane-dense.
    t = jnp.dot(seg, rw2t_ref[...], preferred_element_type=f32)    # [Hl, W0]
    y = jnp.dot(rh2_ref[...], t, preferred_element_type=f32)       # [H0, W0]
    out_ref[0] = jax.nn.sigmoid(y).astype(out_ref.dtype)


# ---------------------------------------------------------------------------
# Host-side helpers
# ---------------------------------------------------------------------------

def _resize_matrix(out_size, in_size):
    # PyTorch F.interpolate(mode='bilinear', align_corners=False) as a matrix.
    i = np.arange(out_size, dtype=np.float64)
    src = (i + 0.5) * (in_size / out_size) - 0.5
    src = np.maximum(src, 0.0)
    i0 = np.minimum(np.floor(src).astype(np.int64), in_size - 1)
    i1 = np.minimum(i0 + 1, in_size - 1)
    w1 = src - i0
    w0 = 1.0 - w1
    R = np.zeros((out_size, in_size), dtype=np.float32)
    R[np.arange(out_size), i0] += w0.astype(np.float32)
    R[np.arange(out_size), i1] += w1.astype(np.float32)
    return R


@functools.partial(jax.jit, static_argnames=("origin_hw",))
def funet_forward(packed, low_feature, high_feature, frame_weight, origin_hw):
    """Fused FUnet decoder.  low_feature [N,24,Hl,Wl], high_feature
    [N,32,Hh,Wh] (post seg_branch), frame_weight [N,1,Hl,Wl] -> [N,1,H0,W0]."""
    N, _, Hl, Wl = low_feature.shape
    _, _, Hh, Wh = high_feature.shape
    H0, W0 = origin_hw
    M, Mh = Hl * Wl, Hh * Wh

    # Interface is NCHW (PyTorch); present spatial-major / channels-on-lanes.
    low_sm = jnp.transpose(low_feature, (0, 2, 3, 1)).reshape(N, M, 24)
    high_sm = jnp.transpose(high_feature, (0, 2, 3, 1)).reshape(N, Mh, 32)
    fw = frame_weight.reshape(N, Hl, Wl)

    # Bilinear-resize matrices (trace-time constants).
    r1 = jnp.asarray(np.kron(_resize_matrix(Hl, Hh), _resize_matrix(Wl, Wh)))
    rh2 = jnp.asarray(_resize_matrix(H0, Hl))        # [H0, Hl]
    rw2t = jnp.asarray(_resize_matrix(W0, Wl).T)     # [Wl, W0]

    pw = W_OFF + Wl + 8                              # scratch width
    kernel = functools.partial(funet_decoder_kernel, Hl=Hl, Wl=Wl, w_off=W_OFF)
    out = pl.pallas_call(
        kernel,
        grid=(N,),
        in_specs=[
            pl.BlockSpec((1, M, 24), lambda n: (n, 0, 0)),    # low (NHWC flat)
            pl.BlockSpec((1, Mh, 32), lambda n: (n, 0, 0)),   # high (NHWC flat)
            pl.BlockSpec((1, Hl, Wl), lambda n: (n, 0, 0)),   # frame weight
            pl.BlockSpec((32, 16), lambda n: (0, 0)),         # w0 (1x1)
            pl.BlockSpec((288, 16), lambda n: (0, 0)),        # dilated block W
            pl.BlockSpec((24, 16), lambda n: (0, 0)),         # up2_low W
            pl.BlockSpec((144, 16), lambda n: (0, 0)),        # refine W
            pl.BlockSpec((1, 1, 16), lambda n: (0, 0, 0)),    # SegNIN W
            pl.BlockSpec((8, 16), lambda n: (0, 0)),          # packed affines
            pl.BlockSpec((M, Mh), lambda n: (0, 0)),          # kron resize
            pl.BlockSpec((H0, Hl), lambda n: (0, 0)),         # final resize H
            pl.BlockSpec((Wl, W0), lambda n: (0, 0)),         # final resize W^T
        ],
        out_specs=pl.BlockSpec((1, H0, W0), lambda n: (n, 0, 0)),
        out_shape=jax.ShapeDtypeStruct((N, H0, W0), jnp.float32),
        scratch_shapes=[
            pltpu.VMEM((Hl + 4, pw, 16), jnp.float32),   # pad-2 halo buffer
            pltpu.VMEM((Hl + 2, pw, 16), jnp.float32),   # pad-1 halo buffer
        ],
        compiler_params=pltpu.CompilerParams(
            dimension_semantics=("parallel",)),          # v7x: 2 TCs split N
    )(low_sm, high_sm, fw, packed['w0'], packed['wdil'], packed['wlow'],
      packed['wref'], packed['wseg'], packed['affine'], r1, rh2, rw2t)
    return out.reshape(N, 1, H0, W0)


# ---------------------------------------------------------------------------
# Parameters (deterministic synthetic init; eval-mode BN folded to scale/shift)
# ---------------------------------------------------------------------------

def _bn_fold(kg, kb, km, kv, C):
    gamma = jax.random.uniform(kg, (C,), jnp.float32, 0.8, 1.2)
    beta = jax.random.normal(kb, (C,), jnp.float32) * 0.1
    mean = jax.random.normal(km, (C,), jnp.float32) * 0.1
    var = jax.random.uniform(kv, (C,), jnp.float32, 0.5, 1.5)
    scale = gamma / jnp.sqrt(var + 1e-5)
    shift = beta - mean * scale
    return scale, shift


def init_params(key):
    ks = jax.random.split(key, 24)
    w = lambda k, s: jax.random.normal(k, s, jnp.float32) * 0.1
    p = {}
    # decoder.up2_high = DilatedParallelConvBlockD2(32, 16): n = n2 = 8
    p['up2_high_conv0'] = w(ks[0], (32, 16))          # 1x1  [cin, cout]
    p['up2_high_conv1'] = w(ks[1], (9, 8, 8))         # 3x3 d1 [tap, cin, cout]
    p['up2_high_conv2'] = w(ks[2], (9, 8, 8))         # 3x3 d2 [tap, cin, cout]
    p['up2_high_bn_scale'], p['up2_high_bn_shift'] = _bn_fold(*ks[3:7], 16)
    # decoder.up2_low (24->16 1x1) + up2_bn2
    p['up2_low_w'] = w(ks[7], (24, 16))
    p['up2_bn2_scale'], p['up2_bn2_shift'] = _bn_fold(*ks[8:12], 16)
    # decoder.up2_act = PReLU(16)
    p['up2_act_alpha'] = jnp.full((16,), 0.25, jnp.float32)
    # decoder.refine = Conv2d(16,16,3,pad=1) + BN(16) + PReLU()
    p['refine_w'] = w(ks[12], (9, 16, 16))
    p['refine_bn_scale'], p['refine_bn_shift'] = _bn_fold(*ks[13:17], 16)
    p['refine_prelu_alpha'] = jnp.full((16,), 0.25, jnp.float32)
    # SegNIN = Dropout2d(0.1)[eval: identity] + Conv2d(16,1,1)
    p['segnin_w'] = w(ks[17], (16,))
    return p


def pack_params(p):
    """Assemble matmul-ready operands (done once on the host)."""
    # Block-structured weight for BOTH dilated branches in one 288-deep matmul:
    # rows [0,144)   = 9 dil-1 taps x 16 in-ch -> out ch 0..7  (only ch 0..7 used)
    # rows [144,288) = 9 dil-2 taps x 16 in-ch -> out ch 8..15 (only ch 8..15 used)
    w1 = np.asarray(p['up2_high_conv1'])
    w2 = np.asarray(p['up2_high_conv2'])
    wdil = np.zeros((288, 16), np.float32)
    for t in range(9):
        wdil[t * 16:t * 16 + 8, 0:8] = w1[t]
        wdil[144 + t * 16 + 8:144 + t * 16 + 16, 8:16] = w2[t]
    affine = jnp.stack([
        p['up2_high_bn_scale'], p['up2_high_bn_shift'],
        p['up2_bn2_scale'], p['up2_bn2_shift'],
        p['up2_act_alpha'],
        p['refine_bn_scale'], p['refine_bn_shift'],
        p['refine_prelu_alpha']], axis=0)            # [8, 16]
    return {
        'w0': p['up2_high_conv0'],                   # [32, 16]
        'wdil': jnp.asarray(wdil),                   # [288, 16]
        'wlow': p['up2_low_w'],                      # [24, 16]
        'wref': jnp.asarray(np.asarray(p['refine_w']).reshape(144, 16)),
        'wseg': p['segnin_w'].reshape(1, 1, 16),     # [1, 1, 16]
        'affine': affine,                            # [8, 16]
    }


# ---------------------------------------------------------------------------
# Pure-JAX reference (XLA), used only for the in-script self-test
# ---------------------------------------------------------------------------

def reference_forward(params, low_feature, high_feature, frame_weight,
                      origin_hw):
    hp = jax.lax.Precision.HIGHEST
    N, _, Hl, Wl = low_feature.shape
    H0, W0 = origin_hw

    def conv1x1(x, w_io):
        return jnp.einsum('nchw,cd->ndhw', x, w_io, precision=hp)

    def conv3x3(x, w_tio, dil):
        ci, co = w_tio.shape[1], w_tio.shape[2]
        w = jnp.transpose(w_tio.reshape(3, 3, ci, co), (3, 2, 0, 1))  # OIHW
        return jax.lax.conv_general_dilated(
            x, w, window_strides=(1, 1), padding=[(dil, dil), (dil, dil)],
            rhs_dilation=(dil, dil),
            dimension_numbers=('NCHW', 'OIHW', 'NCHW'), precision=hp)

    def resize(x, out_hw):
        rh = jnp.asarray(_resize_matrix(out_hw[0], x.shape[2]))
        rw = jnp.asarray(_resize_matrix(out_hw[1], x.shape[3]))
        return jnp.einsum('oh,nchw,pw->ncop', rh, x, rw, precision=hp)

    def affine(x, scale, shift):
        return x * scale[None, :, None, None] + shift[None, :, None, None]

    high = resize(high_feature, (Hl, Wl))
    in0 = conv1x1(high, params['up2_high_conv0'])
    b1 = conv3x3(in0[:, :8], params['up2_high_conv1'], 1)
    b2 = conv3x3(in0[:, 8:], params['up2_high_conv2'], 2)
    hi = affine(jnp.concatenate([b1, b2], axis=1),
                params['up2_high_bn_scale'], params['up2_high_bn_shift'])
    lo = affine(conv1x1(low_feature, params['up2_low_w']),
                params['up2_bn2_scale'], params['up2_bn2_shift'])
    s = hi + lo
    a = params['up2_act_alpha'][None, :, None, None]
    s = jnp.where(s >= 0, s, a * s)
    r = affine(conv3x3(s, params['refine_w'], 1),
               params['refine_bn_scale'], params['refine_bn_shift'])
    ar = params['refine_prelu_alpha'][None, :, None, None]
    r = jnp.where(r >= 0, r, ar * r)
    seg = jnp.einsum('nchw,c->nhw', r, params['segnin_w'], precision=hp)
    seg = seg[:, None] * frame_weight
    return jax.nn.sigmoid(resize(seg, (H0, W0)))


# ---------------------------------------------------------------------------

if __name__ == "__main__":
    key = jax.random.PRNGKey(0)
    k_par, k_low, k_high, k_fw = jax.random.split(key, 4)

    # origin x: (B=1, T=2, C=3, H=64, W=64)  ->  N = B*T = 2 frames
    B, T, H0, W0 = 1, 2, 64, 64
    N = B * T
    Hl = Wl = H0 // 8     # low_feature  (stride 8), 24 ch after Low_RFB
    Hh = Wh = H0 // 16    # high_feature (stride 16), 32 ch after High_RFB+UNet

    params = init_params(k_par)
    packed = pack_params(params)
    low_feature = jax.random.normal(k_low, (N, 24, Hl, Wl), jnp.float32)
    high_feature = jax.random.normal(k_high, (N, 32, Hh, Wh), jnp.float32)
    frame_weight = jax.random.uniform(k_fw, (N, 1, Hl, Wl), jnp.float32)

    out = funet_forward(packed, low_feature, high_feature, frame_weight,
                        origin_hw=(H0, W0))
    out = jax.block_until_ready(out)
    assert out.shape == (N, 1, H0, W0)
    assert bool(jnp.all(jnp.isfinite(out)))

    # Self-test against the pure-JAX reference (loose tol: MXU f32 matmul
    # rounding differs slightly between the Pallas and XLA paths).
    ref = reference_forward(params, low_feature, high_feature, frame_weight,
                            (H0, W0))
    err = float(jnp.max(jnp.abs(out - ref)))
    assert err < 2e-2, f"max abs err vs reference: {err}"

    print("KERNEL_OK")
</pallas_src>

<mosaic_0001>
module attributes {stable_mosaic.version = 11 : i64} {
  func.func @funet_decoder_kernel(%arg0: i32, %arg1: memref<1x64x24xf32, #tpu.memory_space<vmem>>, %arg2: memref<1x16x32xf32, #tpu.memory_space<vmem>>, %arg3: memref<1x8x8xf32, #tpu.memory_space<vmem>>, %arg4: memref<32x16xf32, #tpu.memory_space<vmem>>, %arg5: memref<288x16xf32, #tpu.memory_space<vmem>>, %arg6: memref<24x16xf32, #tpu.memory_space<vmem>>, %arg7: memref<144x16xf32, #tpu.memory_space<vmem>>, %arg8: memref<1x1x16xf32, #tpu.memory_space<vmem>>, %arg9: memref<8x16xf32, #tpu.memory_space<vmem>>, %arg10: memref<64x16xf32, #tpu.memory_space<vmem>>, %arg11: memref<64x8xf32, #tpu.memory_space<vmem>>, %arg12: memref<8x64xf32, #tpu.memory_space<vmem>>, %arg13: memref<1x64x64xf32, #tpu.memory_space<vmem>>, %arg14: memref<12x24x16xf32, #tpu.memory_space<vmem>>, %arg15: memref<10x24x16xf32, #tpu.memory_space<vmem>>) attributes {dimension_semantics = [#tpu.dimension_semantics<parallel>], iteration_bounds = array<i64: 2>, scalar_prefetch = 0 : i64, scratch_operands = 2 : i64, tpu.core_type = #tpu.core_type<tc>, window_params = [{transform_indices = @transform_0, window_bounds = array<i64: 1, 64, 24>}, {transform_indices = @transform_1, window_bounds = array<i64: 1, 16, 32>}, {transform_indices = @transform_2, window_bounds = array<i64: 1, 8, 8>}, {pipeline_mode = #tpu.pipeline_mode<synchronous>, transform_indices = @transform_3, window_bounds = array<i64: 32, 16>}, {pipeline_mode = #tpu.pipeline_mode<synchronous>, transform_indices = @transform_4, window_bounds = array<i64: 288, 16>}, {pipeline_mode = #tpu.pipeline_mode<synchronous>, transform_indices = @transform_5, window_bounds = array<i64: 24, 16>}, {pipeline_mode = #tpu.pipeline_mode<synchronous>, transform_indices = @transform_6, window_bounds = array<i64: 144, 16>}, {pipeline_mode = #tpu.pipeline_mode<synchronous>, transform_indices = @transform_7, window_bounds = array<i64: 1, 1, 16>}, {pipeline_mode = #tpu.pipeline_mode<synchronous>, transform_indices = @transform_8, window_bounds = array<i64: 8, 16>}, {pipeline_mode = #tpu.pipeline_mode<synchronous>, transform_indices = @transform_9, window_bounds = array<i64: 64, 16>}, {pipeline_mode = #tpu.pipeline_mode<synchronous>, transform_indices = @transform_10, window_bounds = array<i64: 64, 8>}, {pipeline_mode = #tpu.pipeline_mode<synchronous>, transform_indices = @transform_11, window_bounds = array<i64: 8, 64>}, {transform_indices = @transform_12, window_bounds = array<i64: 1, 64, 64>}]} {
    %c0 = arith.constant 0 : index
    %c0_0 = arith.constant 0 : index
    %0 = vector.load %arg9[%c0, %c0_0] : memref<8x16xf32, #tpu.memory_space<vmem>>, vector<8x16xf32>
    %1 = vector.extract_strided_slice %0 {offsets = [0, 0], sizes = [1, 16], strides = [1, 1]} : vector<8x16xf32> to vector<1x16xf32>
    %2 = vector.extract_strided_slice %0 {offsets = [1, 0], sizes = [1, 16], strides = [1, 1]} : vector<8x16xf32> to vector<1x16xf32>
    %3 = vector.extract_strided_slice %0 {offsets = [2, 0], sizes = [1, 16], strides = [1, 1]} : vector<8x16xf32> to vector<1x16xf32>
    %4 = vector.extract_strided_slice %0 {offsets = [3, 0], sizes = [1, 16], strides = [1, 1]} : vector<8x16xf32> to vector<1x16xf32>
    %5 = vector.extract_strided_slice %0 {offsets = [4, 0], sizes = [1, 16], strides = [1, 1]} : vector<8x16xf32> to vector<1x16xf32>
    %6 = vector.extract_strided_slice %0 {offsets = [5, 0], sizes = [1, 16], strides = [1, 1]} : vector<8x16xf32> to vector<1x16xf32>
    %7 = vector.extract_strided_slice %0 {offsets = [6, 0], sizes = [1, 16], strides = [1, 1]} : vector<8x16xf32> to vector<1x16xf32>
    %8 = vector.extract_strided_slice %0 {offsets = [7, 0], sizes = [1, 16], strides = [1, 1]} : vector<8x16xf32> to vector<1x16xf32>
    %c0_1 = arith.constant 0 : index
    %c0_2 = arith.constant 0 : index
    %9 = vector.load %arg10[%c0_1, %c0_2] : memref<64x16xf32, #tpu.memory_space<vmem>>, vector<64x16xf32>
    %c0_3 = arith.constant 0 : index
    %c0_4 = arith.constant 0 : index
    %c0_5 = arith.constant 0 : index
    %10 = vector.load %arg2[%c0_3, %c0_4, %c0_5] : memref<1x16x32xf32, #tpu.memory_space<vmem>>, vector<1x16x32xf32>
    %11 = vector.shape_cast %10 : vector<1x16x32xf32> to vector<16x32xf32>
    %cst = arith.constant dense<0.000000e+00> : vector<64x32xf32>
    %12 = tpu.matmul %9, %11, %cst {dimension_numbers = #tpu.dot_dimension_numbers<[1], [0], [0], [1], [0, 0, 1, 1], [], []>} : vector<64x16xf32>, vector<16x32xf32>, vector<64x32xf32> -> vector<64x32xf32>
    %c0_6 = arith.constant 0 : index
    %c0_7 = arith.constant 0 : index
    %13 = vector.load %arg4[%c0_6, %c0_7] : memref<32x16xf32, #tpu.memory_space<vmem>>, vector<32x16xf32>
    %cst_8 = arith.constant dense<0.000000e+00> : vector<64x16xf32>
    %14 = tpu.matmul %12, %13, %cst_8 {dimension_numbers = #tpu.dot_dimension_numbers<[1], [0], [0], [1], [0, 0, 1, 1], [], []>} : vector<64x32xf32>, vector<32x16xf32>, vector<64x16xf32> -> vector<64x16xf32>
    %15 = vector.shape_cast %14 : vector<64x16xf32> to vector<8x8x16xf32>
    %cst_9 = arith.constant 0.000000e+00 : f32
    %16 = vector.broadcast %cst_9 : f32 to vector<12x24x16xf32>
    %c0_10 = arith.constant 0 : index
    %c0_11 = arith.constant 0 : index
    %c0_12 = arith.constant 0 : index
    %17 = vector.load %arg14[%c0_10, %c0_11, %c0_12] : memref<12x24x16xf32, #tpu.memory_space<vmem>>, vector<12x24x16xf32>
    tpu.vector_store %arg14[%c0_10, %c0_11, %c0_12], %16 {strides = array<i32>} : memref<12x24x16xf32, #tpu.memory_space<vmem>>, vector<12x24x16xf32>,
    %c2 = arith.constant 2 : index
    %c8 = arith.constant 8 : index
    %c0_13 = arith.constant 0 : index
    %18 = vector.load %arg14[%c2, %c8, %c0_13] : memref<12x24x16xf32, #tpu.memory_space<vmem>>, vector<8x8x16xf32>
    tpu.vector_store %arg14[%c2, %c8, %c0_13], %15 {strides = array<i32>} : memref<12x24x16xf32, #tpu.memory_space<vmem>>, vector<8x8x16xf32>,
    %c0_14 = arith.constant 0 : index
    %c0_15 = arith.constant 0 : index
    %c0_16 = arith.constant 0 : index
    %19 = vector.load %arg14[%c0_14, %c0_15, %c0_16] : memref<12x24x16xf32, #tpu.memory_space<vmem>>, vector<12x24x16xf32>
    %20 = vector.extract_strided_slice %19 {offsets = [1, 7, 0], sizes = [8, 8, 16], strides = [1, 1, 1]} : vector<12x24x16xf32> to vector<8x8x16xf32>
    %21 = vector.shape_cast %20 : vector<8x8x16xf32> to vector<64x16xf32>
    %22 = vector.extract_strided_slice %19 {offsets = [1, 8, 0], sizes = [8, 8, 16], strides = [1, 1, 1]} : vector<12x24x16xf32> to vector<8x8x16xf32>
    %23 = vector.shape_cast %22 : vector<8x8x16xf32> to vector<64x16xf32>
    %24 = vector.extract_strided_slice %19 {offsets = [1, 9, 0], sizes = [8, 8, 16], strides = [1, 1, 1]} : vector<12x24x16xf32> to vector<8x8x16xf32>
    %25 = vector.shape_cast %24 : vector<8x8x16xf32> to vector<64x16xf32>
    %26 = vector.extract_strided_slice %19 {offsets = [2, 7, 0], sizes = [8, 8, 16], strides = [1, 1, 1]} : vector<12x24x16xf32> to vector<8x8x16xf32>
    %27 = vector.shape_cast %26 : vector<8x8x16xf32> to vector<64x16xf32>
    %28 = vector.extract_strided_slice %19 {offsets = [2, 8, 0], sizes = [8, 8, 16], strides = [1, 1, 1]} : vector<12x24x16xf32> to vector<8x8x16xf32>
    %29 = vector.shape_cast %28 : vector<8x8x16xf32> to vector<64x16xf32>
    %30 = vector.extract_strided_slice %19 {offsets = [2, 9, 0], sizes = [8, 8, 16], strides = [1, 1, 1]} : vector<12x24x16xf32> to vector<8x8x16xf32>
    %31 = vector.shape_cast %30 : vector<8x8x16xf32> to vector<64x16xf32>
    %32 = vector.extract_strided_slice %19 {offsets = [3, 7, 0], sizes = [8, 8, 16], strides = [1, 1, 1]} : vector<12x24x16xf32> to vector<8x8x16xf32>
    %33 = vector.shape_cast %32 : vector<8x8x16xf32> to vector<64x16xf32>
    %34 = vector.extract_strided_slice %19 {offsets = [3, 8, 0], sizes = [8, 8, 16], strides = [1, 1, 1]} : vector<12x24x16xf32> to vector<8x8x16xf32>
    %35 = vector.shape_cast %34 : vector<8x8x16xf32> to vector<64x16xf32>
    %36 = vector.extract_strided_slice %19 {offsets = [3, 9, 0], sizes = [8, 8, 16], strides = [1, 1, 1]} : vector<12x24x16xf32> to vector<8x8x16xf32>
    %37 = vector.shape_cast %36 : vector<8x8x16xf32> to vector<64x16xf32>
    %38 = vector.extract_strided_slice %19 {offsets = [0, 6, 0], sizes = [8, 8, 16], strides = [1, 1, 1]} : vector<12x24x16xf32> to vector<8x8x16xf32>
    %39 = vector.shape_cast %38 : vector<8x8x16xf32> to vector<64x16xf32>
    %40 = vector.extract_strided_slice %19 {offsets = [0, 8, 0], sizes = [8, 8, 16], strides = [1, 1, 1]} : vector<12x24x16xf32> to vector<8x8x16xf32>
    %41 = vector.shape_cast %40 : vector<8x8x16xf32> to vector<64x16xf32>
    %42 = vector.extract_strided_slice %19 {offsets = [0, 10, 0], sizes = [8, 8, 16], strides = [1, 1, 1]} : vector<12x24x16xf32> to vector<8x8x16xf32>
    %43 = vector.shape_cast %42 : vector<8x8x16xf32> to vector<64x16xf32>
    %44 = vector.extract_strided_slice %19 {offsets = [2, 6, 0], sizes = [8, 8, 16], strides = [1, 1, 1]} : vector<12x24x16xf32> to vector<8x8x16xf32>
    %45 = vector.shape_cast %44 : vector<8x8x16xf32> to vector<64x16xf32>
    %46 = vector.extract_strided_slice %19 {offsets = [2, 8, 0], sizes = [8, 8, 16], strides = [1, 1, 1]} : vector<12x24x16xf32> to vector<8x8x16xf32>
    %47 = vector.shape_cast %46 : vector<8x8x16xf32> to vector<64x16xf32>
    %48 = vector.extract_strided_slice %19 {offsets = [2, 10, 0], sizes = [8, 8, 16], strides = [1, 1, 1]} : vector<12x24x16xf32> to vector<8x8x16xf32>
    %49 = vector.shape_cast %48 : vector<8x8x16xf32> to vector<64x16xf32>
    %50 = vector.extract_strided_slice %19 {offsets = [4, 6, 0], sizes = [8, 8, 16], strides = [1, 1, 1]} : vector<12x24x16xf32> to vector<8x8x16xf32>
    %51 = vector.shape_cast %50 : vector<8x8x16xf32> to vector<64x16xf32>
    %52 = vector.extract_strided_slice %19 {offsets = [4, 8, 0], sizes = [8, 8, 16], strides = [1, 1, 1]} : vector<12x24x16xf32> to vector<8x8x16xf32>
    %53 = vector.shape_cast %52 : vector<8x8x16xf32> to vector<64x16xf32>
    %54 = vector.extract_strided_slice %19 {offsets = [4, 10, 0], sizes = [8, 8, 16], strides = [1, 1, 1]} : vector<12x24x16xf32> to vector<8x8x16xf32>
    %55 = vector.shape_cast %54 : vector<8x8x16xf32> to vector<64x16xf32>
    %56 = tpu.concatenate %21, %23, %25, %27, %29, %31, %33, %35, %37, %39, %41, %43, %45, %47, %49, %51 in 1 : vector<64x16xf32>, vector<64x16xf32>, vector<64x16xf32>, vector<64x16xf32>, vector<64x16xf32>, vector<64x16xf32>, vector<64x16xf32>, vector<64x16xf32>, vector<64x16xf32>, vector<64x16xf32>, vector<64x16xf32>, vector<64x16xf32>, vector<64x16xf32>, vector<64x16xf32>, vector<64x16xf32>, vector<64x16xf32> -> vector<64x256xf32>
    %57 = tpu.concatenate %53, %55 in 1 : vector<64x16xf32>, vector<64x16xf32> -> vector<64x32xf32>
    %58 = tpu.concatenate %56, %57 in 1 : vector<64x256xf32>, vector<64x32xf32> -> vector<64x288xf32>
    %c0_17 = arith.constant 0 : index
    %c0_18 = arith.constant 0 : index
    %59 = vector.load %arg5[%c0_17, %c0_18] : memref<288x16xf32, #tpu.memory_space<vmem>>, vector<288x16xf32>
    %cst_19 = arith.constant dense<0.000000e+00> : vector<64x16xf32>
    %60 = tpu.matmul %58, %59, %cst_19 {dimension_numbers = #tpu.dot_dimension_numbers<[1], [0], [0], [1], [0, 0, 1, 1], [], []>} : vector<64x288xf32>, vector<288x16xf32>, vector<64x16xf32> -> vector<64x16xf32>
    %61 = vector.broadcast %1 : vector<1x16xf32> to vector<64x16xf32>
    %62 = arith.mulf %60, %61 : vector<64x16xf32>
    %63 = vector.broadcast %2 : vector<1x16xf32> to vector<64x16xf32>
    %64 = arith.addf %62, %63 : vector<64x16xf32>
    %c0_20 = arith.constant 0 : index
    %c0_21 = arith.constant 0 : index
    %c0_22 = arith.constant 0 : index
    %65 = vector.load %arg1[%c0_20, %c0_21, %c0_22] : memref<1x64x24xf32, #tpu.memory_space<vmem>>, vector<1x64x24xf32>
    %66 = vector.shape_cast %65 : vector<1x64x24xf32> to vector<64x24xf32>
    %c0_23 = arith.constant 0 : index
    %c0_24 = arith.constant 0 : index
    %67 = vector.load %arg6[%c0_23, %c0_24] : memref<24x16xf32, #tpu.memory_space<vmem>>, vector<24x16xf32>
    %cst_25 = arith.constant dense<0.000000e+00> : vector<64x16xf32>
    %68 = tpu.matmul %66, %67, %cst_25 {dimension_numbers = #tpu.dot_dimension_numbers<[1], [0], [0], [1], [0, 0, 1, 1], [], []>} : vector<64x24xf32>, vector<24x16xf32>, vector<64x16xf32> -> vector<64x16xf32>
    %69 = vector.broadcast %3 : vector<1x16xf32> to vector<64x16xf32>
    %70 = arith.mulf %68, %69 : vector<64x16xf32>
    %71 = vector.broadcast %4 : vector<1x16xf32> to vector<64x16xf32>
    %72 = arith.addf %70, %71 : vector<64x16xf32>
    %73 = arith.addf %64, %72 : vector<64x16xf32>
    %cst_26 = arith.constant 0.000000e+00 : f32
    %74 = vector.broadcast %cst_26 : f32 to vector<64x16xf32>
    %75 = arith.cmpf oge, %73, %74 : vector<64x16xf32>
    %76 = vector.broadcast %5 : vector<1x16xf32> to vector<64x16xf32>
    %77 = arith.mulf %76, %73 : vector<64x16xf32>
    %78 = arith.select %75, %73, %77 : vector<64x16xi1>, vector<64x16xf32>
    %79 = vector.shape_cast %78 : vector<64x16xf32> to vector<8x8x16xf32>
    %cst_27 = arith.constant 0.000000e+00 : f32
    %80 = vector.broadcast %cst_27 : f32 to vector<10x24x16xf32>
    %c0_28 = arith.constant 0 : index
    %c0_29 = arith.constant 0 : index
    %c0_30 = arith.constant 0 : index
    %81 = vector.load %arg15[%c0_28, %c0_29, %c0_30] : memref<10x24x16xf32, #tpu.memory_space<vmem>>, vector<10x24x16xf32>
    tpu.vector_store %arg15[%c0_28, %c0_29, %c0_30], %80 {strides = array<i32>} : memref<10x24x16xf32, #tpu.memory_space<vmem>>, vector<10x24x16xf32>,
    %c1 = arith.constant 1 : index
    %c8_31 = arith.constant 8 : index
    %c0_32 = arith.constant 0 : index
    %82 = vector.load %arg15[%c1, %c8_31, %c0_32] : memref<10x24x16xf32, #tpu.memory_space<vmem>>, vector<8x8x16xf32>
    tpu.vector_store %arg15[%c1, %c8_31, %c0_32], %79 {strides = array<i32>} : memref<10x24x16xf32, #tpu.memory_space<vmem>>, vector<8x8x16xf32>,
    %c0_33 = arith.constant 0 : index
    %c0_34 = arith.constant 0 : index
    %c0_35 = arith.constant 0 : index
    %83 = vector.load %arg15[%c0_33, %c0_34, %c0_35] : memref<10x24x16xf32, #tpu.memory_space<vmem>>, vector<10x24x16xf32>
    %84 = vector.extract_strided_slice %83 {offsets = [0, 7, 0], sizes = [8, 8, 16], strides = [1, 1, 1]} : vector<10x24x16xf32> to vector<8x8x16xf32>
    %85 = vector.shape_cast %84 : vector<8x8x16xf32> to vector<64x16xf32>
    %86 = vector.extract_strided_slice %83 {offsets = [0, 8, 0], sizes = [8, 8, 16], strides = [1, 1, 1]} : vector<10x24x16xf32> to vector<8x8x16xf32>
    %87 = vector.shape_cast %86 : vector<8x8x16xf32> to vector<64x16xf32>
    %88 = vector.extract_strided_slice %83 {offsets = [0, 9, 0], sizes = [8, 8, 16], strides = [1, 1, 1]} : vector<10x24x16xf32> to vector<8x8x16xf32>
    %89 = vector.shape_cast %88 : vector<8x8x16xf32> to vector<64x16xf32>
    %90 = vector.extract_strided_slice %83 {offsets = [1, 7, 0], sizes = [8, 8, 16], strides = [1, 1, 1]} : vector<10x24x16xf32> to vector<8x8x16xf32>
    %91 = vector.shape_cast %90 : vector<8x8x16xf32> to vector<64x16xf32>
    %92 = vector.extract_strided_slice %83 {offsets = [1, 8, 0], sizes = [8, 8, 16], strides = [1, 1, 1]} : vector<10x24x16xf32> to vector<8x8x16xf32>
    %93 = vector.shape_cast %92 : vector<8x8x16xf32> to vector<64x16xf32>
    %94 = vector.extract_strided_slice %83 {offsets = [1, 9, 0], sizes = [8, 8, 16], strides = [1, 1, 1]} : vector<10x24x16xf32> to vector<8x8x16xf32>
    %95 = vector.shape_cast %94 : vector<8x8x16xf32> to vector<64x16xf32>
    %96 = vector.extract_strided_slice %83 {offsets = [2, 7, 0], sizes = [8, 8, 16], strides = [1, 1, 1]} : vector<10x24x16xf32> to vector<8x8x16xf32>
    %97 = vector.shape_cast %96 : vector<8x8x16xf32> to vector<64x16xf32>
    %98 = vector.extract_strided_slice %83 {offsets = [2, 8, 0], sizes = [8, 8, 16], strides = [1, 1, 1]} : vector<10x24x16xf32> to vector<8x8x16xf32>
    %99 = vector.shape_cast %98 : vector<8x8x16xf32> to vector<64x16xf32>
    %100 = vector.extract_strided_slice %83 {offsets = [2, 9, 0], sizes = [8, 8, 16], strides = [1, 1, 1]} : vector<10x24x16xf32> to vector<8x8x16xf32>
    %101 = vector.shape_cast %100 : vector<8x8x16xf32> to vector<64x16xf32>
    %102 = tpu.concatenate %85, %87, %89, %91, %93, %95, %97, %99, %101 in 1 : vector<64x16xf32>, vector<64x16xf32>, vector<64x16xf32>, vector<64x16xf32>, vector<64x16xf32>, vector<64x16xf32>, vector<64x16xf32>, vector<64x16xf32>, vector<64x16xf32> -> vector<64x144xf32>
    %c0_36 = arith.constant 0 : index
    %c0_37 = arith.constant 0 : index
    %103 = vector.load %arg7[%c0_36, %c0_37] : memref<144x16xf32, #tpu.memory_space<vmem>>, vector<144x16xf32>
    %cst_38 = arith.constant dense<0.000000e+00> : vector<64x16xf32>
    %104 = tpu.matmul %102, %103, %cst_38 {dimension_numbers = #tpu.dot_dimension_numbers<[1], [0], [0], [1], [0, 0, 1, 1], [], []>} : vector<64x144xf32>, vector<144x16xf32>, vector<64x16xf32> -> vector<64x16xf32>
    %105 = vector.broadcast %6 : vector<1x16xf32> to vector<64x16xf32>
    %106 = arith.mulf %104, %105 : vector<64x16xf32>
    %107 = vector.broadcast %7 : vector<1x16xf32> to vector<64x16xf32>
    %108 = arith.addf %106, %107 : vector<64x16xf32>
    %cst_39 = arith.constant 0.000000e+00 : f32
    %109 = vector.broadcast %cst_39 : f32 to vector<64x16xf32>
    %110 = arith.cmpf oge, %108, %109 : vector<64x16xf32>
    %111 = vector.broadcast %8 : vector<1x16xf32> to vector<64x16xf32>
    %112 = arith.mulf %111, %108 : vector<64x16xf32>
    %113 = arith.select %110, %108, %112 : vector<64x16xi1>, vector<64x16xf32>
    %114 = vector.shape_cast %113 : vector<64x16xf32> to vector<8x8x16xf32>
    %c0_40 = arith.constant 0 : index
    %c0_41 = arith.constant 0 : index
    %c0_42 = arith.constant 0 : index
    %115 = vector.load %arg8[%c0_40, %c0_41, %c0_42] : memref<1x1x16xf32, #tpu.memory_space<vmem>>, vector<1x1x16xf32>
    %116 = vector.broadcast %115 : vector<1x1x16xf32> to vector<8x8x16xf32>
    %117 = arith.mulf %114, %116 : vector<8x8x16xf32>
    %cst_43 = arith.constant dense<0.000000e+00> : vector<8x8xf32>
    %118 = vector.multi_reduction <add>, %117, %cst_43 [2] : vector<8x8x16xf32> to vector<8x8xf32>
    %c0_44 = arith.constant 0 : index
    %c0_45 = arith.constant 0 : index
    %c0_46 = arith.constant 0 : index
    %119 = vector.load %arg3[%c0_44, %c0_45, %c0_46] : memref<1x8x8xf32, #tpu.memory_space<vmem>>, vector<1x8x8xf32>
    %120 = vector.shape_cast %119 : vector<1x8x8xf32> to vector<8x8xf32>
    %121 = arith.mulf %118, %120 : vector<8x8xf32>
    %c0_47 = arith.constant 0 : index
    %c0_48 = arith.constant 0 : index
    %122 = vector.load %arg12[%c0_47, %c0_48] : memref<8x64xf32, #tpu.memory_space<vmem>>, vector<8x64xf32>
    %cst_49 = arith.constant dense<0.000000e+00> : vector<8x64xf32>
    %123 = tpu.matmul %121, %122, %cst_49 {dimension_numbers = #tpu.dot_dimension_numbers<[1], [0], [0], [1], [0, 0, 1, 1], [], []>} : vector<8x8xf32>, vector<8x64xf32>, vector<8x64xf32> -> vector<8x64xf32>
    %c0_50 = arith.constant 0 : index
    %c0_51 = arith.constant 0 : index
    %124 = vector.load %arg11[%c0_50, %c0_51] : memref<64x8xf32, #tpu.memory_space<vmem>>, vector<64x8xf32>
    %cst_52 = arith.constant dense<0.000000e+00> : vector<64x64xf32>
    %125 = tpu.matmul %124, %123, %cst_52 {dimension_numbers = #tpu.dot_dimension_numbers<[1], [0], [0], [1], [0, 0, 1, 1], [], []>} : vector<64x8xf32>, vector<8x64xf32>, vector<64x64xf32> -> vector<64x64xf32>
    %126 = arith.negf %125 : vector<64x64xf32>
    %127 = math.exp %126 : vector<64x64xf32>
    %cst_53 = arith.constant 1.000000e+00 : f32
    %128 = vector.broadcast %cst_53 : f32 to vector<64x64xf32>
    %129 = arith.addf %128, %127 : vector<64x64xf32>
    %130 = arith.divf %128, %129 : vector<64x64xf32>
    %c0_54 = arith.constant 0 : index
    %c0_55 = arith.constant 0 : index
    %c0_56 = arith.constant 0 : index
    %131 = vector.load %arg13[%c0_54, %c0_55, %c0_56] : memref<1x64x64xf32, #tpu.memory_space<vmem>>, vector<1x64x64xf32>
    %132 = vector.shape_cast %131 : vector<1x64x64xf32> to vector<64x64xf32>
    %133 = vector.shape_cast %130 : vector<64x64xf32> to vector<1x64x64xf32>
    tpu.vector_store %arg13[%c0_54, %c0_55, %c0_56], %133 {strides = array<i32>} : memref<1x64x64xf32, #tpu.memory_space<vmem>>, vector<1x64x64xf32>,
    return
  }
  func.func @transform_0(%arg0: i32) -> (i32, i32, i32) {
    %c0_i32 = arith.constant 0 : i32
    %c0_i32_0 = arith.constant 0 : i32
    %c0_i32_1 = arith.constant 0 : i32
    return %arg0, %c0_i32, %c0_i32_0 : i32, i32, i32
  }
  func.func @transform_1(%arg0: i32) -> (i32, i32, i32) {
    %c0_i32 = arith.constant 0 : i32
    %c0_i32_0 = arith.constant 0 : i32
    %c0_i32_1 = arith.constant 0 : i32
    return %arg0, %c0_i32, %c0_i32_0 : i32, i32, i32
  }
  func.func @transform_2(%arg0: i32) -> (i32, i32, i32) {
    %c0_i32 = arith.constant 0 : i32
    %c0_i32_0 = arith.constant 0 : i32
    %c0_i32_1 = arith.constant 0 : i32
    return %arg0, %c0_i32, %c0_i32_0 : i32, i32, i32
  }
  func.func @transform_3(%arg0: i32) -> (i32, i32) {
    %c0_i32 = arith.constant 0 : i32
    %c0_i32_0 = arith.constant 0 : i32
    %c0_i32_1 = arith.constant 0 : i32
    return %c0_i32, %c0_i32_0 : i32, i32
  }
  func.func @transform_4(%arg0: i32) -> (i32, i32) {
    %c0_i32 = arith.constant 0 : i32
    %c0_i32_0 = arith.constant 0 : i32
    %c0_i32_1 = arith.constant 0 : i32
    return %c0_i32, %c0_i32_0 : i32, i32
  }
  func.func @transform_5(%arg0: i32) -> (i32, i32) {
    %c0_i32 = arith.constant 0 : i32
    %c0_i32_0 = arith.constant 0 : i32
    %c0_i32_1 = arith.constant 0 : i32
    return %c0_i32, %c0_i32_0 : i32, i32
  }
  func.func @transform_6(%arg0: i32) -> (i32, i32) {
    %c0_i32 = arith.constant 0 : i32
    %c0_i32_0 = arith.constant 0 : i32
    %c0_i32_1 = arith.constant 0 : i32
    return %c0_i32, %c0_i32_0 : i32, i32
  }
  func.func @transform_7(%arg0: i32) -> (i32, i32, i32) {
    %c0_i32 = arith.constant 0 : i32
    %c0_i32_0 = arith.constant 0 : i32
    %c0_i32_1 = arith.constant 0 : i32
    %c0_i32_2 = arith.constant 0 : i32
    return %c0_i32, %c0_i32_0, %c0_i32_1 : i32, i32, i32
  }
  func.func @transform_8(%arg0: i32) -> (i32, i32) {
    %c0_i32 = arith.constant 0 : i32
    %c0_i32_0 = arith.constant 0 : i32
    %c0_i32_1 = arith.constant 0 : i32
    return %c0_i32, %c0_i32_0 : i32, i32
  }
  func.func @transform_9(%arg0: i32) -> (i32, i32) {
    %c0_i32 = arith.constant 0 : i32
    %c0_i32_0 = arith.constant 0 : i32
    %c0_i32_1 = arith.constant 0 : i32
    return %c0_i32, %c0_i32_0 : i32, i32
  }
  func.func @transform_10(%arg0: i32) -> (i32, i32) {
    %c0_i32 = arith.constant 0 : i32
    %c0_i32_0 = arith.constant 0 : i32
    %c0_i32_1 = arith.constant 0 : i32
    return %c0_i32, %c0_i32_0 : i32, i32
  }
  func.func @transform_11(%arg0: i32) -> (i32, i32) {
    %c0_i32 = arith.constant 0 : i32
    %c0_i32_0 = arith.constant 0 : i32
    %c0_i32_1 = arith.constant 0 : i32
    return %c0_i32, %c0_i32_0 : i32, i32
  }
  func.func @transform_12(%arg0: i32) -> (i32, i32, i32) {
    %c0_i32 = arith.constant 0 : i32
    %c0_i32_0 = arith.constant 0 : i32
    %c0_i32_1 = arith.constant 0 : i32
    return %arg0, %c0_i32, %c0_i32_0 : i32, i32, i32
  }
}

</mosaic_0001>

<bundles_post_ra>
// kernel: funet_forward.1
= control target key start
LH: loop header
LB: loop body
LE: loop exit
PB: predicated region body
PF: predicated region fallthrough
CT: control target
= control target key end

     0   :  { %s4949_s0 = inlined_call_operand.vmem [shape: f32[2,64,24], index: 0, kind: input, shape index: {}]   ;;  %s4950_s1 = inlined_call_operand.vmem [shape: f32[2,16,32], index: 1, kind: input, shape index: {}]   ;;  %s4951_s2 = inlined_call_operand.vmem [shape: f32[2,8,8], index: 2, kind: input, shape index: {}]   ;;  %s4952_s3 = inlined_call_operand.vmem [shape: f32[32,16], index: 3, kind: input, shape index: {}]   ;;  %s4953_s4 = inlined_call_operand.vmem [shape: f32[288,16], index: 4, kind: input, shape index: {}]   ;;  %s4954_s5 = inlined_call_operand.vmem [shape: f32[24,16], index: 5, kind: input, shape index: {}]   ;;  %s4955_s6 = inlined_call_operand.vmem [shape: f32[144,16], index: 6, kind: input, shape index: {}]   ;;  %s4956_s7 = inlined_call_operand.vmem [shape: f32[1,1,16], index: 7, kind: input, shape index: {}]   ;;  %s4957_s8 = inlined_call_operand.vmem [shape: f32[8,16], index: 8, kind: input, shape index: {}]   ;;  %s4958_s9 = inlined_call_operand.vmem [shape: f32[64,16], index: 9, kind: input, shape index: {}]   ;;  %s4959_s10 = inlined_call_operand.vmem [shape: f32[64,8], index: 10, kind: input, shape index: {}]   ;;  %s4960_s11 = inlined_call_operand.vmem [shape: f32[8,64], index: 11, kind: input, shape index: {}]   ;;  %s4961_s12 = inlined_call_operand.hbm [shape: f32[2,64,64], index: 12, kind: output, shape index: {}]  }
   0x1   :  { %4980 = sst [smem:[#allocation11_spill]] %s4950_s1 }
   0x2   :  { %4981 = sst [smem:[#allocation12_spill]] %s4952_s3 }
   0x3   :  { %4982 = sst [smem:[#allocation13_spill]] %s4958_s9 }
   0x4   :  { %17 = vsyncpa [#allocation5], 0 }
   0x5   :  { %19 = vsyncpa [#allocation5 + $0x1], 0  ;;  %s3503_s21 = smov 0   ;;  %s3505_s22 = smov 0  }
   0x6   :  { %s3507_s23 = smov 0   ;;  %s3509_s24 = smov 0  }
   0x7 LB: > { %4983 = sst [smem:[#allocation7_spill]] %s3421_s23  ;;  %s3524_s25 = sadd.s32 4294967295, %s3425_s24   ;;  %s3425_s24 = sphi %s3509_s24, %s5000_s24   ;;  %s3421_s23 = sphi %s3507_s23, %s5002_s23   ;;  %s3417_s22 = sphi %s3505_s22, %s5004_s22   ;;  %s3413_s21 = sphi %s3503_s21, %s5003_s21  }
   0x8   : > { %s2754_s26 = sadd.s32 4294967294, %s3425_s24   ;;  %s3528_s27 = sadd.s32 1, %s3425_s24  }
   0x9   : > { %4984 = sst [smem:[#allocation8_spill]] %s3528_s27  ;;  %s299_s28 = sadd.s32 1, %s3421_s23 }
   0xa   : > { %s296_s29 = ssub.s32 %s3425_s24, %s3528_s27  ;;  %p309_p0 = scmp.ne.s32.totalorder %s3421_s23, %s3417_s22 }
   0xb   : > { %p297_p1 = scmp.eq.s32.totalorder %s296_s29, 0  ;;  %p310_p2 = scmp.eq.s32.totalorder %s3524_s25, 1 }
   0xc   : > { %p315_p3 = scmp.ne.s32.totalorder %s3417_s22, %s3413_s21  ;;  %p316_p4 = scmp.eq.s32.totalorder %s2754_s26, 1 }
   0xd   : > { %s3539_s30 = scalar_select %p297_p1, %s3421_s23, %s299_s28  }
   0xe   : > { %p3541_p5 = por %p310_p2, %p309_p0  ;;  %p3545_p6 = por %p316_p4, %p315_p3 }
   0xf   : > { %4985 = sst [smem:[#allocation9_spill]] %s3539_s30  ;;  %p2757_p7 = scmp.ge.s32.totalorder %s3425_s24, 1 }
  0x10   : > { %s4987_s14 = scalar_select %p3545_p6, 1, 0 }
  0x11   : > { %p384_p8 = scmp.lt.s32.totalorder %s3425_s24, 3 }
  0x12   : > { %4988 = sst [smem:[#allocation10_spill]] %s4987_s14 }
  0x13   : > { %p385_p9 = pnand %p2757_p7, %p384_p8 }
  0x14   : > { %p435_p10 = scmp.lt.s32.totalorder (!%p385_p9), %s3524_s25, 1  ;;  %s4989_s1 = sld [smem:[#allocation11_spill]] (!%p385_p9) }
  0x15   : > { %388 = sbr.rel (%p385_p9) target bundleno = 1603 (0x643), region = 68  ;;  %s4990_s9 = sld [smem:[#allocation13_spill]] (!%p385_p9) }
  0x16   : > { %s4991_s3 = sld [smem:[#allocation12_spill]] (!%p385_p9)  ;;  %s4966_s18 = smov (!%p385_p9), 32  }
  0x17   : > { %s4972_s20 = smov (!%p385_p9), 48   ;;  %s4964_s26 = smov (!%p385_p9), 64  }
  0x18   : > { %s4968_s28 = smov (!%p385_p9), 96   ;;  %s4962_s30 = smov (!%p385_p9), 112  }
  0x19   : > { %s4993_s29 = smov (!%p385_p9), 64   ;;  %s4995_s17 = smov (!%p385_p9), 96  }
  0x1a   : > { %s3553_s15 = scalar_select %p435_p10, %s3524_s25, 1  ;;  %vm460_vm0 = vcmask 130048   ;;  %v3427_v14 = vmov 0.0   ;;  %vm787_vm1 = vcmask 1041408   ;;  %vm530_vm2 = vcmask 261120  }
  0x1b   : > { %v450_v2 = vld [vmem:[%s4990_s9] sm:$0xff]  ;;  %v451_v3 = vld [vmem:[%s4990_s9 + $0x8] sm:$0xff]  ;;  %v452_v4 = vld [vmem:[%s4990_s9 + $0x10] sm:$0xff]  ;;  %596 = vst.msk [vmem:[#allocation2] sm:$0xff] %vm460_vm0, %v3427_v14  ;;  %vm734_vm3 = vcmask 1046528   ;;  %vm693_vm4 = vcmask 1040384  }
  0x1c   : > { %s2827_s16 = sshll.u32 %s3553_s15, 4  ;;  %v453_v5 = vld [vmem:[%s4990_s9 + $0x18] sm:$0xff]  ;;  %v528_v7 = vld [vmem:[%s4991_s3 + $0x10] sm:$0xff]  ;;  %v527_v8 = vld [vmem:[%s4991_s3 + $0x8] sm:$0xff]  ;;  %597 = vst.msk [vmem:[#allocation2 + $0x8] sm:$0xff] %vm460_vm0, %v3427_v14  ;;  %vm813_vm5 = vcmask 1045504  }
  0x1d   : > { %s444_s19 = scalar_lea.vmem %s4989_s1, %s2827_s16  ;;  %v529_v6 = vld [vmem:[%s4991_s3 + $0x18] sm:$0xff]  ;;  %v454_v9 = vld [vmem:[%s4990_s9 + $0x20] sm:$0xff]  ;;  %v455_v10 = vld [vmem:[%s4990_s9 + $0x28] sm:$0xff]  ;;  %600 = vst.msk [vmem:[#allocation2 + $0x20] sm:$0xff] %vm460_vm0, %v3427_v14  ;;  %s4970_s16 = smov 16   ;;  %vm1562_vm6 = vcmask 195584  }
  0x1e   : > { %v459_v0 = vld [vmem:[%s444_s19 + $0x8] sm:$0xff]  ;;  %v458_v1 = vld [vmem:[%s444_s19] sm:$0xff]  ;;  %2829 = vmatpush.msra.mxu1 %v529_v6  ;;  %2830 = vmatpush.msra.mxu2 %v529_v6  ;;  %v456_v11 = vld [vmem:[%s4990_s9 + $0x30] sm:$0xff]  ;;  %598 = vst.msk [vmem:[#allocation2 + $0x10] sm:$0xff] %vm460_vm0, %v3427_v14  ;;  %s4974_s19 = smov 80   ;;  %s4997_s27 = smov 112  }
  0x1f   : > { %499 = vmatpush.msra.mxu0 %v459_v0  ;;  %v457_v12 = vld [vmem:[%s4990_s9 + $0x38] sm:$0xff]  ;;  %v526_v13 = vld [vmem:[%s4991_s3] sm:$0xff]  ;;  %599 = vst.msk [vmem:[#allocation2 + $0x18] sm:$0xff] %vm460_vm0, %v3427_v14  ;;  %s2826_s23 = sshll.u32 %s3553_s15, 6  ;;  %vm1217_vm7 = vcmask 392192   ;;  %vm1226_vm8 = vcmask 523264  }
  0x20   : > { %2831 = vmatpush.msra.mxu1 %v528_v7  ;;  %2832 = vmatpush.msra.mxu2 %v528_v7  ;;  %601 = vst.msk [vmem:[#allocation2 + $0x28] sm:$0xff] %vm460_vm0, %v3427_v14  ;;  %vm1235_vm9 = vcmask 654336   ;;  %vm1244_vm10 = vcmask 785408   ;;  %vm1253_vm11 = vcmask 916480   ;;  %s432_s1 = sand.u32 1, %s3417_s22   ;;  %s3383_s14 = scalar_lea.hbm %s4961_s12, 128 }
  0x21   : > { %500 = vmatpush.msra.mxu0 %v458_v1  ;;  %602 = vst.msk [vmem:[#allocation2 + $0x30] sm:$0xff] %vm460_vm0, %v3427_v14  ;;  %s2758_s3 = sshll.u32 %s432_s1, 6 }
  0x22   : > { %2764 = vmatmul.msk.f32.vlgmr.msra.gmra.mxu0 %vm460_vm0, %v450_v2  ;;  %2833 = vmatpush.msra.mxu1 %v527_v8  ;;  %v641_v15 = vld [vmem:[#allocation2] sm:$0xff]  ;;  %603 = vst.msk [vmem:[#allocation2 + $0x38] sm:$0xff] %vm460_vm0, %v3427_v14 }
  0x23   : > { %567 = vmatpush.msrb.mxu0 %v529_v6  ;;  %2834 = vmatpush.msra.mxu2 %v527_v8  ;;  %v3619_v16 = vld [vmem:[#allocation2 + $0x8] sm:$0xff]  ;;  %v788_v17 = vrot.slane %v641_v15, 6  ;;  %604 = vst.msk [vmem:[#allocation2 + $0x40] sm:$0xff] %vm460_vm0, %v3427_v14 }
  0x24   : > { %2835 = vmatpush.msra.mxu1 %v526_v13  ;;  %v789_v18 = vrot.slane %v3619_v16, 6  ;;  %605 = vst.msk [vmem:[#allocation2 + $0x48] sm:$0xff] %vm460_vm0, %v3427_v14  ;;  %v3626_v19 = vld [vmem:[#allocation2 + $0x20] sm:$0xff]  ;;  %v814_v50 = vrot.slane %v3619_v16, 2 }
  0x25   : > { %568 = vmatpush.msrb.mxu0 %v528_v7  ;;  %2836 = vmatpush.msra.mxu2 %v526_v13  ;;  %606 = vst.msk [vmem:[#allocation2 + $0x50] sm:$0xff] %vm460_vm0, %v3427_v14  ;;  %v735_v23 = vrot.slane %v3626_v19, 1  ;;  %v792_v38 = vrot.slane %v3626_v19, 6  ;;  %v643_v43 = vld [vmem:[#allocation2 + $0x10] sm:$0xff]  ;;  %v817_v62 = vrot.slane %v3626_v19, 2 }
  0x26   : > { %v790_v20 = vsel %vm787_vm1, %v788_v17, %v789_v18  ;;  %607 = vst.msk [vmem:[#allocation2 + $0x58] sm:$0xff] %vm460_vm0, %v3427_v14  ;;  %v3758_v35 = vld [vmem:[#allocation2 + $0x18] sm:$0xff]  ;;  %v815_v51 = vrot.slane %v643_v43, 2 }
  0x27   : > { %569 = vmatpush.msrb.mxu0 %v527_v8  ;;  %v2903_v21 = vpack.i.bf16 %v790_v20, %v3626_v19  ;;  %608 = vst.msk [vmem:[#allocation2 + $0x60] sm:$0xff] %vm460_vm0, %v3427_v14  ;;  %v3643_v22 = vld [vmem:[#allocation2 + $0x28] sm:$0xff]  ;;  %v791_v37 = vrot.slane %v3758_v35, 6 }
  0x28   : > { %609 = vst.msk [vmem:[#allocation2 + $0x68] sm:$0xff] %vm460_vm0, %v3427_v14  ;;  %v736_v24 = vrot.slane %v3643_v22, 1  ;;  %v647_v42 = vld [vmem:[#allocation2 + $0x30] sm:$0xff]  ;;  %v816_v57 = vsel %vm813_vm5, %v814_v50, %v815_v51  ;;  %v818_v63 = vrot.slane %v3643_v22, 2 }
  0x29   : > { %570 = vmatpush.msrb.mxu0 %v526_v13  ;;  %2904 = vrot.lane.b32.xlu0 %v2903_v21, %s4970_s16  ;;  %610 = vst.msk [vmem:[#allocation2 + $0x70] sm:$0xff] %vm460_vm0, %v3427_v14  ;;  %v793_v40 = vsel %vm787_vm1, %v791_v37, %v792_v38  ;;  %v697_v48 = vrot.slane %v647_v42, 7  ;;  %v794_v54 = vrot.slane %v647_v42, 6 }
  0x2a   : > { %2765 = vmatmul.msk.f32.gmra.mxu0 %vm460_vm0, %v451_v3  ;;  %611 = vst.msk [vmem:[#allocation2 + $0x78] sm:$0xff] %vm460_vm0, %v3427_v14  ;;  %v737_v26 = vsel %vm734_vm3, %v735_v23, %v736_v24  ;;  %v649_v39 = vld [vmem:[#allocation2 + $0x40] sm:$0xff] }
  0x2b   : > { %612 = vst.msk [vmem:[#allocation2 + $0x80] sm:$0xff] %vm460_vm0, %v3427_v14  ;;  %v2908_v27 = vpack.i.bf16 %v3619_v16, %v737_v26  ;;  %v739_v41 = vrot.slane %v649_v39, 1  ;;  %v650_v58 = vld [vmem:[#allocation2 + $0x48] sm:$0xff]  ;;  %v821_v7 = vrot.slane %v649_v39, 2 }
  0x2c   : > { %613 = vst.msk [vmem:[#allocation2 + $0x88] sm:$0xff] %vm460_vm0, %v3427_v14  ;;  %v700_v2 = vrot.slane %v650_v58, 7  ;;  %v797_v16 = vrot.slane %v650_v58, 6 }
  0x2d   : > { %614 = vst.msk [vmem:[#allocation2 + $0x90] sm:$0xff] %vm460_vm0, %v3427_v14  ;;  %v652_v20 = vld [vmem:[#allocation2 + $0x58] sm:$0xff] }
  0x2e   : > { %615 = vst.msk [vmem:[#allocation2 + $0x98] sm:$0xff] %vm460_vm0, %v3427_v14  ;;  %v742_v24 = vrot.slane %v652_v20, 1 }
  0x2f   : > { %616 = vst.msk [vmem:[#allocation2 + $0xa0] sm:$0xff] %vm460_vm0, %v3427_v14 }
  0x30   : > { %617 = vst.msk [vmem:[#allocation2 + $0xa8] sm:$0xff] %vm460_vm0, %v3427_v14 }
  0x31   : > { %618 = vst.msk [vmem:[#allocation2 + $0xb0] sm:$0xff] %vm460_vm0, %v3427_v14  ;;  %2909 = vrot.lane.b32.xlu0 %v2908_v27, %s4966_s18 }
  0x32   : > { %2766 = vmatmul.msk.f32.gmra.mxu0 %vm460_vm0, %v452_v4  ;;  %619 = vst.msk [vmem:[#allocation2 + $0xb8] sm:$0xff] %vm460_vm0, %v3427_v14 }
  0x33   : > { %620 = vst.msk [vmem:[#allocation2 + $0xc0] sm:$0xff] %vm460_vm0, %v3427_v14 }
  0x34   : > { %621 = vst.msk [vmem:[#allocation2 + $0xc8] sm:$0xff] %vm460_vm0, %v3427_v14 }
  0x35   : > { %622 = vst.msk [vmem:[#allocation2 + $0xd0] sm:$0xff] %vm460_vm0, %v3427_v14 }
  0x36   : > { %623 = vst.msk [vmem:[#allocation2 + $0xd8] sm:$0xff] %vm460_vm0, %v3427_v14 }
  0x37   : > { %624 = vst.msk [vmem:[#allocation2 + $0xe0] sm:$0xff] %vm460_vm0, %v3427_v14 }
  0x38   : > { %625 = vst.msk [vmem:[#allocation2 + $0xe8] sm:$0xff] %vm460_vm0, %v3427_v14 }
  0x39   : > { %626 = vst.msk [vmem:[#allocation2 + $0xf0] sm:$0xff] %vm460_vm0, %v3427_v14 }
  0x3a   : > { %2767 = vmatmul.msk.f32.gmra.mxu0 %vm460_vm0, %v453_v5  ;;  %627 = vst.msk [vmem:[#allocation2 + $0xf8] sm:$0xff] %vm460_vm0, %v3427_v14  ;;  %v819_v5 = vsel %vm813_vm5, %v817_v62, %v818_v63 }
  0x3b   : > { %628 = vst.msk [vmem:[#allocation2 + $0x100] sm:$0xff] %vm460_vm0, %v3427_v14 }
  0x3c   : > { %629 = vst.msk [vmem:[#allocation2 + $0x108] sm:$0xff] %vm460_vm0, %v3427_v14 }
  0x3d   : > { %630 = vst.msk [vmem:[#allocation2 + $0x110] sm:$0xff] %vm460_vm0, %v3427_v14 }
  0x3e   : > { %631 = vst.msk [vmem:[#allocation2 + $0x118] sm:$0xff] %vm460_vm0, %v3427_v14 }
  0x3f   : > { %1679 = vst.msk [vmem:[#allocation3] sm:$0xff] %vm460_vm0, %v3427_v14 }
  0x40   : > { %1680 = vst.msk [vmem:[#allocation3 + $0x8] sm:$0xff] %vm460_vm0, %v3427_v14 }
  0x41   : > { %1681 = vst.msk [vmem:[#allocation3 + $0x10] sm:$0xff] %vm460_vm0, %v3427_v14 }
  0x42   : > { %2768 = vmatmul.msk.f32.gmra.mxu0 %vm460_vm0, %v454_v9  ;;  %1682 = vst.msk [vmem:[#allocation3 + $0x18] sm:$0xff] %vm460_vm0, %v3427_v14 }
  0x43   : > { %1683 = vst.msk [vmem:[#allocation3 + $0x20] sm:$0xff] %vm460_vm0, %v3427_v14 }
  0x44   : > { %1684 = vst.msk [vmem:[#allocation3 + $0x28] sm:$0xff] %vm460_vm0, %v3427_v14 }
  0x45   : > { %1685 = vst.msk [vmem:[#allocation3 + $0x30] sm:$0xff] %vm460_vm0, %v3427_v14 }
  0x46   : > { %1686 = vst.msk [vmem:[#allocation3 + $0x38] sm:$0xff] %vm460_vm0, %v3427_v14 }
  0x47   : > { %1687 = vst.msk [vmem:[#allocation3 + $0x40] sm:$0xff] %vm460_vm0, %v3427_v14 }
  0x48   : > { %1688 = vst.msk [vmem:[#allocation3 + $0x48] sm:$0xff] %vm460_vm0, %v3427_v14 }
  0x49   : > { %1689 = vst.msk [vmem:[#allocation3 + $0x50] sm:$0xff] %vm460_vm0, %v3427_v14 }
  0x4a   : > { %2769 = vmatmul.msk.f32.gmra.mxu0 %vm460_vm0, %v455_v10  ;;  %1690 = vst.msk [vmem:[#allocation3 + $0x58] sm:$0xff] %vm460_vm0, %v3427_v14  ;;  %v653_v10 = vld [vmem:[#allocation2 + $0x60] sm:$0xff] }
  0x4b   : > { %1691 = vst.msk [vmem:[#allocation3 + $0x60] sm:$0xff] %vm460_vm0, %v3427_v14 }
  0x4c   : > { %1692 = vst.msk [vmem:[#allocation3 + $0x68] sm:$0xff] %vm460_vm0, %v3427_v14 }
  0x4d   : > { %1693 = vst.msk [vmem:[#allocation3 + $0x70] sm:$0xff] %vm460_vm0, %v3427_v14 }
  0x4e   : > { %1694 = vst.msk [vmem:[#allocation3 + $0x78] sm:$0xff] %vm460_vm0, %v3427_v14 }
  0x4f   : > { %1695 = vst.msk [vmem:[#allocation3 + $0x80] sm:$0xff] %vm460_vm0, %v3427_v14 }
  0x50   : > { %1696 = vst.msk [vmem:[#allocation3 + $0x88] sm:$0xff] %vm460_vm0, %v3427_v14 }
  0x51   : > { %1697 = vst.msk [vmem:[#allocation3 + $0x90] sm:$0xff] %vm460_vm0, %v3427_v14 }
  0x52   : > { %2770 = vmatmul.msk.f32.gmra.mxu0 %vm460_vm0, %v456_v11  ;;  %1698 = vst.msk [vmem:[#allocation3 + $0x98] sm:$0xff] %vm460_vm0, %v3427_v14 }
  0x53   : > { %1699 = vst.msk [vmem:[#allocation3 + $0xa0] sm:$0xff] %vm460_vm0, %v3427_v14 }
  0x54   : > { %1700 = vst.msk [vmem:[#allocation3 + $0xa8] sm:$0xff] %vm460_vm0, %v3427_v14 }
  0x55   : > { %1701 = vst.msk [vmem:[#allocation3 + $0xb0] sm:$0xff] %vm460_vm0, %v3427_v14 }
  0x56   : > { %1702 = vst.msk [vmem:[#allocation3 + $0xb8] sm:$0xff] %vm460_vm0, %v3427_v14 }
  0x57   : > { %1703 = vst.msk [vmem:[#allocation3 + $0xc0] sm:$0xff] %vm460_vm0, %v3427_v14 }
  0x58   : > { %1704 = vst.msk [vmem:[#allocation3 + $0xc8] sm:$0xff] %vm460_vm0, %v3427_v14 }
  0x59   : > { %1705 = vst.msk [vmem:[#allocation3 + $0xd0] sm:$0xff] %vm460_vm0, %v3427_v14 }
  0x5a   : > { %2771 = vmatmul.msk.f32.gmra.mxu0 %vm460_vm0, %v457_v12  ;;  %1706 = vst.msk [vmem:[#allocation3 + $0xd8] sm:$0xff] %vm460_vm0, %v3427_v14 }
  0x5b   : > { %1707 = vst.msk [vmem:[#allocation3 + $0xe0] sm:$0xff] %vm460_vm0, %v3427_v14 }
  0x5c   : > { %1708 = vst.msk [vmem:[#allocation3 + $0xe8] sm:$0xff] %vm460_vm0, %v3427_v14  ;;  %v800_v14 = vrot.slane %v653_v10, 6 }
  0x9f   : > { %v502_v25 = vpop.f32.mrf.mxu0 }
  0xa0   : > { %2772 = vmatmul.msk.f32.vlgmr.msrb.gmra.mxu0 %vm530_vm2, %v502_v25 }
  0xa7   : > { %v505_v28 = vpop.f32.mrf.mxu0 }
  0xa8   : > { %2773 = vmatmul.msk.f32.vlgmr.msra.gmra.mxu1 %vm530_vm2, %v505_v28  ;;  %v703_v28 = vrot.slane %v653_v10, 7 }
  0xaf   : > { %v508_v29 = vpop.f32.mrf.mxu0 }
  0xb0   : > { %2774 = vmatmul.msk.f32.gmra.mxu1 %vm530_vm2, %v508_v29 }
  0xb7   : > { %v511_v30 = vpop.f32.mrf.mxu0 }
  0xb8   : > { %2775 = vmatmul.msk.f32.gmra.mxu1 %vm530_vm2, %v511_v30 }
  0xbf   : > { %v514_v31 = vpop.f32.mrf.mxu0 }
  0xc0   : > { %2776 = vmatmul.msk.f32.vlgmr.msra.gmra.mxu2 %vm530_vm2, %v514_v31 }
  0xc7   : > { %v517_v32 = vpop.f32.mrf.mxu0 }
  0xc8   : > { %2777 = vmatmul.msk.f32.gmra.mxu2 %vm530_vm2, %v517_v32 }
  0xcf   : > { %v520_v33 = vpop.f32.mrf.mxu0 }
  0xd0   : > { %2778 = vmatmul.msk.f32.gmra.mxu2 %vm530_vm2, %v520_v33  ;;  %v824_v33 = vrot.slane %v652_v20, 2 }
  0xd7   : > { %v523_v34 = vpop.f32.mrf.mxu0 }
  0xd8   : > { %2779 = vmatmul.msk.f32.gmra.mxu2 %vm530_vm2, %v523_v34 }
 0x11d   : > { %v572_v36 = vpop.f32.mrf.mxu0 }
 0x11e   : > { %633 = vst.msk [vmem:[#allocation2 + $0x38] sm:$0xff] %vm460_vm0, %v572_v36 }
 0x125   : > { %v575_v44 = vpop.f32.mrf.mxu1  ;;  %v3764_v45 = vld [vmem:[#allocation2 + $0x38] sm:$0xff] }
 0x126   : > { %634 = vst.msk [vmem:[#allocation2 + $0x50] sm:$0xff] %vm460_vm0, %v575_v44  ;;  %v2913_v46 = vpack.i.bf16 %v793_v40, %v3764_v45  ;;  %v738_v47 = vrot.slane %v3764_v45, 1  ;;  %v698_v49 = vrot.slane %v3764_v45, 7  ;;  %v795_v55 = vrot.slane %v3764_v45, 6  ;;  %v655_v40 = vld [vmem:[#allocation2 + $0x70] sm:$0xff] }
 0x127   : > { %v820_v9 = vrot.slane %v3764_v45, 2  ;;  %v745_v43 = vrot.slane %v655_v40, 1 }
 0x128   : > { %2914 = vrot.lane.b32.xlu1 %v2913_v46, %s4970_s16  ;;  %v740_v52 = vsel %vm734_vm3, %v738_v47, %v739_v41  ;;  %v3777_v56 = vsel %vm693_vm4, %v697_v48, %v698_v49  ;;  %v796_v61 = vsel %vm787_vm1, %v794_v54, %v795_v55  ;;  %v827_v49 = vrot.slane %v655_v40, 2  ;;  %v1364_v40 = vld [vmem:[%s4953_s4 + $0x70] sm:$0xff] }
 0x129   : > { %v2928_v53 = vpack.i.bf16 %v3764_v45, %v740_v52  ;;  %v2918_v1 = vpack.i.bf16 %v816_v57, %v3777_v56  ;;  %v2933_v4 = vpack.i.bf16 %v3626_v19, %v740_v52  ;;  %v2923_v13 = vpack.i.bf16 %v796_v61, %v3764_v45  ;;  %v658_v57 = vld [vmem:[#allocation2 + $0x88] sm:$0xff] }
 0x12a   : > { %v822_v18 = vsel %vm813_vm5, %v820_v9, %v821_v7  ;;  %v748_v63 = vrot.slane %v658_v57, 1  ;;  %v830_v10 = vrot.slane %v658_v57, 2 }
 0x12b   : > { %2929 = vrot.lane.b32.xlu2 %v2928_v53, %s4974_s19  ;;  %v656_v53 = vld [vmem:[#allocation2 + $0x78] sm:$0xff] }
 0x12c   : > { %v803_v58 = vrot.slane %v656_v53, 6 }
 0x12d   : > { %v3780_v59 = vld [vmem:[#allocation2 + $0x50] sm:$0xff]  ;;  %v578_v60 = vpop.f32.mrf.mxu1 }
 0x12e   : > { %635 = vst.msk [vmem:[#allocation2 + $0x68] sm:$0xff] %vm460_vm0, %v578_v60  ;;  %v2938_v0 = vpack.i.bf16 %v796_v61, %v3780_v59  ;;  %v701_v3 = vrot.slane %v3780_v59, 7  ;;  %v798_v17 = vrot.slane %v3780_v59, 6  ;;  %v741_v25 = vrot.slane %v3780_v59, 1 }
 0x12f   : > { %v823_v32 = vrot.slane %v3780_v59, 2 }
 0x130   : > { %2939 = vrot.lane.b32.xlu0 %v2938_v0, %s4970_s16  ;;  %2919 = vrot.lane.b32.xlu1 %v2918_v1, %s4972_s20  ;;  %v3795_v6 = vsel %vm693_vm4, %v700_v2, %v701_v3  ;;  %v799_v23 = vsel %vm787_vm1, %v797_v16, %v798_v17  ;;  %v3817_v30 = vsel %vm734_vm3, %v741_v25, %v742_v24  ;;  %v706_v1 = vrot.slane %v656_v53, 7  ;;  %v661_v24 = vld [vmem:[#allocation2 + $0xa0] sm:$0xff] }
 0x131   : > { %v2948_v8 = vpack.i.bf16 %v819_v5, %v3795_v6  ;;  %v2943_v21 = vpack.i.bf16 %v822_v18, %v3795_v6  ;;  %v2953_v27 = vpack.i.bf16 %v799_v23, %v3780_v59  ;;  %v2958_v31 = vpack.i.bf16 %v3780_v59, %v3817_v30 }
 0x132   : > { %v3830_v37 = vsel %vm813_vm5, %v823_v32, %v824_v33  ;;  %v2963_v39 = vpack.i.bf16 %v3764_v45, %v3817_v30 }
 0x133   : > { %2934 = vrot.lane.b32.xlu2 %v2933_v4, %s4966_s18 }
 0x135   : > { %v3799_v11 = vld [vmem:[#allocation2 + $0x68] sm:$0xff]  ;;  %v581_v12 = vpop.f32.mrf.mxu1 }
 0x136   : > { %636 = vst.msk [vmem:[#allocation2 + $0x80] sm:$0xff] %vm460_vm0, %v581_v12  ;;  %v801_v15 = vrot.slane %v3799_v11, 6  ;;  %v704_v29 = vrot.slane %v3799_v11, 7  ;;  %v2968_v41 = vpack.i.bf16 %v799_v23, %v3799_v11  ;;  %v744_v42 = vrot.slane %v3799_v11, 1 }
 0x137   : > { %v826_v48 = vrot.slane %v3799_v11, 2 }
 0x138   : > { %2949 = vrot.lane.b32.xlu0 %v2948_v8, %s4972_s20  ;;  %2924 = vrot.lane.b32.xlu1 %v2923_v13, %s4964_s26  ;;  %v802_v22 = vsel %vm787_vm1, %v800_v14, %v801_v15  ;;  %v3826_v36 = vsel %vm693_vm4, %v703_v28, %v704_v29  ;;  %v3843_v46 = vsel %vm734_vm3, %v744_v42, %v745_v43  ;;  %v659_v14 = vld [vmem:[#allocation2 + $0x90] sm:$0xff]  ;;  %v833_v28 = vrot.slane %v661_v24, 2  ;;  %v1363_v43 = vld [vmem:[%s4953_s4 + $0x68] sm:$0xff] }
 0x139   : > { %v2973_v26 = vpack.i.bf16 %v802_v22, %v3780_v59  ;;  %v2978_v38 = vpack.i.bf16 %v3830_v37, %v3826_v36  ;;  %v2988_v45 = vpack.i.bf16 %v802_v22, %v3799_v11  ;;  %v2993_v47 = vpack.i.bf16 %v3799_v11, %v3843_v46 }
 0x13a   : > { %v3852_v50 = vsel %vm813_vm5, %v826_v48, %v827_v49  ;;  %v2998_v54 = vpack.i.bf16 %v3780_v59, %v3843_v46  ;;  %v2983_v61 = vpack.i.bf16 %v822_v18, %v3826_v36  ;;  %v806_v16 = vrot.slane %v659_v14, 6  ;;  %v1378_v48 = vld [vmem:[%s4953_s4 + $0xe0] sm:$0xff] }
 0x13b   : > { %2944 = vrot.lane.b32.xlu2 %v2943_v21, %s4968_s28  ;;  %v709_v25 = vrot.slane %v659_v14, 7  ;;  %v751_v29 = vrot.slane %v661_v24, 1  ;;  %v1357_v14 = vld [vmem:[%s4953_s4 + $0x38] sm:$0xff]  ;;  %v1384_v24 = vld [vmem:[%s4953_s4 + $0x110] sm:$0xff] }
 0x13d   : > { %v3856_v52 = vld [vmem:[#allocation2 + $0x80] sm:$0xff] }
 0x13e   : > { %v3003_v55 = vpack.i.bf16 %v802_v22, %v3856_v52  ;;  %v804_v60 = vrot.slane %v3856_v52, 6  ;;  %v747_v62 = vrot.slane %v3856_v52, 1  ;;  %v707_v2 = vrot.slane %v3856_v52, 7 }
 0x13f   : > { %v829_v9 = vrot.slane %v3856_v52, 2 }
 0x140   : > { %2974 = vrot.lane.b32.xlu0 %v2973_v26, %s4962_s30  ;;  %2954 = vrot.lane.b32.xlu1 %v2953_v27, %s4964_s26  ;;  %v805_v0 = vsel %vm787_vm1, %v803_v58, %v804_v60  ;;  %v3872_v3 = vsel %vm734_vm3, %v747_v62, %v748_v63  ;;  %v3880_v7 = vsel %vm693_vm4, %v706_v1, %v707_v2 }
 0x141   : > { %v3028_v4 = vpack.i.bf16 %v3856_v52, %v3872_v3  ;;  %v3008_v5 = vpack.i.bf16 %v805_v0, %v3799_v11  ;;  %v3013_v8 = vpack.i.bf16 %v3852_v50, %v3880_v7  ;;  %v3890_v15 = vsel %vm813_vm5, %v829_v9, %v830_v10  ;;  %v664_v10 = vld [vmem:[#allocation2 + $0xb8] sm:$0xff] }
 0x142   : > { %v3023_v18 = vpack.i.bf16 %v805_v0, %v3856_v52  ;;  %v3018_v22 = vpack.i.bf16 %v3830_v37, %v3880_v7  ;;  %v3033_v23 = vpack.i.bf16 %v3799_v11, %v3872_v3  ;;  %v1381_v37 = vld [vmem:[%s4953_s4 + $0xf8] sm:$0xff] }
 0x143   : > { %v584_v34 = vpop.f32.mrf.mxu2  ;;  %2959 = vrot.lane.b32.xlu2 %v2958_v31, %s4974_s19  ;;  %1451 = vmatpush.msra.mxu3 %v1381_v37  ;;  %v836_v37 = vrot.slane %v664_v10, 2 }
 0x144   : > { %637 = vst.msk [vmem:[#allocation2 + $0x98] sm:$0xff] %vm460_vm0, %v584_v34  ;;  %v1365_v34 = vld [vmem:[%s4953_s4 + $0x78] sm:$0xff] }
 0x145   : > { %1410 = vmatpush.msrb.mxu2 %v1365_v34 }
 0x147   : > { %1411 = vmatpush.msrb.mxu2 %v1364_v40  ;;  %v1354_v40 = vld [vmem:[%s4953_s4 + $0x20] sm:$0xff] }
 0x148   : > { %2979 = vrot.lane.b32.xlu0 %v2978_v38, %s4968_s28  ;;  %2964 = vrot.lane.b32.xlu1 %v2963_v39, %s4966_s18 }
 0x149   : > { %1412 = vmatpush.msrb.mxu2 %v1363_v43  ;;  %v4050_v43 = vpop.permute.xlu0 %2904 }
 0x14b   : > { %2969 = vrot.lane.b32.xlu2 %v2968_v41, %s4970_s16  ;;  %v587_v44 = vpop.f32.mrf.mxu2  ;;  %v3886_v12 = vld [vmem:[#allocation2 + $0x98] sm:$0xff]  ;;  %v1380_v41 = vld [vmem:[%s4953_s4 + $0xf0] sm:$0xff] }
 0x14c   : > { %638 = vst.msk [vmem:[#allocation2 + $0xb0] sm:$0xff] %vm460_vm0, %v587_v44  ;;  %v3038_v13 = vpack.i.bf16 %v805_v0, %v3886_v12  ;;  %v807_v17 = vrot.slane %v3886_v12, 6  ;;  %v710_v26 = vrot.slane %v3886_v12, 7  ;;  %v832_v27 = vrot.slane %v3886_v12, 2  ;;  %1452 = vmatpush.msra.mxu3 %v1380_v41  ;;  %v1379_v44 = vld [vmem:[%s4953_s4 + $0xe8] sm:$0xff]  ;;  %v1370_v41 = vld [vmem:[%s4953_s4 + $0xa0] sm:$0xff] }
 0x14d   : > { %v750_v31 = vrot.slane %v3886_v12, 1  ;;  %v1359_v0 = vld [vmem:[%s4953_s4 + $0x48] sm:$0xff] }
 0x14e   : > { %v808_v20 = vsel %vm787_vm1, %v806_v16, %v807_v17  ;;  %v3911_v32 = vsel %vm693_vm4, %v709_v25, %v710_v26  ;;  %v3922_v38 = vsel %vm813_vm5, %v832_v27, %v833_v28  ;;  %1453 = vmatpush.msra.mxu3 %v1379_v44  ;;  %v1373_v16 = vld [vmem:[%s4953_s4 + $0xb8] sm:$0xff]  ;;  %v1355_v25 = vld [vmem:[%s4953_s4 + $0x28] sm:$0xff] }
 0x14f   : > { %v3043_v21 = vpack.i.bf16 %v808_v20, %v3856_v52  ;;  %v3048_v33 = vpack.i.bf16 %v3890_v15, %v3911_v32  ;;  %v3928_v39 = vsel %vm734_vm3, %v750_v31, %v751_v29  ;;  %v3053_v49 = vpack.i.bf16 %v3852_v50, %v3911_v32  ;;  %v1371_v26 = vld [vmem:[%s4953_s4 + $0xa8] sm:$0xff]  ;;  %v1353_v44 = vld [vmem:[%s4953_s4 + $0x18] sm:$0xff] }
 0x150   : > { %2989 = vrot.lane.b32.xlu0 %v2988_v45, %s4964_s26  ;;  %2994 = vrot.lane.b32.xlu1 %v2993_v47, %s4974_s19  ;;  %v3063_v42 = vpack.i.bf16 %v3886_v12, %v3928_v39  ;;  %v662_v45 = vld [vmem:[#allocation2 + $0xa8] sm:$0xff]  ;;  %v1362_v47 = vld [vmem:[%s4953_s4 + $0x60] sm:$0xff] }
 0x151   : > { %1413 = vmatpush.msrb.mxu2 %v1362_v47  ;;  %1454 = vmatpush.msra.mxu3 %v1378_v48  ;;  %v712_v58 = vrot.slane %v662_v45, 7  ;;  %v809_v62 = vrot.slane %v662_v45, 6  ;;  %v1383_v29 = vld [vmem:[%s4953_s4 + $0x108] sm:$0xff]  ;;  %v1369_v45 = vld [vmem:[%s4953_s4 + $0x98] sm:$0xff]  ;;  %v1352_v48 = vld [vmem:[%s4953_s4 + $0x10] sm:$0xff] }
 0x153   : > { %1318 = vrot.lane.b32.xlu2 %v3852_v50, %s4970_s16  ;;  %v590_v51 = vpop.f32.mrf.mxu2  ;;  %v3954_v53 = vld [vmem:[#allocation2 + $0xb0] sm:$0xff] }
 0x154   : > { %639 = vst.msk [vmem:[#allocation2 + $0xc8] sm:$0xff] %vm460_vm0, %v590_v51  ;;  %v3058_v51 = vpack.i.bf16 %v808_v20, %v3886_v12  ;;  %v1360_v50 = vld [vmem:[%s4953_s4 + $0x50] sm:$0xff]  ;;  %v3073_v57 = vpack.i.bf16 %v808_v20, %v3954_v53  ;;  %v713_v60 = vrot.slane %v3954_v53, 7  ;;  %v810_v63 = vrot.slane %v3954_v53, 6 }
 0x155   : > { %v754_v20 = vrot.slane %v664_v10, 1  ;;  %v835_v34 = vrot.slane %v3954_v53, 2 }
 0x156   : > { %v3983_v2 = vsel %vm693_vm4, %v712_v58, %v713_v60  ;;  %v3993_v9 = vsel %vm787_vm1, %v809_v62, %v810_v63  ;;  %v667_v60 = vld [vmem:[#allocation2 + $0xd0] sm:$0xff]  ;;  %v1350_v62 = vld [vmem:[%s4953_s4] sm:$0xff] }
 0x157   : > { %v3078_v17 = vpack.i.bf16 %v3993_v9, %v3886_v12  ;;  %v3093_v31 = vpack.i.bf16 %v3993_v9, %v3954_v53  ;;  %v4061_v47 = vsel %vm813_vm5, %v835_v34, %v836_v37  ;;  %v694_v34 = vrot.slane %v3758_v35, 7 }
 0x158   : > { %2999 = vrot.lane.b32.xlu0 %v2998_v54, %s4966_s18  ;;  %3004 = vrot.lane.b32.xlu1 %v3003_v55, %s4970_s16  ;;  %v1361_v54 = vld [vmem:[%s4953_s4 + $0x58] sm:$0xff]  ;;  %v695_v37 = vrot.slane %v3626_v19, 7  ;;  %v2906_v35 = vunpack.i.l.bf16 %v4050_v43 }
 0x159   : > { %v1377_v55 = vld [vmem:[%s4953_s4 + $0xd8] sm:$0xff]  ;;  %1414 = vmatpush.msrb.mxu2 %v1361_v54 }
 0x15a   : > { %1455 = vmatpush.msra.mxu3 %v1377_v55  ;;  %v696_v19 = vsel %vm693_vm4, %v694_v34, %v695_v37  ;;  %v671_v34 = vld [vmem:[#allocation2 + $0xf0] sm:$0xff] }
 0x15b   : > { %2984 = vrot.lane.b32.xlu2 %v2983_v61, %s4972_s20  ;;  %v593_v59 = vpop.f32.mrf.mxu2  ;;  %v1376_v61 = vld [vmem:[%s4953_s4 + $0xd0] sm:$0xff]  ;;  %1415 = vmatpush.msrb.mxu2 %v1360_v50  ;;  %v4076_v55 = vld [vmem:[#allocation2 + $0xc8] sm:$0xff]  ;;  %v665_v50 = vld [vmem:[#allocation2 + $0xc0] sm:$0xff] }
 0x15c   : > { %640 = vst.msk [vmem:[#allocation2 + $0xe0] sm:$0xff] %vm460_vm0, %v593_v59  ;;  %1456 = vmatpush.msra.mxu3 %v1376_v61  ;;  %v1375_v59 = vld [vmem:[%s4953_s4 + $0xc8] sm:$0xff]  ;;  %v3108_v58 = vpack.i.bf16 %v3993_v9, %v4076_v55  ;;  %v838_v63 = vrot.slane %v665_v50, 6  ;;  %v4098_v9 = vpop.permute.xlu0 %2909 }
 0x15d   : > { %1416 = vmatpush.msrb.mxu2 %v1359_v0  ;;  %v1367_v61 = vld [vmem:[%s4953_s4 + $0x88] sm:$0xff]  ;;  %v839_v0 = vrot.slane %v4076_v55, 6 }
 0x15e   : > { %1457 = vmatpush.msra.mxu3 %v1375_v59  ;;  %v1366_v59 = vld [vmem:[%s4953_s4 + $0x80] sm:$0xff] }
 0x160   : > { %3029 = vrot.lane.b32.xlu0 %v3028_v4, %s4974_s19  ;;  %3009 = vrot.lane.b32.xlu1 %v3008_v5, %s4962_s30  ;;  %v1358_v4 = vld [vmem:[%s4953_s4 + $0x40] sm:$0xff]  ;;  %v3083_v5 = vpack.i.bf16 %v3922_v38, %v3983_v2 }
 0x161   : > { %1417 = vmatpush.msrb.mxu2 %v1358_v4  ;;  %v3088_v4 = vpack.i.bf16 %v3890_v15, %v3983_v2 }
 0x163   : > { %3014 = vrot.lane.b32.xlu2 %v3013_v8, %s4968_s28  ;;  %v3068_v8 = vpack.i.bf16 %v3856_v52, %v3928_v39  ;;  %1418 = vmatpush.msrb.mxu2 %v1357_v14  ;;  %v715_v14 = vrot.slane %v665_v50, 7 }
 0x168   : > { %3039 = vrot.lane.b32.xlu0 %v3038_v13, %s4970_s16  ;;  %1320 = vrot.lane.b32.xlu1 %v3890_v15, %s4970_s16  ;;  %v1374_v13 = vld [vmem:[%s4953_s4 + $0xc0] sm:$0xff]  ;;  %v1561_v15 = vld [vmem:[%s4954_s5 + $0x10] sm:$0xff] }
 0x169   : > { %1458 = vmatpush.msra.mxu3 %v1374_v13  ;;  %v840_v13 = vsel %vm787_vm1, %v838_v63, %v839_v0  ;;  %1600 = vmatpush.msrb.mxu1 %v1561_v15 }
 0x16a   : > { %v3128_v0 = vpack.i.bf16 %v840_v13, %v4076_v55 }
 0x16b   : > { %3024 = vrot.lane.b32.xlu2 %v3023_v18, %s4964_s26  ;;  %s4996_s26 = smov 32   ;;  %v753_v18 = vrot.slane %v3954_v53, 1  ;;  %1459 = vmatpush.msra.mxu3 %v1373_v16  ;;  %v716_v16 = vrot.slane %v4076_v55, 7 }
 0x16d   : > { %v4031_v28 = vsel %vm734_vm3, %v753_v18, %v754_v20  ;;  %v1560_v20 = vld [vmem:[%s4954_s5 + $0x8] sm:$0xff] }
 0x16e   : > { %1601 = vmatpush.msrb.mxu1 %v1560_v20 }
 0x170   : > { %3044 = vrot.lane.b32.xlu0 %v3043_v21, %s4962_s30  ;;  %3019 = vrot.lane.b32.xlu1 %v3018_v22, %s4972_s20  ;;  %v1385_v21 = vld [vmem:[%s4953_s4 + $0x118] sm:$0xff]  ;;  %v1356_v22 = vld [vmem:[%s4953_s4 + $0x30] sm:$0xff]  ;;  %s4111_s30 = scalar_lea.vmem %s4949_s0, %s2826_s23  ;;  %s2828_s20 = sshll.u32 %s3524_s25, 6 }
 0x171   : > { %1504 = vmatpush.msra.mxu0 %v1385_v21  ;;  %1419 = vmatpush.msrb.mxu2 %v1356_v22  ;;  %v3113_v22 = vpack.i.bf16 %v840_v13, %v3954_v53 }
 0x173   : > { %3034 = vrot.lane.b32.xlu2 %v3033_v23, %s4966_s18  ;;  %s4992_s18 = smov 48   ;;  %v1372_v23 = vld [vmem:[%s4953_s4 + $0xb0] sm:$0xff]  ;;  %1505 = vmatpush.msra.mxu0 %v1384_v24  ;;  %v4126_v24 = vld [vmem:[#allocation2 + $0xe0] sm:$0xff] }
 0x174   : > { %1460 = vmatpush.msra.mxu3 %v1372_v23  ;;  %1420 = vmatpush.msrb.mxu2 %v1355_v25  ;;  %v4124_v23 = vld [vmem:[#allocation2 + $0xd8] sm:$0xff]  ;;  %v1559_v25 = vld [vmem:[%s4954_s5] sm:$0xff] }
 0x175   : > { %1506 = vmatpush.msra.mxu0 %v1383_v29  ;;  %v842_v29 = vrot.slane %v4126_v24, 6  ;;  %1602 = vmatpush.msrb.mxu1 %v1559_v25 }
 0x176   : > { %1461 = vmatpush.msra.mxu3 %v1371_v26  ;;  %1421 = vmatpush.msrb.mxu2 %v1354_v40  ;;  %v841_v26 = vrot.slane %v4124_v23, 6 }
 0x178   : > { %1322 = vrot.lane.b32.xlu0 %v3922_v38, %s4970_s16  ;;  %3049 = vrot.lane.b32.xlu1 %v3048_v33, %s4968_s28  ;;  %s4994_s28 = smov 16   ;;  %v3098_v33 = vpack.i.bf16 %v3954_v53, %v4031_v28  ;;  %s4998_s16 = smov 80  }
 0x179   : > { %1462 = vmatpush.msra.mxu3 %v1370_v41  ;;  %1422 = vmatpush.msrb.mxu2 %v1353_v44  ;;  %v4148_v44 = vsel %vm787_vm1, %v841_v26, %v842_v29 }
 0x17a   : > { %v3148_v50 = vpack.i.bf16 %v4148_v44, %v4076_v55 }
 0x17b   : > { %3064 = vrot.lane.b32.xlu2 %v3063_v42, %s4974_s19  ;;  %v1382_v42 = vld [vmem:[%s4953_s4 + $0x100] sm:$0xff]  ;;  %1463 = vmatpush.msra.mxu3 %v1369_v45  ;;  %v844_v45 = vrot.slane %v4076_v55, 2 }
 0x17c   : > { %1507 = vmatpush.msra.mxu0 %v1382_v42  ;;  %1423 = vmatpush.msrb.mxu2 %v1352_v48  ;;  %v845_v48 = vrot.slane %v667_v60, 2 }
 0x180   : > { %3054 = vrot.lane.b32.xlu0 %v3053_v49, %s4992_s18  ;;  %3059 = vrot.lane.b32.xlu1 %v3058_v51, %s4993_s29  ;;  %v1368_v49 = vld [vmem:[%s4953_s4 + $0x90] sm:$0xff]  ;;  %v1351_v51 = vld [vmem:[%s4953_s4 + $0x8] sm:$0xff] }
 0x181   : > { %1464 = vmatpush.msra.mxu3 %v1368_v49  ;;  %1424 = vmatpush.msrb.mxu2 %v1351_v51  ;;  %v2907_v49 = vunpack.i.h.bf16 %v4050_v43 }
 0x183   : > { %3074 = vrot.lane.b32.xlu2 %v3073_v57, %s4994_s28  ;;  %v3103_v57 = vpack.i.bf16 %v3886_v12, %v4031_v28  ;;  %1465 = vmatpush.msra.mxu3 %v1367_v61  ;;  %v2912_v61 = vunpack.i.h.bf16 %v4098_v9  ;;  %v1262_v43 = vsel %vm460_vm0, %v3817_v30, %v2907_v49 }
 0x184   : > { %1425 = vmatpush.msrb.mxu2 %v1350_v62 }
 0x185   : > { %v3980_v1 = vpop.permute.xlu2 %2929  ;;  %1466 = vmatpush.msra.mxu3 %v1366_v59  ;;  %v1270_v15 = vsel %vm530_vm2, %v1262_v43, %v2912_v61 }
 0x186   : > { %v2932_v37 = vunpack.i.h.bf16 %v3980_v1 }
 0x188   : > { %3084 = vrot.lane.b32.xlu0 %v3083_v5, %s4995_s17  ;;  %3069 = vrot.lane.b32.xlu1 %v3068_v8, %s4996_s26  ;;  %v756_v5 = vrot.slane %v4076_v55, 1  ;;  %v757_v8 = vrot.slane %v667_v60, 1  ;;  %v2911_v60 = vunpack.i.l.bf16 %v4098_v9 }
 0x18a   : > { %v4116_v18 = vsel %vm734_vm3, %v756_v5, %v757_v8  ;;  %v4172_v5 = vld [vmem:[#allocation2 + $0xe8] sm:$0xff]  ;;  %v847_v8 = vrot.slane %v4126_v24, 2 }
 0x18b   : > { %3079 = vrot.lane.b32.xlu2 %v3078_v17, %s4997_s27  ;;  %v3133_v21 = vpack.i.bf16 %v4076_v55, %v4116_v18 }
 0x18d   : > { %v4028_v27 = vpop.permute.xlu2 %2934 }
 0x190   : > { %3094 = vrot.lane.b32.xlu0 %v3093_v31, %s4993_s29  ;;  %3099 = vrot.lane.b32.xlu1 %v3098_v33, %s4998_s16  ;;  %v4136_v31 = vsel %vm693_vm4, %v715_v14, %v716_v16  ;;  %v1551_v33 = vld [vmem:[%s4111_s30] sm:$0xff]  ;;  %v848_v16 = vrot.slane %v4172_v5, 2 }
 0x191   : > { %v3118_v40 = vpack.i.bf16 %v4061_v47, %v4136_v31  ;;  %2788 = vmatmul.msk.f32.vlgmr.msrb.gmra.mxu1 %vm1562_vm6, %v1551_v33  ;;  %v3123_v25 = vpack.i.bf16 %v3922_v38, %v4136_v31 }
 0x192   : > { %v849_v38 = vsel %vm813_vm5, %v847_v8, %v848_v16  ;;  %v770_v16 = vrot.slane %v671_v34, 7 }
 0x193   : > { %1324 = vrot.lane.b32.xlu2 %v4061_v47, %s4994_s28 }
 0x195   : > { %v4074_v54 = vpop.permute.xlu2 %2944 }
 0x198   : > { %3104 = vrot.lane.b32.xlu0 %v3103_v57, %s4996_s26  ;;  %3109 = vrot.lane.b32.xlu1 %v3108_v58, %s4994_s28  ;;  %v4159_v57 = vsel %vm813_vm5, %v844_v45, %v845_v48  ;;  %v1201_v58 = vsel %vm460_vm0, %v696_v19, %v2906_v35  ;;  %v852_v48 = vrot.slane %v671_v34, 6  ;;  %v2947_v35 = vunpack.i.h.bf16 %v4074_v54 }
 0x199   : > { %v1209_v30 = vsel %vm530_vm2, %v1201_v58, %v2911_v60  ;;  %v2946_v19 = vunpack.i.l.bf16 %v4074_v54  ;;  %v3163_v34 = vpack.i.bf16 %v4148_v44, %v4126_v24 }
 0x19a   : > { %v4100_v10 = vpop.permute.xlu1 %2914 }
 0x19b   : > { %3089 = vrot.lane.b32.xlu2 %v3088_v4, %s4992_s18 }
 0x19d   : > { %v4113_v17 = vpop.permute.xlu2 %2959 }
 0x1a0   : > { %3134 = vrot.lane.b32.xlu0 %v3133_v21, %s4998_s16  ;;  %3114 = vrot.lane.b32.xlu1 %v3113_v22, %s4997_s27  ;;  %v761_v21 = vrot.slane %v4124_v23, 7  ;;  %v4192_v23 = vld [vmem:[#allocation2 + $0xf8] sm:$0xff] }
 0x1a1   : > { %v853_v58 = vrot.slane %v4192_v23, 6 }
 0x1a2   : > { %v4143_v41 = vpop.permute.xlu0 %2939  ;;  %v2920_v42 = vpop.permute.xlu1 %2919 }
 0x1a3   : > { %3119 = vrot.lane.b32.xlu2 %v3118_v40, %s4995_s17  ;;  %v2922_v62 = vunpack.i.h.bf16 %v2920_v42  ;;  %v2921_v63 = vunpack.i.l.bf16 %v2920_v42  ;;  %v2931_v40 = vunpack.i.l.bf16 %v3980_v1  ;;  %v762_v42 = vrot.slane %v4126_v24, 7 }
 0x1a5   : > { %v4154_v51 = vpop.permute.xlu2 %2969  ;;  %v1278_v13 = vsel %vm1217_vm7, %v1270_v15, %v2922_v62  ;;  %v1218_v20 = vsel %vm1217_vm7, %v1209_v30, %v2921_v63  ;;  %v763_v61 = vsel %vm693_vm4, %v761_v21, %v762_v42  ;;  %v771_v30 = vrot.slane %v4192_v23, 7  ;;  %v674_v21 = vld [vmem:[#allocation2 + $0x108] sm:$0xff] }
 0x1a6   : > { %v3153_v8 = vpack.i.bf16 %v4159_v57, %v763_v61  ;;  %v1552_v42 = vld [vmem:[%s4111_s30 + $0x8] sm:$0xff] }
 0x1a7   : > { %2789 = vmatmul.msk.f32.gmra.mxu1 %vm1562_vm6, %v1552_v42 }
 0x1a8   : > { %3149 = vrot.lane.b32.xlu0 %v3148_v50, %s4997_s27  ;;  %1326 = vrot.lane.b32.xlu1 %v4159_v57, %s4994_s28 }
 0x1aa   : > { %v4170_v59 = vpop.permute.xlu0 %2949  ;;  %v2925_v4 = vpop.permute.xlu1 %2924 }
 0x1ab   : > { %v2927_v9 = vunpack.i.h.bf16 %v2925_v4  ;;  %v2926_v14 = vunpack.i.l.bf16 %v2925_v4  ;;  %3129 = vrot.lane.b32.xlu2 %v3128_v0, %s4993_s29 }
 0x1ad   : > { %v1319_v22 = vpop.permute.xlu2 %1318  ;;  %v1227_v26 = vsel %vm1226_vm8, %v1218_v20, %v2926_v14  ;;  %v1286_v29 = vsel %vm1226_vm8, %v1278_v13, %v2927_v9  ;;  %v3158_v9 = vpack.i.bf16 %v4061_v47, %v763_v61  ;;  %v854_v14 = vsel %vm787_vm1, %v852_v48, %v853_v58  ;;  %v4246_v48 = vld [vmem:[#allocation2 + $0x100] sm:$0xff] }
 0x1ae   : > { %v1342_v33 = vsel %vm460_vm0, %v3799_v11, %v1319_v22  ;;  %v3138_v11 = vpack.i.bf16 %v3954_v53, %v4116_v18  ;;  %v1236_v45 = vsel %vm1235_vm9, %v1227_v26, %v2931_v40  ;;  %v1294_v1 = vsel %vm1235_vm9, %v1286_v29, %v2932_v37  ;;  %v4227_v22 = vld [vmem:[#allocation2 + $0x110] sm:$0xff]  ;;  %v676_v40 = vld [vmem:[#allocation2 + $0x118] sm:$0xff] }
 0x1af   : > { %2780 = vmatmul.msk.f32.vlgmr.msra.gmra.mxu0 %vm530_vm2, %v1342_v33  ;;  %v1245_v62 = vsel %vm1244_vm10, %v1236_v45, %v2946_v19  ;;  %v1302_v63 = vsel %vm1244_vm10, %v1294_v1, %v2947_v35  ;;  %v3143_v15 = vpack.i.bf16 %v854_v14, %v4126_v24  ;;  %v766_v13 = vrot.slane %v4172_v5, 1 }
 0x1b0   : > { %1328 = vrot.lane.b32.xlu0 %v849_v38, %s4994_s28  ;;  %3124 = vrot.lane.b32.xlu1 %v3123_v25, %s4992_s18  ;;  %v765_v47 = vrot.slane %v4126_v24, 1  ;;  %v772_v25 = vsel %vm693_vm4, %v770_v16, %v771_v30  ;;  %v855_v29 = vrot.slane %v674_v21, 6  ;;  %v856_v33 = vrot.slane %v4227_v22, 6 }
 0x1b1   : > { %v3173_v5 = vpack.i.bf16 %v849_v38, %v772_v25  ;;  %v862_v1 = vrot.slane %v4227_v22, 2  ;;  %v863_v38 = vrot.slane %v676_v40, 2  ;;  %v860_v58 = vrot.slane %v4246_v48, 2  ;;  %v1553_v25 = vld [vmem:[%s4111_s30 + $0x10] sm:$0xff] }
 0x1b2   : > { %v2975_v49 = vpop.permute.xlu0 %2974  ;;  %v4203_v50 = vpop.permute.xlu1 %2954  ;;  %v4237_v37 = vsel %vm734_vm3, %v765_v47, %v766_v13  ;;  %v857_v45 = vsel %vm787_vm1, %v855_v29, %v856_v33  ;;  %v2952_v14 = vunpack.i.h.bf16 %v4170_v59  ;;  %v2937_v16 = vunpack.i.h.bf16 %v4028_v27  ;;  %2790 = vmatmul.msk.f32.gmra.mxu1 %vm1562_vm6, %v1553_v25 }
 0x1b3   : > { %v2977_v60 = vunpack.i.h.bf16 %v2975_v49  ;;  %v2976_v43 = vunpack.i.l.bf16 %v2975_v49  ;;  %3139 = vrot.lane.b32.xlu2 %v3138_v11, %s4996_s26  ;;  %v3168_v11 = vpack.i.bf16 %v4126_v24, %v4237_v37  ;;  %v3178_v19 = vpack.i.bf16 %v857_v45, %v4192_v23 }
 0x1b4   : > { %v859_v49 = vrot.slane %v4192_v23, 2  ;;  %v2936_v30 = vunpack.i.l.bf16 %v4028_v27  ;;  %v2956_v13 = vunpack.i.l.bf16 %v4203_v50 }
 0x1b5   : > { %v4210_v0 = vpop.permute.xlu2 %2984  ;;  %v1254_v54 = vsel %vm1253_vm11, %v1245_v62, %v2976_v43  ;;  %v1310_v4 = vsel %vm1253_vm11, %v1302_v63, %v2977_v60  ;;  %v864_v60 = vsel %vm813_vm5, %v862_v1, %v863_v38  ;;  %v2917_v43 = vunpack.i.h.bf16 %v4100_v10 }
 0x1b6   : > { %1426 = vmatmul.f32.vlgmr.msrb.gmra.mxu2 %v1254_v54  ;;  %1467 = vmatmul.f32.vlgmr.msra.gmra.mxu3 %v1310_v4  ;;  %v2916_v62 = vunpack.i.l.bf16 %v4100_v10  ;;  %v861_v63 = vsel %vm813_vm5, %v859_v49, %v860_v58  ;;  %v2951_v10 = vunpack.i.l.bf16 %v4170_v59  ;;  %v2942_v49 = vunpack.i.h.bf16 %v4143_v41 }
 0x1b7   : > { %v2941_v58 = vunpack.i.l.bf16 %v4143_v41 }
 0x1b8   : > { %3159 = vrot.lane.b32.xlu0 %v3158_v9, %s4992_s18  ;;  %3154 = vrot.lane.b32.xlu1 %v3153_v8, %s4995_s17  ;;  %v1263_v8 = vsel %vm460_vm0, %v3843_v46, %v2917_v43  ;;  %v1202_v9 = vsel %vm460_vm0, %v3777_v56, %v2916_v62 }
 0x1b9   : > { %v1210_v46 = vsel %vm530_vm2, %v1202_v9, %v2936_v30  ;;  %v1271_v56 = vsel %vm530_vm2, %v1263_v8, %v2937_v16  ;;  %v1554_v8 = vld [vmem:[%s4111_s30 + $0x18] sm:$0xff]  ;;  %v1264_v9 = vsel %vm460_vm0, %v3872_v3, %v2942_v49  ;;  %v1203_v41 = vsel %vm460_vm0, %v3795_v6, %v2941_v58 }
 0x1ba   : > { %v4222_v20 = vpop.permute.xlu0 %2979  ;;  %v4224_v57 = vpop.permute.xlu1 %2964  ;;  %v1219_v21 = vsel %vm1217_vm7, %v1210_v46, %v2951_v10  ;;  %v1279_v59 = vsel %vm1217_vm7, %v1271_v56, %v2952_v14  ;;  %2791 = vmatmul.msk.f32.gmra.mxu1 %vm1562_vm6, %v1554_v8  ;;  %v2986_v46 = vunpack.i.l.bf16 %v4210_v0 }
 0x1bb   : > { %3144 = vrot.lane.b32.xlu2 %v3143_v15, %s4997_s27  ;;  %v2957_v15 = vunpack.i.h.bf16 %v4203_v50  ;;  %v1228_v33 = vsel %vm1226_vm8, %v1219_v21, %v2956_v13  ;;  %v2982_v27 = vunpack.i.h.bf16 %v4222_v20  ;;  %v2962_v50 = vunpack.i.h.bf16 %v4113_v17 }
 0x1bc   : > { %v2967_v62 = vunpack.i.h.bf16 %v4224_v57  ;;  %v2987_v13 = vunpack.i.h.bf16 %v4210_v0  ;;  %v2972_v0 = vunpack.i.h.bf16 %v4154_v51 }
 0x1bd   : > { %v4231_v26 = vpop.permute.xlu2 %3014  ;;  %v1287_v29 = vsel %vm1226_vm8, %v1279_v59, %v2957_v15 }
 0x1be   : > { %v1295_v38 = vsel %vm1235_vm9, %v1287_v29, %v2962_v50  ;;  %v1272_v14 = vsel %vm530_vm2, %v1264_v9, %v2967_v62 }
 0x1bf   : > { %v1280_v56 = vsel %vm1217_vm7, %v1272_v14, %v2987_v13 }
 0x1c0   : > { %3174 = vrot.lane.b32.xlu0 %v3173_v5, %s4995_s17  ;;  %3164 = vrot.lane.b32.xlu1 %v3163_v34, %s4993_s29  ;;  %v2981_v5 = vunpack.i.l.bf16 %v4222_v20  ;;  %v2961_v34 = vunpack.i.l.bf16 %v4113_v17  ;;  %v1303_v20 = vsel %vm1244_vm10, %v1295_v38, %v2982_v27 }
 0x1c2   : > { %v4249_v44 = vpop.permute.xlu0 %2989  ;;  %v4251_v35 = vpop.permute.xlu1 %2994  ;;  %v1237_v1 = vsel %vm1235_vm9, %v1228_v33, %v2961_v34  ;;  %v3016_v34 = vunpack.i.l.bf16 %v4231_v26 }
 0x1c3   : > { %3169 = vrot.lane.b32.xlu2 %v3168_v11, %s4998_s16  ;;  %v2992_v16 = vunpack.i.h.bf16 %v4249_v44  ;;  %v2991_v30 = vunpack.i.l.bf16 %v4249_v44  ;;  %v2997_v21 = vunpack.i.h.bf16 %v4251_v35  ;;  %v2996_v44 = vunpack.i.l.bf16 %v4251_v35 }
 0x1c4   : > { %v3017_v35 = vunpack.i.h.bf16 %v4231_v26 }
 0x1c5   : > { %v4257_v61 = vpop.permute.xlu2 %3024  ;;  %v1288_v29 = vsel %vm1226_vm8, %v1280_v56, %v2992_v16 }
 0x1c6   : > { %v1296_v50 = vsel %vm1235_vm9, %v1288_v29, %v2997_v21  ;;  %v3026_v8 = vunpack.i.l.bf16 %v4257_v61 }
 0x1c7   : > { %v1304_v49 = vsel %vm1244_vm10, %v1296_v50, %v3017_v35  ;;  %v1555_v35 = vld [vmem:[%s4111_s30 + $0x20] sm:$0xff] }
 0x1c8   : > { %3179 = vrot.lane.b32.xlu1 %v3178_v19, %s4997_s27  ;;  %1332 = vrot.lane.b32.xlu0 %v864_v60, %s4994_s28  ;;  %v1246_v19 = vsel %vm1244_vm10, %v1237_v1, %v2981_v5 }
 0x1c9   : > { %2792 = vmatmul.msk.f32.gmra.mxu1 %vm1562_vm6, %v1555_v35 }
 0x1ca   : > { %v4265_v54 = vpop.permute.xlu0 %2999  ;;  %v4267_v4 = vpop.permute.xlu1 %3004 }
 0x1cb   : > { %1330 = vrot.lane.b32.xlu2 %v861_v63, %s4994_s28  ;;  %v2966_v63 = vunpack.i.l.bf16 %v4224_v57  ;;  %v3002_v33 = vunpack.i.h.bf16 %v4265_v54  ;;  %v3001_v27 = vunpack.i.l.bf16 %v4265_v54 }
 0x1cd   : > { %v4280_v47 = vpop.permute.xlu2 %3034  ;;  %v1211_v10 = vsel %vm530_vm2, %v1203_v41, %v2966_v63 }
 0x1ce   : > { %v1220_v6 = vsel %vm1217_vm7, %v1211_v10, %v2986_v46 }
 0x1cf   : > { %v1229_v25 = vsel %vm1226_vm8, %v1220_v6, %v2991_v30 }
 0x1d0   : > { %v1238_v5 = vsel %vm1235_vm9, %v1229_v25, %v2996_v44 }
 0x1d2   : > { %v4294_v40 = vpop.permute.xlu0 %3029  ;;  %v3010_v42 = vpop.permute.xlu1 %3009 }
 0x1d3   : > { %v3012_v11 = vunpack.i.h.bf16 %v3010_v42  ;;  %v3011_v45 = vunpack.i.l.bf16 %v3010_v42  ;;  %v3032_v14 = vunpack.i.h.bf16 %v4294_v40  ;;  %v3031_v10 = vunpack.i.l.bf16 %v4294_v40 }
 0x1d5   : > { %v4302_v60 = vpop.permute.xlu2 %3064  ;;  %v1255_v17 = vsel %vm1253_vm11, %v1246_v19, %v3011_v45  ;;  %v1311_v43 = vsel %vm1253_vm11, %v1303_v20, %v3012_v11  ;;  %v1247_v20 = vsel %vm1244_vm10, %v1238_v5, %v3016_v34 }
 0x1d6   : > { %1429 = vmatmul.f32.gmra.mxu2 %v1255_v17  ;;  %1470 = vmatmul.f32.gmra.mxu3 %v1311_v43 }
 0x1da   : > { %v4318_v57 = vpop.permute.xlu0 %3039  ;;  %v1321_v15 = vpop.permute.xlu1 %1320 }
 0x1db   : > { %v1343_v3 = vsel %vm460_vm0, %v3856_v52, %v1321_v15  ;;  %v2971_v52 = vunpack.i.l.bf16 %v4154_v51  ;;  %v1265_v51 = vsel %vm460_vm0, %v3928_v39, %v2972_v0 }
 0x1dc   : > { %2781 = vmatmul.msk.f32.gmra.mxu0 %vm530_vm2, %v1343_v3  ;;  %v1273_v26 = vsel %vm530_vm2, %v1265_v51, %v3002_v33 }
 0x1dd   : > { %v4329_v59 = vpop.permute.xlu2 %3074  ;;  %v1204_v54 = vsel %vm460_vm0, %v3826_v36, %v2971_v52  ;;  %v3027_v36 = vunpack.i.h.bf16 %v4257_v61 }
 0x1de   : > { %v1212_v58 = vsel %vm530_vm2, %v1204_v54, %v3001_v27 }
 0x1e2   : > { %v3045_v42 = vpop.permute.xlu0 %3044  ;;  %v3020_v11 = vpop.permute.xlu1 %3019 }
 0x1e3   : > { %v3047_v45 = vunpack.i.h.bf16 %v3045_v42  ;;  %v3046_v1 = vunpack.i.l.bf16 %v3045_v42  ;;  %v3022_v38 = vunpack.i.h.bf16 %v3020_v11  ;;  %v3021_v19 = vunpack.i.l.bf16 %v3020_v11 }
 0x1e5   : > { %v3080_v17 = vpop.permute.xlu2 %3079  ;;  %v1256_v43 = vsel %vm1253_vm11, %v1247_v20, %v3046_v1  ;;  %v1312_v62 = vsel %vm1253_vm11, %v1304_v49, %v3047_v45  ;;  %v1281_v63 = vsel %vm1217_vm7, %v1273_v26, %v3022_v38  ;;  %v1221_v39 = vsel %vm1217_vm7, %v1212_v58, %v3021_v19  ;;  %v1556_v45 = vld [vmem:[%s4111_s30 + $0x28] sm:$0xff] }
 0x1e6   : > { %1432 = vmatmul.f32.gmra.mxu2 %v1256_v43  ;;  %1473 = vmatmul.f32.gmra.mxu3 %v1312_v62  ;;  %v1230_v9 = vsel %vm1226_vm8, %v1221_v39, %v3026_v8  ;;  %v1289_v41 = vsel %vm1226_vm8, %v1281_v63, %v3027_v36  ;;  %v3082_v3 = vunpack.i.h.bf16 %v3080_v17  ;;  %v3081_v6 = vunpack.i.l.bf16 %v3080_v17 }
 0x1e7   : > { %v1239_v61 = vsel %vm1235_vm9, %v1230_v9, %v3031_v10  ;;  %v1297_v56 = vsel %vm1235_vm9, %v1289_v41, %v3032_v14  ;;  %v3007_v1 = vunpack.i.h.bf16 %v4267_v4  ;;  %v3006_v38 = vunpack.i.l.bf16 %v4267_v4  ;;  %2793 = vmatmul.msk.f32.gmra.mxu1 %vm1562_vm6, %v1556_v45 }
 0x1e8   : > { %v3036_v19 = vunpack.i.l.bf16 %v4280_v47  ;;  %v3042_v4 = vunpack.i.h.bf16 %v4318_v57  ;;  %v3041_v17 = vunpack.i.l.bf16 %v4318_v57 }
 0x1e9   : > { %v1266_v58 = vsel %vm460_vm0, %v4031_v28, %v3007_v1  ;;  %v1205_v26 = vsel %vm460_vm0, %v3880_v7, %v3006_v38 }
 0x1ea   : > { %v1323_v16 = vpop.permute.xlu0 %1322  ;;  %v3050_v30 = vpop.permute.xlu1 %3049  ;;  %v1213_v43 = vsel %vm530_vm2, %v1205_v26, %v3036_v19  ;;  %v1267_v7 = vsel %vm460_vm0, %v4116_v18, %v3042_v4  ;;  %v1206_v57 = vsel %vm460_vm0, %v3911_v32, %v3041_v17 }
 0x1eb   : > { %v3052_v15 = vunpack.i.h.bf16 %v3050_v30  ;;  %v3051_v13 = vunpack.i.l.bf16 %v3050_v30  ;;  %v1344_v46 = vsel %vm460_vm0, %v3886_v12, %v1323_v16  ;;  %v3067_v30 = vunpack.i.h.bf16 %v4302_v60 }
 0x1ec   : > { %2782 = vmatmul.msk.f32.gmra.mxu0 %vm530_vm2, %v1344_v46 }
 0x1ed   : > { %v1325_v21 = vpop.permute.xlu2 %1324  ;;  %v1248_v44 = vsel %vm1244_vm10, %v1239_v61, %v3051_v13  ;;  %v1305_v40 = vsel %vm1244_vm10, %v1297_v56, %v3052_v15  ;;  %v3066_v15 = vunpack.i.l.bf16 %v4302_v60 }
 0x1ee   : > { %v1257_v25 = vsel %vm1253_vm11, %v1248_v44, %v3081_v6  ;;  %v1313_v29 = vsel %vm1253_vm11, %v1305_v40, %v3082_v3  ;;  %v1345_v52 = vsel %vm460_vm0, %v3954_v53, %v1325_v21  ;;  %v3037_v53 = vunpack.i.h.bf16 %v4280_v47 }
 0x1ef   : > { %1435 = vmatmul.f32.gmra.mxu2 %v1257_v25  ;;  %1476 = vmatmul.f32.gmra.mxu3 %v1313_v29 }
 0x1f0   : > { %v1274_v47 = vsel %vm530_vm2, %v1266_v58, %v3037_v53 }
 0x1f2   : > { %v3055_v12 = vpop.permute.xlu0 %3054  ;;  %v3060_v0 = vpop.permute.xlu1 %3059 }
 0x1f3   : > { %v3057_v51 = vunpack.i.h.bf16 %v3055_v12  ;;  %v3056_v54 = vunpack.i.l.bf16 %v3055_v12  ;;  %v3062_v62 = vunpack.i.h.bf16 %v3060_v0  ;;  %v3061_v63 = vunpack.i.l.bf16 %v3060_v0 }
 0x1f4   : > { %2783 = vmatmul.msk.f32.gmra.mxu0 %vm530_vm2, %v1345_v52 }
 0x1f5   : > { %v3090_v33 = vpop.permute.xlu2 %3089  ;;  %v1222_v39 = vsel %vm1217_vm7, %v1213_v43, %v3056_v54  ;;  %v1282_v36 = vsel %vm1217_vm7, %v1274_v47, %v3057_v51  ;;  %v1557_v54 = vld [vmem:[%s4111_s30 + $0x30] sm:$0xff] }
 0x1f6   : > { %v1231_v41 = vsel %vm1226_vm8, %v1222_v39, %v3061_v63  ;;  %v1290_v14 = vsel %vm1226_vm8, %v1282_v36, %v3062_v62  ;;  %v3092_v3 = vunpack.i.h.bf16 %v3090_v33  ;;  %v3091_v6 = vunpack.i.l.bf16 %v3090_v33  ;;  %2794 = vmatmul.msk.f32.gmra.mxu1 %vm1562_vm6, %v1557_v54 }
 0x1f7   : > { %v1240_v40 = vsel %vm1235_vm9, %v1231_v41, %v3066_v15  ;;  %v1298_v25 = vsel %vm1235_vm9, %v1290_v14, %v3067_v30  ;;  %v3077_v63 = vunpack.i.h.bf16 %v4329_v59 }
 0x1f9   : > { %v1268_v14 = vsel %vm460_vm0, %v4237_v37, %v3077_v63 }
 0x1fa   : > { %v3085_v27 = vpop.permute.xlu0 %3084  ;;  %v3070_v5 = vpop.permute.xlu1 %3069 }
 0x1fb   : > { %v3072_v8 = vunpack.i.h.bf16 %v3070_v5  ;;  %v3071_v9 = vunpack.i.l.bf16 %v3070_v5  ;;  %v3087_v10 = vunpack.i.h.bf16 %v3085_v27  ;;  %v3086_v16 = vunpack.i.l.bf16 %v3085_v27 }
 0x1fd   : > { %v4371_v50 = vpop.permute.xlu2 %3119  ;;  %v1275_v13 = vsel %vm530_vm2, %v1267_v7, %v3072_v8  ;;  %v1214_v46 = vsel %vm530_vm2, %v1206_v57, %v3071_v9  ;;  %v1249_v12 = vsel %vm1244_vm10, %v1240_v40, %v3086_v16  ;;  %v1306_v0 = vsel %vm1244_vm10, %v1298_v25, %v3087_v10 }
 0x1fe   : > { %v1223_v29 = vsel %vm1217_vm7, %v1214_v46, %v3091_v6  ;;  %v1283_v60 = vsel %vm1217_vm7, %v1275_v13, %v3092_v3  ;;  %v3122_v53 = vunpack.i.h.bf16 %v4371_v50  ;;  %v1558_v46 = vld [vmem:[%s4111_s30 + $0x38] sm:$0xff] }
 0x1ff   : > { %2795 = vmatmul.msk.f32.gmra.mxu1 %vm1562_vm6, %v1558_v46 }
 0x202   : > { %v3095_v34 = vpop.permute.xlu0 %3094  ;;  %v3100_v42 = vpop.permute.xlu1 %3099 }
 0x203   : > { %v3097_v18 = vunpack.i.h.bf16 %v3095_v34  ;;  %v3096_v61 = vunpack.i.l.bf16 %v3095_v34  ;;  %v3102_v52 = vunpack.i.h.bf16 %v3100_v42  ;;  %v3101_v33 = vunpack.i.l.bf16 %v3100_v42 }
 0x204   : > { %v3121_v42 = vunpack.i.l.bf16 %v4371_v50 }
 0x205   : > { %v4375_v11 = vpop.permute.xlu2 %3129  ;;  %v1232_v34 = vsel %vm1226_vm8, %v1223_v29, %v3096_v61  ;;  %v1291_v45 = vsel %vm1226_vm8, %v1283_v60, %v3097_v18 }
 0x206   : > { %v1241_v1 = vsel %vm1235_vm9, %v1232_v34, %v3101_v33  ;;  %v1299_v38 = vsel %vm1235_vm9, %v1291_v45, %v3102_v52  ;;  %v3132_v13 = vunpack.i.h.bf16 %v4375_v11 }
 0x207   : > { %v1250_v17 = vsel %vm1244_vm10, %v1241_v1, %v3121_v42  ;;  %v1307_v43 = vsel %vm1244_vm10, %v1299_v38, %v3122_v53  ;;  %v449_v53 = vld [vmem:[%s4957_s8] sm:$0xff] }
 0x20a   : > { %v4383_v20 = vpop.permute.xlu0 %3104  ;;  %v4385_v49 = vpop.permute.xlu1 %3109 }
 0x20b   : > { %v3107_v39 = vunpack.i.h.bf16 %v4383_v20  ;;  %v3106_v36 = vunpack.i.l.bf16 %v4383_v20  ;;  %v3112_v52 = vunpack.i.h.bf16 %v4385_v49  ;;  %v3111_v33 = vunpack.i.l.bf16 %v4385_v49 }
 0x20d   : > { %v4397_v28 = vpop.permute.xlu2 %3139  ;;  %v1276_v20 = vsel %vm530_vm2, %v1268_v14, %v3107_v39  ;;  %v1208_v49 = vsel %vm460_vm0, %v4136_v31, %v3111_v33  ;;  %v4495_v39 = vperm.slane %v449_v53, 0 }
 0x212   : > { %v4409_v56 = vpop.permute.xlu0 %3134  ;;  %v3115_v32 = vpop.permute.xlu1 %3114 }
 0x213   : > { %v3117_v21 = vunpack.i.h.bf16 %v3115_v32  ;;  %v3116_v44 = vunpack.i.l.bf16 %v3115_v32  ;;  %v3137_v6 = vunpack.i.h.bf16 %v4409_v56  ;;  %v3136_v18 = vunpack.i.l.bf16 %v4409_v56 }
 0x215   : > { %v4417_v27 = vpop.permute.xlu2 %3144  ;;  %v1258_v5 = vsel %vm1253_vm11, %v1249_v12, %v3116_v44  ;;  %v1314_v35 = vsel %vm1253_vm11, %v1306_v0, %v3117_v21  ;;  %v775_v21 = vrot.slane %v4246_v48, 1 }
 0x216   : > { %1438 = vmatmul.f32.gmra.mxu2 %v1258_v5  ;;  %1479 = vmatmul.f32.gmra.mxu3 %v1314_v35  ;;  %v3147_v25 = vunpack.i.h.bf16 %v4417_v27  ;;  %v3146_v29 = vunpack.i.l.bf16 %v4417_v27  ;;  %v3142_v5 = vunpack.i.h.bf16 %v4397_v28  ;;  %v3141_v35 = vunpack.i.l.bf16 %v4397_v28 }
 0x218   : > { %v1216_v54 = vsel %vm530_vm2, %v1208_v49, %v3141_v35  ;;  %v1723_v49 = vld [vmem:[#allocation3 + $0x28] sm:$0xff] }
 0x21a   : > { %v3150_v19 = vpop.permute.xlu0 %3149  ;;  %v1327_v51 = vpop.permute.xlu1 %1326 }
 0x21b   : > { %v3152_v58 = vunpack.i.h.bf16 %v3150_v19  ;;  %v3151_v26 = vunpack.i.l.bf16 %v3150_v19  ;;  %v1346_v4 = vsel %vm460_vm0, %v4076_v55, %v1327_v51  ;;  %v3076_v55 = vunpack.i.l.bf16 %v4329_v59 }
 0x21c   : > { %2784 = vmatmul.msk.f32.gmra.mxu0 %vm530_vm2, %v1346_v4  ;;  %v4489_v4 = vperm.slane %v449_v53, 2 }
 0x21d   : > { %v1259_v47 = vsel %vm1253_vm11, %v1250_v17, %v3151_v26  ;;  %v1315_v50 = vsel %vm1253_vm11, %v1307_v43, %v3152_v58  ;;  %v4436_v62 = vpop.permute.xlu2 %3169  ;;  %v1207_v10 = vsel %vm460_vm0, %v3983_v2, %v3076_v55 }
 0x21e   : > { %1441 = vmatmul.f32.gmra.mxu2 %v1259_v47  ;;  %1482 = vmatmul.f32.gmra.mxu3 %v1315_v50  ;;  %v1215_v59 = vsel %vm530_vm2, %v1207_v10, %v3106_v36  ;;  %v1604_v47 = vpop.f32.mrf.mxu1  ;;  %v3172_v50 = vunpack.i.h.bf16 %v4436_v62  ;;  %v3171_v31 = vunpack.i.l.bf16 %v4436_v62  ;;  %v4500_v10 = vperm.slane %v449_v53, 3 }
 0x21f   : > { %v1629_v36 = vmul.f32 %v4489_v4, %v1604_v47 }
 0x222   : > { %v1329_v8 = vpop.permute.xlu0 %1328  ;;  %v3125_v9 = vpop.permute.xlu1 %3124 }
 0x223   : > { %v3127_v7 = vunpack.i.h.bf16 %v3125_v9  ;;  %v3126_v57 = vunpack.i.l.bf16 %v3125_v9  ;;  %v1347_v41 = vsel %vm460_vm0, %v4126_v24, %v1329_v8  ;;  %v3131_v24 = vunpack.i.l.bf16 %v4375_v11 }
 0x224   : > { %2785 = vmatmul.msk.f32.gmra.mxu0 %vm530_vm2, %v1347_v41  ;;  %v774_v11 = vrot.slane %v4192_v23, 1 }
 0x225   : > { %v1284_v16 = vsel %vm1217_vm7, %v1276_v20, %v3127_v7  ;;  %v1224_v30 = vsel %vm1217_vm7, %v1215_v59, %v3126_v57  ;;  %v1331_v15 = vpop.permute.xlu2 %1330 }
 0x226   : > { %v1233_v2 = vsel %vm1226_vm8, %v1224_v30, %v3131_v24  ;;  %v1292_v37 = vsel %vm1226_vm8, %v1284_v16, %v3132_v13  ;;  %v1348_v3 = vsel %vm460_vm0, %v4192_v23, %v1331_v15  ;;  %v776_v27 = vsel %vm734_vm3, %v774_v11, %v775_v21  ;;  %v2087_v11 = vld [vmem:[%s4955_s6 + $0x88] sm:$0xff] }
 0x227   : > { %v1242_v60 = vsel %vm1235_vm9, %v1233_v2, %v3136_v18  ;;  %v1300_v12 = vsel %vm1235_vm9, %v1292_v37, %v3137_v6  ;;  %v1269_v42 = vsel %vm460_vm0, %v776_v27, %v3112_v52  ;;  %v4504_v13 = vperm.slane %v449_v53, 1  ;;  %2159 = vmatpush.msrb.mxu3 %v2087_v11 }
 0x228   : > { %v1277_v58 = vsel %vm530_vm2, %v1269_v42, %v3142_v5  ;;  %v1638_v6 = vadd.f32 %v4500_v10, %v1629_v36  ;;  %v4514_v18 = vperm.slane %v449_v53, 4  ;;  %v1726_v42 = vld [vmem:[#allocation3 + $0x40] sm:$0xff] }
 0x22a   : > { %v3160_v61 = vpop.permute.xlu0 %3159  ;;  %v3155_v32 = vpop.permute.xlu1 %3154 }
 0x22b   : > { %v3157_v44 = vunpack.i.h.bf16 %v3155_v32  ;;  %v3156_v40 = vunpack.i.l.bf16 %v3155_v32  ;;  %v3162_v34 = vunpack.i.h.bf16 %v3160_v61  ;;  %v3161_v45 = vunpack.i.l.bf16 %v3160_v61 }
 0x22c   : > { %2786 = vmatmul.msk.f32.gmra.mxu0 %vm530_vm2, %v1348_v3  ;;  %v1509_v20 = vpop.f32.mrf.mxu0 }
 0x22d   : > { %v1251_v56 = vsel %vm1244_vm10, %v1242_v60, %v3156_v40  ;;  %v1308_v0 = vsel %vm1244_vm10, %v1300_v12, %v3157_v44  ;;  %v1225_v28 = vsel %vm1217_vm7, %v1216_v54, %v3161_v45  ;;  %v1285_v26 = vsel %vm1217_vm7, %v1277_v58, %v3162_v34  ;;  %v2086_v44 = vld [vmem:[%s4955_s6 + $0x80] sm:$0xff]  ;;  %v1607_v40 = vpop.f32.mrf.mxu1 }
 0x22e   : > { %v1260_v48 = vsel %vm1253_vm11, %v1251_v56, %v3146_v29  ;;  %v1316_v23 = vsel %vm1253_vm11, %v1308_v0, %v3147_v25  ;;  %2160 = vmatpush.msrb.mxu3 %v2086_v44  ;;  %v1630_v12 = vmul.f32 %v4489_v4, %v1607_v40  ;;  %v1811_v54 = vrot.slane %v1726_v42, 1 }
 0x22f   : > { %1444 = vmatmul.f32.gmra.mxu2 %v1260_v48  ;;  %1485 = vmatmul.f32.gmra.mxu3 %v1316_v23 }
 0x230   : > { %v1639_v23 = vadd.f32 %v4500_v10, %v1630_v12 }
 0x232   : > { %v3175_v1 = vpop.permute.xlu0 %3174  ;;  %v3165_v38 = vpop.permute.xlu1 %3164 }
 0x233   : > { %v3167_v19 = vunpack.i.h.bf16 %v3165_v38  ;;  %v3166_v51 = vunpack.i.l.bf16 %v3165_v38  ;;  %v3177_v7 = vunpack.i.h.bf16 %v3175_v1  ;;  %v3176_v57 = vunpack.i.l.bf16 %v3175_v1 }
 0x235   : > { %v1234_v17 = vsel %vm1226_vm8, %v1225_v28, %v3166_v51  ;;  %v1293_v43 = vsel %vm1226_vm8, %v1285_v26, %v3167_v19  ;;  %v1610_v35 = vpop.f32.mrf.mxu1  ;;  %v1808_v28 = vrot.slane %v1723_v49, 1 }
 0x236   : > { %v1243_v8 = vsel %vm1235_vm9, %v1234_v17, %v3171_v31  ;;  %v1301_v9 = vsel %vm1235_vm9, %v1293_v43, %v3172_v50  ;;  %v1631_v38 = vmul.f32 %v4489_v4, %v1610_v35 }
 0x237   : > { %v1252_v24 = vsel %vm1244_vm10, %v1243_v8, %v3176_v57  ;;  %v1309_v46 = vsel %vm1244_vm10, %v1301_v9, %v3177_v7 }
 0x238   : > { %v1640_v17 = vadd.f32 %v4500_v10, %v1631_v38 }
 0x239   : > { %v1427_v63 = vpop.f32.mrf.mxu2  ;;  %v1468_v55 = vpop.f32.mrf.mxu3 }
 0x23a   : > { %v1469_v41 = vadd.f32 %v1468_v55, %v1427_v63  ;;  %v3180_v14 = vpop.permute.xlu1 %3179  ;;  %v1333_v59 = vpop.permute.xlu0 %1332 }
 0x23b   : > { %v3182_v16 = vunpack.i.h.bf16 %v3180_v14  ;;  %v3181_v62 = vunpack.i.l.bf16 %v3180_v14  ;;  %v1349_v30 = vsel %vm460_vm0, %v4227_v22, %v1333_v59 }
 0x23c   : > { %v1510_v15 = vadd.f32 %v1509_v20, %v1469_v41  ;;  %2787 = vmatmul.msk.f32.gmra.mxu0 %vm530_vm2, %v1349_v30 }
 0x23d   : > { %v1261_v2 = vsel %vm1253_vm11, %v1252_v24, %v3181_v62  ;;  %v1317_v37 = vsel %vm1253_vm11, %v1309_v46, %v3182_v16  ;;  %v1613_v36 = vpop.f32.mrf.mxu1  ;;  %v1729_v46 = vld [vmem:[#allocation3 + $0x58] sm:$0xff] }
 0x23e   : > { %v1534_v3 = vmul.f32 %v4495_v39, %v1510_v15  ;;  %1447 = vmatmul.f32.gmra.mxu2 %v1261_v2  ;;  %1488 = vmatmul.f32.gmra.mxu3 %v1317_v37  ;;  %v1632_v59 = vmul.f32 %v4489_v4, %v1613_v36  ;;  %v1724_v2 = vld [vmem:[#allocation3 + $0x30] sm:$0xff]  ;;  %v1727_v37 = vld [vmem:[#allocation3 + $0x48] sm:$0xff] }
 0x240   : > { %v1543_v22 = vadd.f32 %v4504_v13, %v1534_v3  ;;  %v1641_v15 = vadd.f32 %v4500_v10, %v1632_v59 }
 0x242   : > { %v1646_v61 = vadd.f32 %v1638_v6, %v1543_v22  ;;  %v1814_v6 = vrot.slane %v1729_v46, 1  ;;  %v1770_v22 = vrot.slane %v1724_v2, 7  ;;  %v1733_v46 = vld [vmem:[#allocation3 + $0x78] sm:$0xff] }
 0x244   : > { %vm1654_vm12 = vcmp.ge.f32.partialorder %v1646_v61, 0.0  ;;  %v1663_v32 = vmul.f32 %v4514_v18, %v1646_v61 }
 0x246   : > { %v1671_v21 = vsel %vm1654_vm12, %v1646_v61, %v1663_v32  ;;  %v1773_v32 = vrot.slane %v1727_v37, 7 }
 0x247   : > { %1710 = vst.msk [vmem:[#allocation3 + $0x20] sm:$0xff] %vm460_vm0, %v1671_v21 }
 0x24e   : > { %v4531_v53 = vld [vmem:[#allocation3 + $0x20] sm:$0xff] }
 0x24f   : > { %v1807_v58 = vrot.slane %v4531_v53, 1 }
 0x251   : > { %v4545_v55 = vsel %vm734_vm3, %v1807_v58, %v1808_v28 }
 0x259   : > { %v1430_v25 = vpop.f32.mrf.mxu2  ;;  %v1471_v29 = vpop.f32.mrf.mxu3 }
 0x25a   : > { %v1472_v60 = vadd.f32 %v1471_v29, %v1430_v25  ;;  %v1512_v56 = vpop.f32.mrf.mxu0 }
 0x25c   : > { %v1513_v0 = vadd.f32 %v1512_v56, %v1472_v60 }
 0x25e   : > { %v1535_v48 = vmul.f32 %v4495_v39, %v1513_v0 }
 0x260   : > { %v1544_v52 = vadd.f32 %v4504_v13, %v1535_v48 }
 0x262   : > { %v1647_v33 = vadd.f32 %v1639_v23, %v1544_v52  ;;  %v1732_v23 = vld [vmem:[#allocation3 + $0x70] sm:$0xff]  ;;  %v1730_v52 = vld [vmem:[#allocation3 + $0x60] sm:$0xff] }
 0x264   : > { %vm1655_vm13 = vcmp.ge.f32.partialorder %v1647_v33, 0.0  ;;  %v1664_v27 = vmul.f32 %v4514_v18, %v1647_v33 }
 0x266   : > { %v1672_v5 = vsel %vm1655_vm13, %v1647_v33, %v1664_v27  ;;  %v1817_v33 = vrot.slane %v1732_v23, 1  ;;  %v1776_v27 = vrot.slane %v1730_v52, 7  ;;  %v1738_v23 = vld [vmem:[#allocation3 + $0xa0] sm:$0xff] }
 0x267   : > { %1711 = vst.msk [vmem:[#allocation3 + $0x38] sm:$0xff] %vm460_vm0, %v1672_v5 }
 0x269   : > { %v1433_v34 = vpop.f32.mrf.mxu2  ;;  %v1474_v45 = vpop.f32.mrf.mxu3 }
 0x26a   : > { %v1475_v1 = vadd.f32 %v1474_v45, %v1433_v34  ;;  %v1515_v19 = vpop.f32.mrf.mxu0 }
 0x26c   : > { %v1516_v51 = vadd.f32 %v1515_v19, %v1475_v1  ;;  %v1616_v19 = vpop.f32.mrf.mxu1 }
 0x26e   : > { %v1536_v26 = vmul.f32 %v4495_v39, %v1516_v51  ;;  %v4536_v43 = vld [vmem:[#allocation3 + $0x38] sm:$0xff] }
 0x26f   : > { %v3183_v47 = vpack.i.bf16 %v4536_v43, %v4531_v53  ;;  %v1810_v50 = vrot.slane %v4536_v43, 1  ;;  %v1771_v61 = vrot.slane %v4536_v43, 7 }
 0x270   : > { %v1545_v31 = vadd.f32 %v4504_v13, %v1536_v26  ;;  %v1633_v26 = vmul.f32 %v4489_v4, %v1616_v19 }
 0x271   : > { %3184 = vrot.lane.b32.xlu1 %v3183_v47, %s4994_s28  ;;  %v1812_v63 = vsel %vm734_vm3, %v1810_v50, %v1811_v54  ;;  %v4563_v12 = vsel %vm693_vm4, %v1770_v22, %v1771_v61 }
 0x272   : > { %v1648_v8 = vadd.f32 %v1640_v17, %v1545_v31  ;;  %v1436_v9 = vpop.f32.mrf.mxu2  ;;  %2796 = vmatmul.msk.f32.vlgmr.msrb.gmra.mxu3 %vm460_vm0, %v1812_v63  ;;  %v3188_v7 = vpack.i.bf16 %v1812_v63, %v4545_v55  ;;  %v1477_v57 = vpop.f32.mrf.mxu3  ;;  %v1642_v50 = vadd.f32 %v4500_v10, %v1633_v26 }
 0x273   : > { %v1478_v14 = vadd.f32 %v1477_v57, %v1436_v9  ;;  %v1518_v20 = vpop.f32.mrf.mxu0 }
 0x274   : > { %vm1656_vm14 = vcmp.ge.f32.partialorder %v1648_v8, 0.0  ;;  %v1665_v41 = vmul.f32 %v4514_v18, %v1648_v8  ;;  %3189 = vrot.lane.b32.xlu2 %v3188_v7, %s4996_s26  ;;  %v1619_v31 = vpop.f32.mrf.mxu1 }
 0x275   : > { %v1519_v62 = vadd.f32 %v1518_v20, %v1478_v14  ;;  %v1634_v57 = vmul.f32 %v4489_v4, %v1619_v31 }
 0x276   : > { %v1673_v16 = vsel %vm1656_vm14, %v1648_v8, %v1665_v41  ;;  %vm2384_vm14 = vcmask 1042434  }
 0x277   : > { %1712 = vst.msk [vmem:[#allocation3 + $0x50] sm:$0xff] %vm460_vm0, %v1673_v16  ;;  %v1537_v30 = vmul.f32 %v4495_v39, %v1519_v62  ;;  %v1643_v62 = vadd.f32 %v4500_v10, %v1634_v57 }
 0x279   : > { %v1546_v24 = vadd.f32 %v4504_v13, %v1537_v30 }
 0x27b   : > { %v1649_v3 = vadd.f32 %v1641_v15, %v1546_v24  ;;  %v1735_v24 = vld [vmem:[#allocation3 + $0x88] sm:$0xff] }
 0x27c   : > { %v1820_v37 = vrot.slane %v1735_v24, 1 }
 0x27d   : > { %vm1657_vm15 = vcmp.ge.f32.partialorder %v1649_v3, 0.0  ;;  %v1666_v21 = vmul.f32 %v4514_v18, %v1649_v3 }
 0x27e   : > { %v1728_v11 = vld [vmem:[#allocation3 + $0x50] sm:$0xff] }
 0x27f   : > { %v3193_v44 = vpack.i.bf16 %v1728_v11, %v4536_v43  ;;  %v1813_v40 = vrot.slane %v1728_v11, 1  ;;  %v1774_v25 = vrot.slane %v1728_v11, 7  ;;  %v1674_v29 = vsel %vm1657_vm15, %v1649_v3, %v1666_v21 }
 0x280   : > { %1713 = vst.msk [vmem:[#allocation3 + $0x68] sm:$0xff] %vm460_vm0, %v1674_v29  ;;  %v1779_v3 = vrot.slane %v1733_v46, 7  ;;  %vm2386_vm15 = vcmask 1043459  }
 0x281   : > { %3194 = vrot.lane.b32.xlu1 %v3193_v44, %s4993_s29  ;;  %v1815_v60 = vsel %vm734_vm3, %v1813_v40, %v1814_v6  ;;  %v4566_v56 = vsel %vm693_vm4, %v1773_v32, %v1774_v25 }
 0x282   : > { %2797 = vmatmul.msk.f32.gmra.mxu3 %vm460_vm0, %v1815_v60  ;;  %v3203_v0 = vpack.i.bf16 %v1815_v60, %v1812_v63  ;;  %v3198_v48 = vpack.i.bf16 %v4566_v56, %v4563_v12 }
 0x284   : > { %3204 = vrot.lane.b32.xlu2 %v3203_v0, %s4998_s16  ;;  %3199 = vrot.lane.b32.xlu0 %v3198_v48, %s4992_s18 }
 0x287   : > { %v1731_v5 = vld [vmem:[#allocation3 + $0x68] sm:$0xff] }
 0x288   : > { %v3208_v35 = vpack.i.bf16 %v1731_v5, %v1728_v11  ;;  %v1816_v34 = vrot.slane %v1731_v5, 1  ;;  %v1777_v45 = vrot.slane %v1731_v5, 7  ;;  %v1622_v11 = vpop.f32.mrf.mxu1 }
 0x28a   : > { %3209 = vrot.lane.b32.xlu1 %v3208_v35, %s4997_s27  ;;  %v1818_v1 = vsel %vm734_vm3, %v1816_v34, %v1817_v33  ;;  %v4576_v38 = vsel %vm693_vm4, %v1776_v27, %v1777_v45  ;;  %v1635_v33 = vmul.f32 %v4489_v4, %v1622_v11  ;;  %v1736_v27 = vld [vmem:[#allocation3 + $0x90] sm:$0xff]  ;;  %v2081_v11 = vld [vmem:[%s4955_s6 + $0x58] sm:$0xff] }
 0x28b   : > { %2798 = vmatmul.msk.f32.gmra.mxu3 %vm460_vm0, %v1818_v1  ;;  %v3218_v42 = vpack.i.bf16 %v4576_v38, %v4566_v56  ;;  %v3223_v49 = vpack.i.bf16 %v1818_v1, %v1815_v60  ;;  %v1782_v45 = vrot.slane %v1736_v27, 7  ;;  %v2077_v27 = vld [vmem:[%s4955_s6 + $0x38] sm:$0xff] }
 0x28c   : > { %3214 = vrot.lane.b32.xlu2 %v3208_v35, %s4994_s28  ;;  %v1823_v35 = vrot.slane %v1738_v23, 1  ;;  %v2078_v23 = vld [vmem:[%s4955_s6 + $0x40] sm:$0xff] }
 0x28d   : > { %3219 = vrot.lane.b32.xlu0 %v3218_v42, %s4995_s17 }
 0x290   : > { %v1625_v31 = vpop.f32.mrf.mxu1 }
 0x295   : > { %3224 = vrot.lane.b32.xlu0 %v3223_v49, %s4996_s26 }
 0x299   : > { %v1439_v51 = vpop.f32.mrf.mxu2  ;;  %v1480_v54 = vpop.f32.mrf.mxu3 }
 0x29a   : > { %v1481_v58 = vadd.f32 %v1480_v54, %v1439_v51  ;;  %v1521_v28 = vpop.f32.mrf.mxu0 }
 0x29c   : > { %v1522_v17 = vadd.f32 %v1521_v28, %v1481_v58 }
 0x29e   : > { %v1538_v47 = vmul.f32 %v4495_v39, %v1522_v17 }
 0x2a0   : > { %v1547_v63 = vadd.f32 %v4504_v13, %v1538_v47 }
 0x2a1   : > { %v1442_v36 = vpop.f32.mrf.mxu2  ;;  %v1483_v8 = vpop.f32.mrf.mxu3 }
 0x2a2   : > { %v1650_v9 = vadd.f32 %v1642_v50, %v1547_v63  ;;  %v1484_v7 = vadd.f32 %v1483_v8, %v1442_v36  ;;  %v1524_v41 = vpop.f32.mrf.mxu0 }
 0x2a4   : > { %vm1658_vm1 = vcmp.ge.f32.partialorder %v1650_v9, 0.0  ;;  %v1667_v14 = vmul.f32 %v4514_v18, %v1650_v9  ;;  %v1525_v59 = vadd.f32 %v1524_v41, %v1484_v7  ;;  %v1636_v7 = vmul.f32 %v4489_v4, %v1625_v31  ;;  %v1741_v41 = vld [vmem:[#allocation3 + $0xb8] sm:$0xff] }
 0x2a6   : > { %v1675_v20 = vsel %vm1658_vm1, %v1650_v9, %v1667_v14  ;;  %v1539_v16 = vmul.f32 %v4495_v39, %v1525_v59  ;;  %v1739_v14 = vld [vmem:[#allocation3 + $0xa8] sm:$0xff]  ;;  %vm2388_vm1 = vcmask 1044484  }
 0x2a7   : > { %1714 = vst.msk [vmem:[#allocation3 + $0x80] sm:$0xff] %vm460_vm0, %v1675_v20 }
 0x2a8   : > { %v1548_v30 = vadd.f32 %v4504_v13, %v1539_v16  ;;  %v1645_v16 = vadd.f32 %v4500_v10, %v1636_v7 }
 0x2aa   : > { %v1651_v15 = vadd.f32 %v1643_v62, %v1548_v30  ;;  %v1527_v40 = vpop.f32.mrf.mxu0  ;;  %v1826_v62 = vrot.slane %v1741_v41, 1  ;;  %v1785_v30 = vrot.slane %v1739_v14, 7  ;;  %v2072_v41 = vld [vmem:[%s4955_s6 + $0x10] sm:$0xff] }
 0x2ac   : > { %vm1659_vm5 = vcmp.ge.f32.partialorder %v1651_v15, 0.0  ;;  %v1668_v2 = vmul.f32 %v4514_v18, %v1651_v15 }
 0x2ae   : > { %v1676_v6 = vsel %vm1659_vm5, %v1651_v15, %v1668_v2  ;;  %v1734_v22 = vld [vmem:[#allocation3 + $0x80] sm:$0xff]  ;;  %v2085_v15 = vld [vmem:[%s4955_s6 + $0x78] sm:$0xff]  ;;  %vm2390_vm5 = vcmask 1045509  }
 0x2af   : > { %1715 = vst.msk [vmem:[#allocation3 + $0x98] sm:$0xff] %vm460_vm0, %v1676_v6  ;;  %v3228_v61 = vpack.i.bf16 %v1734_v22, %v1731_v5  ;;  %v1819_v32 = vrot.slane %v1734_v22, 1  ;;  %v1780_v21 = vrot.slane %v1734_v22, 7  ;;  %2837 = vmatpush.msra.mxu2 %v2085_v15  ;;  %2104 = vmatpush.msrb.mxu0 %v2085_v15 }
 0x2b1   : > { %3229 = vrot.lane.b32.xlu2 %v3228_v61, %s4993_s29  ;;  %v1821_v44 = vsel %vm734_vm3, %v1819_v32, %v1820_v37  ;;  %v4599_v25 = vsel %vm693_vm4, %v1779_v3, %v1780_v21  ;;  %v2082_v32 = vld [vmem:[%s4955_s6 + $0x60] sm:$0xff] }
 0x2b2   : > { %v1445_v29 = vpop.f32.mrf.mxu2  ;;  %v1486_v60 = vpop.f32.mrf.mxu3  ;;  %2799 = vmatmul.msk.f32.gmra.mxu3 %vm460_vm0, %v1821_v44  ;;  %v3238_v0 = vpack.i.bf16 %v1821_v44, %v1818_v1  ;;  %v3233_v48 = vpack.i.bf16 %v4599_v25, %v4576_v38  ;;  %v1644_v1 = vadd.f32 %v4500_v10, %v1635_v33  ;;  %v2083_v10 = vld [vmem:[%s4955_s6 + $0x68] sm:$0xff] }
 0x2b3   : > { %v1487_v52 = vadd.f32 %v1486_v60, %v1445_v29  ;;  %v4661_v29 = vld [vmem:[#allocation3 + $0x8] sm:$0xff]  ;;  %v1744_v60 = vld [vmem:[#allocation3 + $0xd0] sm:$0xff] }
 0x2b4   : > { %3239 = vrot.lane.b32.xlu0 %v3238_v0, %s4998_s16  ;;  %3234 = vrot.lane.b32.xlu1 %v3233_v48, %s4992_s18  ;;  %v1742_v0 = vld [vmem:[#allocation3 + $0xc0] sm:$0xff] }
 0x2b5   : > { %v1528_v5 = vadd.f32 %v1527_v40, %v1487_v52  ;;  %v2080_v40 = vld [vmem:[%s4955_s6 + $0x50] sm:$0xff]  ;;  %v1835_v52 = vrot.slane %v1744_v60, 1  ;;  %v1830_v33 = vrot.slane %v1742_v0, 7 }
 0x2b6   : > { %v1737_v34 = vld [vmem:[#allocation3 + $0x98] sm:$0xff] }
 0x2b7   : > { %v1540_v42 = vmul.f32 %v4495_v39, %v1528_v5  ;;  %v3243_v49 = vpack.i.bf16 %v1737_v34, %v1734_v22  ;;  %v1822_v19 = vrot.slane %v1737_v34, 1  ;;  %v1783_v51 = vrot.slane %v1737_v34, 7 }
 0x2b9   : > { %v1549_v54 = vadd.f32 %v4504_v13, %v1540_v42  ;;  %3244 = vrot.lane.b32.xlu2 %v3243_v49, %s4997_s27  ;;  %v1824_v58 = vsel %vm734_vm3, %v1822_v19, %v1823_v35  ;;  %v4614_v28 = vsel %vm693_vm4, %v1782_v45, %v1783_v51  ;;  %v1530_v63 = vpop.f32.mrf.mxu0  ;;  %v1721_v42 = vld [vmem:[#allocation3 + $0x18] sm:$0xff] }
 0x2ba   : > { %2800 = vmatmul.msk.f32.gmra.mxu3 %vm460_vm0, %v1824_v58  ;;  %v3253_v17 = vpack.i.bf16 %v4614_v28, %v4599_v25  ;;  %v3258_v57 = vpack.i.bf16 %v1824_v58, %v1821_v44 }
 0x2bb   : > { %v1652_v26 = vadd.f32 %v1644_v1, %v1549_v54  ;;  %v1720_v1 = vld [vmem:[#allocation3 + $0x10] sm:$0xff] }
 0x2bc   : > { %3249 = vrot.lane.b32.xlu0 %v3243_v49, %s4994_s28  ;;  %3254 = vrot.lane.b32.xlu1 %v3253_v17, %s4995_s17  ;;  %v2076_v49 = vld [vmem:[%s4955_s6 + $0x30] sm:$0xff]  ;;  %v2075_v17 = vld [vmem:[%s4955_s6 + $0x28] sm:$0xff]  ;;  %v1805_v31 = vrot.slane %v1720_v1, 1 }
 0x2bd   : > { %vm1660_vm6 = vcmp.ge.f32.partialorder %v1652_v26, 0.0  ;;  %v1669_v47 = vmul.f32 %v4514_v18, %v1652_v26 }
 0x2bf   : > { %v1677_v50 = vsel %vm1660_vm6, %v1652_v26, %v1669_v47  ;;  %v1768_v26 = vrot.slane %v4531_v53, 7  ;;  %v1804_v47 = vrot.slane %v4661_v29, 1  ;;  %vm2392_vm6 = vcmask 1046534  }
 0x2c0   : > { %1716 = vst.msk [vmem:[#allocation3 + $0xb0] sm:$0xff] %vm460_vm0, %v1677_v50 }
 0x2c1   : > { %v1448_v36 = vpop.f32.mrf.mxu2  ;;  %v1489_v8 = vpop.f32.mrf.mxu3 }
 0x2c2   : > { %v1490_v9 = vadd.f32 %v1489_v8, %v1448_v36  ;;  %v4693_v36 = vld [vmem:[#allocation3 + $0xe0] sm:$0xff]  ;;  %v1745_v8 = vld [vmem:[#allocation3 + $0xd8] sm:$0xff] }
 0x2c3   : > { %v1840_v14 = vrot.slane %v4693_v36, 7 }
 0x2c4   : > { %v1531_v59 = vadd.f32 %v1530_v63, %v1490_v9  ;;  %3259 = vrot.lane.b32.xlu1 %v3258_v57, %s4996_s26  ;;  %v2074_v63 = vld [vmem:[%s4955_s6 + $0x20] sm:$0xff]  ;;  %v1806_v57 = vsel %vm734_vm3, %v1804_v47, %v1805_v31 }
 0x2c6   : > { %v1541_v20 = vmul.f32 %v4495_v39, %v1531_v59  ;;  %v2084_v39 = vld [vmem:[%s4955_s6 + $0x70] sm:$0xff]  ;;  %v1839_v59 = vrot.slane %v1745_v8, 7 }
 0x2c7   : > { %v1740_v24 = vld [vmem:[#allocation3 + $0xb0] sm:$0xff]  ;;  %2838 = vmatpush.msra.mxu2 %v2084_v39  ;;  %2105 = vmatpush.msrb.mxu0 %v2084_v39 }
 0x2c8   : > { %v1550_v4 = vadd.f32 %v4504_v13, %v1541_v20  ;;  %v3263_v46 = vpack.i.bf16 %v1740_v24, %v1737_v34  ;;  %v1825_v2 = vrot.slane %v1740_v24, 1  ;;  %v1786_v37 = vrot.slane %v1740_v24, 7  ;;  %v2071_v20 = vld [vmem:[%s4955_s6 + $0x8] sm:$0xff] }
 0x2c9   : > { %2839 = vmatpush.msra.mxu2 %v2083_v10  ;;  %2106 = vmatpush.msrb.mxu0 %v2083_v10  ;;  %v3278_v48 = vpack.i.bf16 %v1740_v24, %v4661_v29  ;;  %v1841_v15 = vsel %vm693_vm4, %v1839_v59, %v1840_v14 }
 0x2ca   : > { %v1653_v3 = vadd.f32 %v1645_v16, %v1550_v4  ;;  %3264 = vrot.lane.b32.xlu0 %v3263_v46, %s4993_s29  ;;  %v4638_v6 = vsel %vm734_vm3, %v1825_v2, %v1826_v62  ;;  %v4641_v13 = vsel %vm693_vm4, %v1785_v30, %v1786_v37  ;;  %v3318_v62 = vpack.i.bf16 %v4693_v36, %v4536_v43  ;;  %v2070_v30 = vld [vmem:[%s4955_s6] sm:$0xff] }
 0x2cb   : > { %2801 = vmatmul.msk.f32.gmra.mxu3 %vm460_vm0, %v4638_v6  ;;  %v3273_v22 = vpack.i.bf16 %v4638_v6, %v1824_v58  ;;  %v3268_v61 = vpack.i.bf16 %v4641_v13, %v4614_v28  ;;  %2840 = vmatpush.msra.mxu2 %v2082_v32  ;;  %v1767_v58 = vrot.slane %v1721_v42, 7  ;;  %v3293_v16 = vpack.i.bf16 %v4638_v6, %v1806_v57 }
 0x2cc   : > { %vm1661_vm12 = vcmp.ge.f32.partialorder %v1653_v3, 0.0  ;;  %v1670_v21 = vmul.f32 %v4514_v18, %v1653_v3  ;;  %2107 = vmatpush.msrb.mxu0 %v2082_v32  ;;  %v2079_v18 = vld [vmem:[%s4955_s6 + $0x48] sm:$0xff] }
 0x2cd   : > { %3274 = vrot.lane.b32.xlu1 %v3273_v22, %s4998_s16  ;;  %3269 = vrot.lane.b32.xlu2 %v3268_v61, %s4992_s18  ;;  %v1769_v9 = vsel %vm693_vm4, %v1767_v58, %v1768_v26 }
 0x2ce   : > { %v1678_v44 = vsel %vm1661_vm12, %v1653_v3, %v1670_v21  ;;  %2841 = vmatpush.msra.mxu2 %v2081_v11  ;;  %2108 = vmatpush.msrb.mxu0 %v2081_v11  ;;  %v3190_v2 = vpop.permute.xlu2 %3189  ;;  %vm2394_vm12 = vcmask 1047559  }
 0x2cf   : > { %1717 = vst.msk [vmem:[#allocation3 + $0xc8] sm:$0xff] %vm460_vm0, %v1678_v44  ;;  %v3191_v6 = vunpack.i.l.bf16 %v3190_v2 }
 0x2d0   : > { %2842 = vmatpush.msra.mxu2 %v2080_v40  ;;  %2109 = vmatpush.msrb.mxu0 %v2080_v40  ;;  %v3192_v40 = vunpack.i.h.bf16 %v3190_v2 }
 0x2d2   : > { %2843 = vmatpush.msra.mxu2 %v2079_v18  ;;  %2110 = vmatpush.msrb.mxu0 %v2079_v18 }
 0x2d4   : > { %2844 = vmatpush.msra.mxu2 %v2078_v23  ;;  %2111 = vmatpush.msrb.mxu0 %v2078_v23 }
 0x2d5   : > { %3279 = vrot.lane.b32.xlu1 %v3278_v48, %s4994_s28 }
 0x2d6   : > { %v1743_v5 = vld [vmem:[#allocation3 + $0xc8] sm:$0xff]  ;;  %2845 = vmatpush.msra.mxu2 %v2077_v27  ;;  %2112 = vmatpush.msrb.mxu0 %v2077_v27 }
 0x2d7   : > { %v3283_v35 = vpack.i.bf16 %v1743_v5, %v1740_v24  ;;  %v1834_v34 = vrot.slane %v1743_v5, 1  ;;  %v1831_v45 = vrot.slane %v1743_v5, 7  ;;  %v3298_v50 = vpack.i.bf16 %v1743_v5, %v4531_v53  ;;  %v2073_v53 = vld [vmem:[%s4955_s6 + $0x18] sm:$0xff] }
 0x2d8   : > { %2846 = vmatpush.msra.mxu2 %v2076_v49  ;;  %2113 = vmatpush.msrb.mxu0 %v2076_v49  ;;  %v3313_v24 = vpack.i.bf16 %v1841_v15, %v4563_v12 }
 0x2d9   : > { %3284 = vrot.lane.b32.xlu0 %v3283_v35, %s4997_s27  ;;  %v1836_v19 = vsel %vm734_vm3, %v1834_v34, %v1835_v52  ;;  %v1832_v51 = vsel %vm693_vm4, %v1830_v33, %v1831_v45 }
 0x2da   : > { %2802 = vmatmul.msk.f32.gmra.mxu3 %vm460_vm0, %v1836_v19  ;;  %v3288_v54 = vpack.i.bf16 %v1832_v51, %v4641_v13  ;;  %2847 = vmatpush.msra.mxu2 %v2075_v17  ;;  %v3303_v7 = vpack.i.bf16 %v1832_v51, %v1769_v9  ;;  %v3308_v43 = vpack.i.bf16 %v1836_v19, %v4545_v55 }
 0x2db   : > { %2114 = vmatpush.msrb.mxu0 %v2075_v17 }
 0x2dc   : > { %3289 = vrot.lane.b32.xlu2 %v3288_v54, %s4995_s17  ;;  %2848 = vmatpush.msra.mxu2 %v2074_v63 }
 0x2dd   : > { %3299 = vrot.lane.b32.xlu1 %v3298_v50, %s4993_s29  ;;  %2115 = vmatpush.msrb.mxu0 %v2074_v63  ;;  %s4897_s29 = scalar_lea.vmem [#allocation4], %s2758_s3 }
 0x2de   : > { %2849 = vmatpush.msra.mxu2 %v2073_v53  ;;  %v3205_v21 = vpop.permute.xlu2 %3204  ;;  %s2665_s25 = sshll.u32 %s4897_s29, 4  ;;  %s2666_s25 = int_to_ptr.vmem [resolvable:$true] %s2665_s25 }
 0x2df   : > { %2116 = vmatpush.msrb.mxu0 %v2073_v53  ;;  %v3206_v0 = vunpack.i.l.bf16 %v3205_v21  ;;  %v3207_v1 = vunpack.i.h.bf16 %v3205_v21 }
 0x2e0   : > { %2850 = vmatpush.msra.mxu2 %v2072_v41 }
 0x2e1   : > { %3304 = vrot.lane.b32.xlu0 %v3303_v7, %s4992_s18  ;;  %2117 = vmatpush.msrb.mxu0 %v2072_v41 }
 0x2e2   : > { %2851 = vmatpush.msra.mxu2 %v2071_v20 }
 0x2e3   : > { %2118 = vmatpush.msrb.mxu0 %v2071_v20  ;;  %v3185_v4 = vpop.permute.xlu1 %3184 }
 0x2e4   : > { %3294 = vrot.lane.b32.xlu2 %v3293_v16, %s4996_s26  ;;  %2852 = vmatpush.msra.mxu2 %v2070_v30  ;;  %v3186_v46 = vunpack.i.l.bf16 %v3185_v4  ;;  %v3187_v22 = vunpack.i.h.bf16 %v3185_v4 }
 0x2e5   : > { %3319 = vrot.lane.b32.xlu1 %v3318_v62, %s4997_s27  ;;  %2119 = vmatpush.msrb.mxu0 %v2070_v30  ;;  %s2763_s27 = sshll.u32 %s3553_s15, 3 }
 0x2e6   : > { %v2015_v10 = vsel %vm460_vm0, %v1769_v9, %v3186_v46  ;;  %v2016_v55 = vsel %vm460_vm0, %v4563_v12, %v3187_v22  ;;  %v3215_v58 = vpop.permute.xlu2 %3214  ;;  %s448_s26 = scalar_lea.vmem %s4951_s2, %s2763_s27  ;;  %s2664_s27 = scalar_lea.hbm %s4961_s12, %s2828_s20 }
 0x2e7   : > { %v2023_v61 = vsel %vm530_vm2, %v2015_v10, %v3191_v6  ;;  %v2024_v23 = vsel %vm530_vm2, %v2016_v55, %v3192_v40  ;;  %v3216_v47 = vunpack.i.l.bf16 %v3215_v58  ;;  %v3217_v53 = vunpack.i.h.bf16 %v3215_v58  ;;  %v4754_v22 = vld [vmem:[%s448_s26] sm:$0xff]  ;;  %s2667_s18 = sshll.u32 %s2664_s27, 4  ;;  %s2668_s18 = int_to_ptr.hbm [resolvable:$true] %s2667_s18 }
 0x2e8   : > { %v2281_v55 = vperm.slane %v4754_v22, 2  ;;  %s3377_s26 = sshra.s32 %s2668_s18, 4  ;;  %s3378_s26 = int_to_ptr.hbm [resolvable:$true] %s3377_s26 }
 0x2e9   : > { %3314 = vrot.lane.b32.xlu0 %v3313_v24, %s4995_s17  ;;  %v2017_v8 = vsel %vm460_vm0, %v4566_v56, %v3216_v47  ;;  %v2018_v62 = vsel %vm460_vm0, %v4576_v38, %v3217_v53  ;;  %s2653_s17 = scalar_lea.sflag [#allocation5], %s432_s1  ;;  %s3379_s15 = scalar_lea.hbm %s3378_s26, 64 }
 0x2ea   : > { %p3380_p11 = scmp.ne.s32.totalorder %s3378_s26, %s3379_s15  ;;  %p3384_p0 = scmp.lt.s32.totalorder %s3378_s26, %s4961_s12 }
 0x2eb   : > { %p3385_p1 = scmp.lt.s32.totalorder %s3383_s14, %s3379_s15 }
 0x2ec   : > { %3309 = vrot.lane.b32.xlu2 %v3308_v43, %s4998_s16  ;;  %v2268_v43 = vlaneseq  ;;  %p3381_p12 = pnand %p3380_p11, %p3541_p5 }
 0x2ed   : > { %p3386_p2 = por %p3385_p1, %p3384_p0 }
 0x2ee   : > { %v2269_v38 = vshrl.u32 %v2268_v43, 7  ;;  %p3382_p13 = pneg %p3381_p12 }
 0x2f0   : > { %3325 = vset.pattern.permute.xlu1 %v2269_v38  ;;  %3324 = vset.pattern.permute.xlu0 %v2269_v38  ;;  %p3387_p3 = pnand %p3386_p2, %p3382_p13 }
 0x2f1   : > { %3323 = vset.pattern.permute.xlu2 %v2269_v38 }
 0x2f3   : > { %v3195_v37 = vpop.permute.xlu1 %3194 }
 0x2f4   : > { %v3196_v11 = vunpack.i.l.bf16 %v3195_v37  ;;  %v3197_v35 = vunpack.i.h.bf16 %v3195_v37 }
 0x2f6   : > { %v3200_v39 = vpop.permute.xlu0 %3199 }
 0x2f7   : > { %v3201_v3 = vunpack.i.l.bf16 %v3200_v39  ;;  %v3202_v44 = vunpack.i.h.bf16 %v3200_v39 }
 0x2f8   : > { %2286 = vperm.xlu1 %3325, %v2281_v55  }
 0x2f9   : > { %v2031_v32 = vsel %vm1217_vm7, %v2023_v61, %v3201_v3  ;;  %v2032_v33 = vsel %vm1217_vm7, %v2024_v23, %v3202_v44 }
 0x2fa   : > { %v2039_v18 = vsel %vm1226_vm8, %v2031_v32, %v3196_v11  ;;  %v2040_v42 = vsel %vm1226_vm8, %v2032_v33, %v3197_v35  ;;  %v2274_v35 = vperm.slane %v4754_v22, 1 }
 0x2fb   : > { %v2047_v5 = vsel %vm1235_vm9, %v2039_v18, %v3206_v0  ;;  %v2048_v49 = vsel %vm1235_vm9, %v2040_v42, %v3207_v1  ;;  %v1747_v0 = vld [vmem:[#allocation3 + $0xe8] sm:$0xff] }
 0x2fc   : > { %v3210_v60 = vpop.permute.xlu1 %3209  ;;  %v1844_v33 = vrot.slane %v1747_v0, 1  ;;  %2279 = vperm.xlu0 %3324, %v2274_v35  }
 0x2fd   : > { %v3211_v27 = vunpack.i.l.bf16 %v3210_v60  ;;  %v3212_v51 = vunpack.i.h.bf16 %v3210_v60 }
 0x2ff   : > { %v3220_v48 = vpop.permute.xlu0 %3219 }
 0x300   : > { %v3221_v52 = vunpack.i.l.bf16 %v3220_v48  ;;  %v3222_v45 = vunpack.i.h.bf16 %v3220_v48 }
 0x302   : > { %v2055_v34 = vsel %vm1244_vm10, %v2047_v5, %v3221_v52  ;;  %v2056_v19 = vsel %vm1244_vm10, %v2048_v49, %v3222_v45  ;;  %v1843_v52 = vrot.slane %v4693_v36, 1  ;;  %v2288_v5 = vperm.slane %v4754_v22, 3 }
 0x303   : > { %v2063_v12 = vsel %vm1253_vm11, %v2055_v34, %v3211_v27  ;;  %v2064_v54 = vsel %vm1253_vm11, %v2056_v19, %v3212_v51 }
 0x304   : > { %2123 = vmatmul.f32.vlgmr.msra.gmra.mxu2 %v2063_v12  ;;  %v1845_v12 = vsel %vm734_vm3, %v1843_v52, %v1844_v33  ;;  %2293 = vperm.xlu1 %3325, %v2288_v5  }
 0x305   : > { %2803 = vmatmul.msk.f32.gmra.mxu3 %vm460_vm0, %v1845_v12 }
 0x307   : > { %v3225_v26 = vpop.permute.xlu0 %3224 }
 0x308   : > { %v3226_v50 = vunpack.i.l.bf16 %v3225_v26  ;;  %v3227_v57 = vunpack.i.h.bf16 %v3225_v26 }
 0x30a   : > { %v2025_v9 = vsel %vm530_vm2, %v2017_v8, %v3226_v50  ;;  %v2026_v56 = vsel %vm530_vm2, %v2018_v62, %v3227_v57 }
 0x30b   : > { %v3230_v17 = vpop.permute.xlu2 %3229 }
 0x30c   : > { %2126 = vmatmul.f32.gmra.mxu2 %v2064_v54  ;;  %v3231_v41 = vunpack.i.l.bf16 %v3230_v17  ;;  %v3232_v37 = vunpack.i.h.bf16 %v3230_v17  ;;  %v2309_v54 = vperm.slane %v4754_v22, 6  ;;  %v2295_v17 = vperm.slane %v4754_v22, 4 }
 0x30e   : > { %2314 = vperm.xlu0 %3324, %v2309_v54   ;;  %2300 = vperm.xlu1 %3325, %v2295_v17  }
 0x313   : > { %v3245_v20 = vpop.permute.xlu2 %3244 }
 0x314   : > { %v3246_v4 = vunpack.i.l.bf16 %v3245_v20  ;;  %v3247_v44 = vunpack.i.h.bf16 %v3245_v20 }
 0x326   : > { %v3235_v31 = vpop.permute.xlu1 %3234  ;;  %v3240_v14 = vpop.permute.xlu0 %3239 }
 0x327   : > { %v3236_v63 = vunpack.i.l.bf16 %v3235_v31  ;;  %v3237_v59 = vunpack.i.h.bf16 %v3235_v31  ;;  %v3241_v30 = vunpack.i.l.bf16 %v3240_v14  ;;  %v3242_v61 = vunpack.i.h.bf16 %v3240_v14  ;;  %v3270_v60 = vpop.permute.xlu2 %3269  ;;  %v1718_v31 = vld [vmem:[#allocation3] sm:$0xff] }
 0x328   : > { %v3271_v49 = vunpack.i.l.bf16 %v3270_v60  ;;  %v3272_v20 = vunpack.i.h.bf16 %v3270_v60 }
 0x329   : > { %v2033_v7 = vsel %vm1217_vm7, %v2025_v9, %v3236_v63  ;;  %v2034_v46 = vsel %vm1217_vm7, %v2026_v56, %v3237_v59  ;;  %v1765_v9 = vrot.slane %v4661_v29, 7 }
 0x32a   : > { %v2041_v16 = vsel %vm1226_vm8, %v2033_v7, %v3231_v41  ;;  %v2042_v6 = vsel %vm1226_vm8, %v2034_v46, %v3232_v37  ;;  %v1764_v7 = vrot.slane %v1718_v31, 7 }
 0x32b   : > { %v2049_v2 = vsel %vm1235_vm9, %v2041_v16, %v3241_v30  ;;  %v2050_v21 = vsel %vm1235_vm9, %v2042_v6, %v3242_v61 }
 0x32e   : > { %v3255_v15 = vpop.permute.xlu1 %3254  ;;  %v3250_v40 = vpop.permute.xlu0 %3249 }
 0x32f   : > { %v3256_v24 = vunpack.i.l.bf16 %v3255_v15  ;;  %v3257_v3 = vunpack.i.h.bf16 %v3255_v15  ;;  %v3251_v23 = vunpack.i.l.bf16 %v3250_v40  ;;  %v3252_v58 = vunpack.i.h.bf16 %v3250_v40 }
 0x331   : > { %v2057_v39 = vsel %vm1244_vm10, %v2049_v2, %v3256_v24  ;;  %v2058_v11 = vsel %vm1244_vm10, %v2050_v21, %v3257_v3  ;;  %v2019_v45 = vsel %vm460_vm0, %v4599_v25, %v3251_v23  ;;  %v2020_v53 = vsel %vm460_vm0, %v4614_v28, %v3252_v58 }
 0x332   : > { %v2065_v10 = vsel %vm1253_vm11, %v2057_v39, %v3246_v4  ;;  %v2066_v18 = vsel %vm1253_vm11, %v2058_v11, %v3247_v44  ;;  %v1766_v28 = vsel %vm693_vm4, %v1764_v7, %v1765_v9  ;;  %v2316_v4 = vperm.slane %v4754_v22, 7  ;;  %v4816_v7 = vld [vmem:[%s4956_s7] ss:$0 sm:$0xff] }
 0x333   : > { %2129 = vmatmul.f32.gmra.mxu2 %v2065_v10  ;;  %v2267_v58 = vperm.slane %v4754_v22, 0 }
 0x334   : > { %2321 = vperm.xlu1 %3325, %v2316_v4  }
 0x335   : > { %2272 = vperm.xlu2 %3323, %v2267_v58  }
 0x336   : > { %v3260_v32 = vpop.permute.xlu1 %3259  ;;  %v3290_v42 = vpop.permute.xlu2 %3289 }
 0x337   : > { %v3261_v27 = vunpack.i.l.bf16 %v3260_v32  ;;  %v3262_v47 = vunpack.i.h.bf16 %v3260_v32  ;;  %v3291_v63 = vunpack.i.l.bf16 %v3290_v42  ;;  %v3292_v39 = vunpack.i.h.bf16 %v3290_v42 }
 0x339   : > { %v2027_v1 = vsel %vm530_vm2, %v2019_v45, %v3261_v27  ;;  %v2028_v41 = vsel %vm530_vm2, %v2020_v53, %v3262_v47  ;;  %v3362_v47 = vld [vmem:[%s4957_s8] sm:$0xff] }
 0x33a   : > { %v2035_v26 = vsel %vm1217_vm7, %v2027_v1, %v3271_v49  ;;  %v2036_v29 = vsel %vm1217_vm7, %v2028_v41, %v3272_v20  ;;  %v4810_v9 = vperm.slane %v3362_v47, 7 }
 0x33b   : > { %2132 = vmatmul.f32.gmra.mxu2 %v2066_v18 }
 0x33c   : > { %v3265_v34 = vpop.permute.xlu0 %3264 }
 0x33d   : > { %v3266_v36 = vunpack.i.l.bf16 %v3265_v34  ;;  %v3267_v14 = vunpack.i.h.bf16 %v3265_v34 }
 0x33e   : > { %v3295_v16 = vpop.permute.xlu2 %3294 }
 0x33f   : > { %v3275_v48 = vpop.permute.xlu1 %3274  ;;  %v2043_v50 = vsel %vm1226_vm8, %v2035_v26, %v3266_v36  ;;  %v2044_v46 = vsel %vm1226_vm8, %v2036_v29, %v3267_v14  ;;  %v3297_v6 = vunpack.i.h.bf16 %v3295_v16  ;;  %v3296_v61 = vunpack.i.l.bf16 %v3295_v16  ;;  %v2162_v26 = vpop.f32.mrf.mxu3 }
 0x340   : > { %v3276_v19 = vunpack.i.l.bf16 %v3275_v48  ;;  %v3277_v62 = vunpack.i.h.bf16 %v3275_v48 }
 0x342   : > { %v2051_v25 = vsel %vm1235_vm9, %v2043_v50, %v3276_v19  ;;  %v2052_v37 = vsel %vm1235_vm9, %v2044_v46, %v3277_v62  ;;  %v4805_v50 = vperm.slane %v3362_v47, 5 }
 0x343   : > { %v2059_v59 = vsel %vm1244_vm10, %v2051_v25, %v3291_v63  ;;  %v2060_v11 = vsel %vm1244_vm10, %v2052_v37, %v3292_v39  ;;  %v4807_v63 = vperm.slane %v3362_v47, 6 }
 0x347   : > { %v3280_v51 = vpop.permute.xlu1 %3279  ;;  %v2165_v17 = vpop.f32.mrf.mxu3 }
 0x348   : > { %v3282_v15 = vunpack.i.h.bf16 %v3280_v51  ;;  %v3281_v56 = vunpack.i.l.bf16 %v3280_v51 }
 0x34a   : > { %v2014_v38 = vsel %vm460_vm0, %v1766_v28, %v3281_v56  ;;  %v2021_v10 = vsel %vm460_vm0, %v4641_v13, %v3282_v15  ;;  %v3310_v13 = vpop.permute.xlu2 %3309  ;;  %v2302_v28 = vperm.slane %v4754_v22, 5 }
 0x34b   : > { %v3285_v8 = vpop.permute.xlu0 %3284  ;;  %v2022_v55 = vsel %vm530_vm2, %v2014_v38, %v3296_v61  ;;  %v2029_v44 = vsel %vm530_vm2, %v2021_v10, %v3297_v6  ;;  %v3312_v27 = vunpack.i.h.bf16 %v3310_v13  ;;  %v3311_v5 = vunpack.i.l.bf16 %v3310_v13 }
 0x34c   : > { %v3286_v57 = vunpack.i.l.bf16 %v3285_v8  ;;  %v3287_v2 = vunpack.i.h.bf16 %v3285_v8  ;;  %2307 = vperm.xlu2 %3323, %v2302_v28  }
 0x34e   : > { %v2067_v30 = vsel %vm1253_vm11, %v2059_v59, %v3286_v57  ;;  %v2068_v40 = vsel %vm1253_vm11, %v2060_v11, %v3287_v2 }
 0x34f   : > { %2135 = vmatmul.f32.gmra.mxu2 %v2067_v30  ;;  %v3300_v24 = vpop.permute.xlu1 %3299  ;;  %v2168_v41 = vpop.f32.mrf.mxu3 }
 0x350   : > { %v3302_v0 = vunpack.i.h.bf16 %v3300_v24  ;;  %v3301_v48 = vunpack.i.l.bf16 %v3300_v24 }
 0x353   : > { %v3305_v3 = vpop.permute.xlu0 %3304 }
 0x354   : > { %v3307_v32 = vunpack.i.h.bf16 %v3305_v3  ;;  %v3306_v21 = vunpack.i.l.bf16 %v3305_v3 }
 0x356   : > { %v2030_v18 = vsel %vm1217_vm7, %v2022_v55, %v3306_v21  ;;  %v2037_v60 = vsel %vm1217_vm7, %v2029_v44, %v3307_v32 }
 0x357   : > { %2138 = vmatmul.f32.gmra.mxu2 %v2068_v40  ;;  %v2038_v23 = vsel %vm1226_vm8, %v2030_v18, %v3301_v48  ;;  %v3320_v52 = vpop.permute.xlu1 %3319  ;;  %v2045_v33 = vsel %vm1226_vm8, %v2037_v60, %v3302_v0  ;;  %v2171_v46 = vpop.f32.mrf.mxu3 }
 0x358   : > { %v3322_v45 = vunpack.i.h.bf16 %v3320_v52  ;;  %v3321_v42 = vunpack.i.l.bf16 %v3320_v52  ;;  %v2046_v1 = vsel %vm1235_vm9, %v2038_v23, %v3311_v5  ;;  %v2053_v36 = vsel %vm1235_vm9, %v2045_v33, %v3312_v27 }
 0x35b   : > { %v3315_v35 = vpop.permute.xlu0 %3314 }
 0x35c   : > { %v3317_v34 = vunpack.i.h.bf16 %v3315_v35  ;;  %v3316_v12 = vunpack.i.l.bf16 %v3315_v35 }
 0x35e   : > { %v2054_v49 = vsel %vm1244_vm10, %v2046_v1, %v3316_v12  ;;  %v2061_v19 = vsel %vm1244_vm10, %v2053_v36, %v3317_v34 }
 0x35f   : > { %v2062_v51 = vsel %vm1253_vm11, %v2054_v49, %v3321_v42  ;;  %v2069_v54 = vsel %vm1253_vm11, %v2061_v19, %v3322_v45  ;;  %v2174_v61 = vpop.f32.mrf.mxu3 }
 0x360   : > { %2120 = vmatmul.f32.vlgmr.msrb.gmra.mxu0 %v2062_v51  ;;  %2141 = vmatmul.f32.gmra.mxu2 %v2069_v54 }
 0x367   : > { %v2177_v21 = vpop.f32.mrf.mxu3 }
 0x36f   : > { %v2180_v18 = vpop.f32.mrf.mxu3 }
 0x387   : > { %v2124_v31 = vpop.f32.mrf.mxu2 }
 0x388   : > { %v2166_v25 = vadd.f32 %v2165_v17, %v2124_v31  ;;  %v2183_v42 = vpop.f32.mrf.mxu3 }
 0x38a   : > { %v2188_v8 = vmul.f32 %v4805_v50, %v2166_v25 }
 0x38c   : > { %v2197_v53 = vadd.f32 %v4807_v63, %v2188_v8 }
 0x38e   : > { %vm2205_vm2 = vcmp.ge.f32.partialorder %v2197_v53, 0.0  ;;  %v2214_v57 = vmul.f32 %v4810_v9, %v2197_v53 }
 0x38f   : > { %v2127_v14 = vpop.f32.mrf.mxu2 }
 0x390   : > { %v2169_v59 = vadd.f32 %v2168_v41, %v2127_v14  ;;  %v2222_v20 = vsel %vm2205_vm2, %v2197_v53, %v2214_v57  ;;  %v3435_v14 = vmov 0   ;;  %vm2396_vm2 = vcmask 64512  }
 0x391   : > { %v2234_v16 = vmul.f32 %v4816_v7, %v2222_v20  ;;  %3327 = vset.pattern.permute.xlu1 %v3435_v14  ;;  %3328 = vset.pattern.permute.xlu2 %v3435_v14 }
 0x392   : > { %v2189_v62 = vmul.f32 %v4805_v50, %v2169_v59  ;;  %3326 = vset.pattern.permute.xlu0 %v3435_v14  ;;  %v2426_v14 = vld [vmem:[%s4959_s10 + $0x38] sm:$0xff] }
 0x393   : > { %v2244_v30 = vsel %vm460_vm0, %v2234_v16, 0.0 }
 0x394   : > { %v2198_v15 = vadd.f32 %v4807_v63, %v2189_v62  ;;  %2245 = vadd.xlane.f32.xlu0 %v2244_v30  ;;  %v2280_v62 = vpop.permute.xlu0 %2279 }
 0x396   : > { %vm2206_vm3 = vcmp.ge.f32.partialorder %v2198_v15, 0.0  ;;  %v2215_v56 = vmul.f32 %v4810_v9, %v2198_v15 }
 0x398   : > { %v2223_v29 = vsel %vm2206_vm3, %v2198_v15, %v2215_v56  ;;  %v2287_v56 = vpop.permute.xlu1 %2286 }
 0x399   : > { %v2235_v24 = vmul.f32 %v4816_v7, %v2223_v29 }
 0x39b   : > { %v2247_v4 = vsel %vm460_vm0, %v2235_v24, 0.0 }
 0x39c   : > { %2248 = vadd.xlane.f32.xlu1 %v2247_v4  ;;  %v2315_v15 = vpop.permute.xlu0 %2314 }
 0x3a0   : > { %v2294_v24 = vpop.permute.xlu1 %2293 }
 0x3a8   : > { %v2301_v4 = vpop.permute.xlu1 %2300 }
 0x3b6   : > { %v2130_v2 = vpop.f32.mrf.mxu2 }
 0x3b7   : > { %v2172_v37 = vadd.f32 %v2171_v46, %v2130_v2  ;;  %v2322_v46 = vpop.permute.xlu1 %2321 }
 0x3b9   : > { %v2190_v39 = vmul.f32 %v4805_v50, %v2172_v37 }
 0x3bb   : > { %v2199_v38 = vadd.f32 %v4807_v63, %v2190_v39  ;;  %v2273_v39 = vpop.permute.xlu2 %2272 }
 0x3bd   : > { %vm2207_vm4 = vcmp.ge.f32.partialorder %v2199_v38, 0.0  ;;  %v2216_v10 = vmul.f32 %v4810_v9, %v2199_v38 }
 0x3be   : > { %v2133_v32 = vpop.f32.mrf.mxu2 }
 0x3bf   : > { %v2224_v3 = vsel %vm2207_vm4, %v2199_v38, %v2216_v10  ;;  %v2175_v13 = vadd.f32 %v2174_v61, %v2133_v32 }
 0x3c0   : > { %v2236_v6 = vmul.f32 %v4816_v7, %v2224_v3 }
 0x3c1   : > { %v2191_v5 = vmul.f32 %v4805_v50, %v2175_v13 }
 0x3c2   : > { %v2250_v22 = vsel %vm460_vm0, %v2236_v6, 0.0 }
 0x3c3   : > { %2251 = vadd.xlane.f32.xlu1 %v2250_v22  ;;  %v2200_v36 = vadd.f32 %v4807_v63, %v2191_v5  ;;  %v2308_v38 = vpop.permute.xlu2 %2307 }
 0x3c5   : > { %v2217_v25 = vmul.f32 %v4810_v9, %v2200_v36  ;;  %vm2208_vm11 = vcmp.ge.f32.partialorder %v2200_v36, 0.0 }
 0x3c7   : > { %v2225_v41 = vsel %vm2208_vm11, %v2200_v36, %v2217_v25  ;;  %v2421_v25 = vld [vmem:[%s4959_s10 + $0x10] sm:$0xff] }
 0x3d2   : > { %v2136_v11 = vpop.f32.mrf.mxu2 }
 0x3d3   : > { %v2178_v55 = vadd.f32 %v2177_v21, %v2136_v11 }
 0x3d5   : > { %v2192_v44 = vmul.f32 %v4805_v50, %v2178_v55 }
 0x3d7   : > { %v2201_v40 = vadd.f32 %v4807_v63, %v2192_v44 }
 0x3d9   : > { %vm2209_vm7 = vcmp.ge.f32.partialorder %v2201_v40, 0.0  ;;  %v2218_v60 = vmul.f32 %v4810_v9, %v2201_v40 }
 0x3da   : > { %v2139_v0 = vpop.f32.mrf.mxu2 }
 0x3db   : > { %v2181_v48 = vadd.f32 %v2180_v18, %v2139_v0  ;;  %v2226_v23 = vsel %vm2209_vm7, %v2201_v40, %v2218_v60  ;;  %v2339_v40 = vld [vmem:[%s4960_s11] sm:$0xff]  ;;  %v2373_v0 = vand.u32 127, %v2268_v43 }
 0x3dc   : > { %v2238_v52 = vmul.f32 %v4816_v7, %v2226_v23  ;;  %2414 = vmatpush.msra.mxu0 %v2339_v40 }
 0x3dd   : > { %v2193_v33 = vmul.f32 %v4805_v50, %v2181_v48  ;;  %v2121_v27 = vpop.f32.mrf.mxu0 }
 0x3de   : > { %v2163_v35 = vadd.f32 %v2162_v26, %v2121_v27  ;;  %v2256_v34 = vsel %vm460_vm0, %v2238_v52, 0.0 }
 0x3df   : > { %v2202_v12 = vadd.f32 %v4807_v63, %v2193_v33  ;;  %2257 = vadd.xlane.f32.xlu0 %v2256_v34 }
 0x3e0   : > { %v2187_v45 = vmul.f32 %v4805_v50, %v2163_v35 }
 0x3e1   : > { %vm2210_vm9 = vcmp.ge.f32.partialorder %v2202_v12, 0.0  ;;  %v2219_v1 = vmul.f32 %v4810_v9, %v2202_v12 }
 0x3e2   : > { %v2196_v49 = vadd.f32 %v4807_v63, %v2187_v45 }
 0x3e3   : > { %v2142_v19 = vpop.f32.mrf.mxu2  ;;  %v2227_v51 = vsel %vm2210_vm9, %v2202_v12, %v2219_v1 }
 0x3e4   : > { %v2184_v54 = vadd.f32 %v2183_v42, %v2142_v19  ;;  %v2239_v58 = vmul.f32 %v4816_v7, %v2227_v51  ;;  %vm2204_vm10 = vcmp.ge.f32.partialorder %v2196_v49, 0.0  ;;  %v2213_v26 = vmul.f32 %v4810_v9, %v2196_v49 }
 0x3e6   : > { %v2194_v17 = vmul.f32 %v4805_v50, %v2184_v54  ;;  %v2259_v47 = vsel %vm460_vm0, %v2239_v58, 0.0  ;;  %v2221_v31 = vsel %vm2204_vm10, %v2196_v49, %v2213_v26  ;;  %v2237_v50 = vmul.f32 %v4816_v7, %v2225_v41  ;;  %v2425_v41 = vld [vmem:[%s4959_s10 + $0x30] sm:$0xff] }
 0x3e7   : > { %2260 = vadd.xlane.f32.xlu1 %v2259_v47  ;;  %v2233_v8 = vmul.f32 %v4816_v7, %v2221_v31  ;;  %v2420_v31 = vld [vmem:[%s4959_s10 + $0x8] sm:$0xff] }
 0x3e8   : > { %v2203_v57 = vadd.f32 %v4807_v63, %v2194_v17  ;;  %v2253_v20 = vsel %vm460_vm0, %v2237_v50, 0.0  ;;  %v2419_v17 = vld [vmem:[%s4959_s10] sm:$0xff] }
 0x3e9   : > { %v2241_v53 = vsel %vm460_vm0, %v2233_v8, 0.0  ;;  %v2422_v8 = vld [vmem:[%s4959_s10 + $0x18] sm:$0xff] }
 0x3ea   : > { %2242 = vadd.xlane.f32.xlu2 %v2241_v53  ;;  %v2220_v59 = vmul.f32 %v4810_v9, %v2203_v57  ;;  %vm2211_vm13 = vcmp.ge.f32.partialorder %v2203_v57, 0.0  ;;  %v2423_v53 = vld [vmem:[%s4959_s10 + $0x20] sm:$0xff] }
 0x3ec   : > { %v2228_v16 = vsel %vm2211_vm13, %v2203_v57, %v2220_v59  ;;  %v2424_v57 = vld [vmem:[%s4959_s10 + $0x28] sm:$0xff] }
 0x3ed   : > { %v2240_v30 = vmul.f32 %v4816_v7, %v2228_v16 }
 0x3ef   : > { %v2262_v63 = vsel %vm460_vm0, %v2240_v30, 0.0  ;;  %vm2382_vm0 = vcmask 1041409  }
 0x3f2   : > { %2254 = vadd.xlane.f32.xlu2 %v2253_v20 }
 0x3fa   : > { %2263 = vadd.xlane.f32.xlu2 %v2262_v63 }
 0x407   : > { %v2246_v29 = vpop.xlane.xlu0 %2245 }
 0x408   : > { %v2332_v28 = vmul.f32 %v2280_v62, %v2246_v29 }
 0x40a   : > { %2352 = vperm.xlu1 %3327, %v2332_v28  }
 0x40f   : > { %v2249_v9 = vpop.xlane.xlu1 %2248 }
 0x410   : > { %v2333_v6 = vmul.f32 %v2287_v56, %v2249_v9 }
 0x436   : > { %v2252_v2 = vpop.xlane.xlu1 %2251 }
 0x437   : > { %v2334_v37 = vmul.f32 %v2294_v24, %v2252_v2 }
 0x439   : > { %2358 = vperm.xlu2 %3328, %v2334_v37  }
 0x452   : > { %v2258_v61 = vpop.xlane.xlu0 %2257 }
 0x453   : > { %v2336_v21 = vmul.f32 %v2308_v38, %v2258_v61 }
 0x45a   : > { %v2261_v32 = vpop.xlane.xlu1 %2260 }
 0x45b   : > { %v2337_v11 = vmul.f32 %v2315_v15, %v2261_v32 }
 0x45d   : > { %v2243_v10 = vpop.xlane.xlu2 %2242 }
 0x45e   : > { %v2331_v3 = vmul.f32 %v2273_v39, %v2243_v10 }
 0x460   : > { %2349 = vperm.xlu0 %3326, %v2331_v3  }
 0x465   : > { %v2255_v7 = vpop.xlane.xlu2 %2254 }
 0x466   : > { %v2335_v22 = vmul.f32 %v2301_v4, %v2255_v7 }
 0x468   : > { %2355 = vperm.xlu0 %3326, %v2333_v6   ;;  %2361 = vperm.xlu1 %3327, %v2335_v22  }
 0x46d   : > { %v2264_v55 = vpop.xlane.xlu2 %2263 }
 0x46e   : > { %v2338_v44 = vmul.f32 %v2322_v46, %v2264_v55 }
 0x470   : > { %2364 = vperm.xlu0 %3326, %v2336_v21   ;;  %2367 = vperm.xlu1 %3327, %v2337_v11  }
 0x478   : > { %2370 = vperm.xlu0 %3326, %v2338_v44  }
 0x47c   : > { %v2353_v60 = vpop.permute.xlu1 %2352 }
 0x47d   : > { %v2375_v33 = vperm.slane %v2353_v60, %v2373_v0 }
 0x493   : > { %v2359_v27 = vpop.permute.xlu2 %2358 }
 0x494   : > { %v2377_v12 = vperm.slane %v2359_v27, %v2373_v0 }
 0x4d2   : > { %v2350_v18 = vpop.permute.xlu0 %2349 }
 0x4d3   : > { %v2374_v23 = vperm.slane %v2350_v18, %v2373_v0 }
 0x4d5   : > { %v2383_v5 = vsel %vm2382_vm0, %v2375_v33, %v2374_v23 }
 0x4da   : > { %v2356_v13 = vpop.permute.xlu0 %2355  ;;  %v2362_v48 = vpop.permute.xlu1 %2361 }
 0x4db   : > { %v2376_v52 = vperm.slane %v2356_v13, %v2373_v0  ;;  %v2378_v36 = vperm.slane %v2362_v48, %v2373_v0 }
 0x4dd   : > { %v2385_v35 = vsel %vm2384_vm14, %v2376_v52, %v2383_v5 }
 0x4de   : > { %v2387_v45 = vsel %vm2386_vm15, %v2377_v12, %v2385_v35 }
 0x4df   : > { %v2389_v49 = vsel %vm2388_vm1, %v2378_v36, %v2387_v45 }
 0x4e2   : > { %v2365_v34 = vpop.permute.xlu0 %2364  ;;  %v2368_v1 = vpop.permute.xlu1 %2367 }
 0x4e3   : > { %v2379_v42 = vperm.slane %v2365_v34, %v2373_v0  ;;  %v2380_v43 = vperm.slane %v2368_v1, %v2373_v0 }
 0x4e5   : > { %v2391_v19 = vsel %vm2390_vm5, %v2379_v42, %v2389_v49 }
 0x4e6   : > { %v2393_v58 = vsel %vm2392_vm6, %v2380_v43, %v2391_v19 }
 0x4ea   : > { %v2371_v51 = vpop.permute.xlu0 %2370 }
 0x4eb   : > { %v2381_v54 = vperm.slane %v2371_v51, %v2373_v0 }
 0x4ed   : > { %v2395_v26 = vsel %vm2394_vm12, %v2381_v54, %v2393_v58 }
 0x4ee   : > { %2804 = vmatmul.msk.f32.vlgmr.msra.gmra.mxu0 %vm2396_vm2, %v2395_v26 }
 0x56b   : > { %v2416_v47 = vpop.f32.mrf.mxu0 }
 0x56c   : > { %2466 = vmatpush.msra.mxu1 %v2416_v47 }
 0x56d   : > { %2805 = vmatmul.msk.f32.vlgmr.msra.gmra.mxu1 %vm2396_vm2, %v2419_v17 }
 0x575   : > { %2806 = vmatmul.msk.f32.gmra.mxu1 %vm2396_vm2, %v2420_v31 }
 0x57d   : > { %2807 = vmatmul.msk.f32.gmra.mxu1 %vm2396_vm2, %v2421_v25 }
 0x585   : > { %2808 = vmatmul.msk.f32.gmra.mxu1 %vm2396_vm2, %v2422_v8 }
 0x58d   : > { %2809 = vmatmul.msk.f32.gmra.mxu1 %vm2396_vm2, %v2423_v53 }
 0x595   : > { %2810 = vmatmul.msk.f32.gmra.mxu1 %vm2396_vm2, %v2424_v57 }
 0x59d   : > { %2811 = vmatmul.msk.f32.gmra.mxu1 %vm2396_vm2, %v2425_v41 }
 0x5a5   : > { %2812 = vmatmul.msk.f32.gmra.mxu1 %vm2396_vm2, %v2426_v14 }
 0x5ea   : > { %v2468_v50 = vpop.f32.mrf.mxu1 }
 0x5eb   : > { %v2813_v59 = vmul.f32 -1.442695, %v2468_v50 }
 0x5ed   : > { %3330 = vpow2.f32 %v2813_v59 }
 0x5f2   : > { %v2471_v20 = vpop.f32.mrf.mxu1 }
 0x5f3   : > { %v3331_v16 = vpop.eup %3330  ;;  %v2814_v62 = vmul.f32 -1.442695, %v2471_v20 }
 0x5f4   : > { %v2516_v30 = vadd.f32 1.0, %v3331_v16 }
 0x5f5   : > { %3332 = vpow2.f32 %v2814_v62 }
 0x5f6   : > { %3334 = vrcp.f32 %v2516_v30  ;;  %v2535_v46 = vand.u32 2147483648, %v2516_v30  ;;  %v2533_v2 = vand.u32 2147483647, %v2516_v30  ;;  %vm2529_vm4 = vweird.f32 %v2516_v30 }
 0x5f8   : > { %v2536_v7 = vor.u32 1.1754944e-38, %v2535_v46  ;;  %vm2534_vm9 = vcmp.eq.f32.partialorder %v2533_v2, 8.507059e+37 }
 0x5fa   : > { %v2474_v63 = vpop.f32.mrf.mxu1 }
 0x5fb   : > { %v3333_v15 = vpop.eup %3332  ;;  %v2815_v56 = vmul.f32 -1.442695, %v2474_v63 }
 0x5fc   : > { %v3335_v29 = vpop.eup %3334  ;;  %v2517_v28 = vadd.f32 1.0, %v3333_v15 }
 0x5fd   : > { %v2525_v24 = vmul.f32 %v3335_v29, %v2516_v30  ;;  %3336 = vpow2.f32 %v2815_v56  ;;  %vm2530_vm3 = vweird.f32 %v3335_v29 }
 0x5fe   : > { %3338 = vrcp.f32 %v2517_v28  ;;  %vm2531_vm7 = vmor %vm2529_vm4, %vm2530_vm3  ;;  %v2550_v11 = vand.u32 2147483648, %v2517_v28  ;;  %v2548_v44 = vand.u32 2147483647, %v2517_v28  ;;  %vm2544_vm11 = vweird.f32 %v2517_v28 }
 0x5ff   : > { %v2526_v4 = vsub.f32 1.0, %v2525_v24 }
 0x600   : > { %v2551_v48 = vor.u32 1.1754944e-38, %v2550_v11  ;;  %vm2549_vm0 = vcmp.eq.f32.partialorder %v2548_v44, 8.507059e+37 }
 0x601   : > { %v2527_v9 = vmul.f32 %v3335_v29, %v2526_v4 }
 0x602   : > { %v2477_v37 = vpop.f32.mrf.mxu1 }
 0x603   : > { %v3337_v39 = vpop.eup %3336  ;;  %v2528_v38 = vadd.f32 %v3335_v29, %v2527_v9  ;;  %v2816_v10 = vmul.f32 -1.442695, %v2477_v37 }
 0x604   : > { %v3339_v3 = vpop.eup %3338  ;;  %v2518_v6 = vadd.f32 1.0, %v3337_v39 }
 0x605   : > { %v2532_v22 = vsel %vm2531_vm7, %v3335_v29, %v2528_v38  ;;  %v2540_v61 = vmul.f32 %v3339_v3, %v2517_v28  ;;  %3340 = vpow2.f32 %v2816_v10  ;;  %vm2545_vm10 = vweird.f32 %v3339_v3 }
 0x606   : > { %v2537_v32 = vsel %vm2534_vm9, %v2536_v7, %v2532_v22  ;;  %3342 = vrcp.f32 %v2518_v6  ;;  %vm2546_vm13 = vmor %vm2544_vm11, %vm2545_vm10  ;;  %v2565_v35 = vand.u32 2147483648, %v2518_v6  ;;  %v2563_v12 = vand.u32 2147483647, %v2518_v6 }
 0x607   : > { %2644 = vst.msk [vmem:[%s4897_s29] sm:$0xff] %vm1226_vm8, %v2537_v32  ;;  %v2541_v21 = vsub.f32 1.0, %v2540_v61  ;;  %vm2559_vm15 = vweird.f32 %v2518_v6 }
 0x608   : > { %v2566_v43 = vor.u32 1.1754944e-38, %v2565_v35  ;;  %vm2564_vm5 = vcmp.eq.f32.partialorder %v2563_v12, 8.507059e+37 }
 0x609   : > { %v2542_v55 = vmul.f32 %v3339_v3, %v2541_v21 }
 0x60a   : > { %v2480_v40 = vpop.f32.mrf.mxu1 }
 0x60b   : > { %v3341_v18 = vpop.eup %3340  ;;  %v2543_v60 = vadd.f32 %v3339_v3, %v2542_v55  ;;  %v2817_v13 = vmul.f32 -1.442695, %v2480_v40 }
 0x60c   : > { %v3343_v0 = vpop.eup %3342  ;;  %v2519_v23 = vadd.f32 1.0, %v3341_v18 }
 0x60d   : > { %v2547_v52 = vsel %vm2546_vm13, %v3339_v3, %v2543_v60  ;;  %v2555_v33 = vmul.f32 %v3343_v0, %v2518_v6  ;;  %3344 = vpow2.f32 %v2817_v13  ;;  %vm2560_vm14 = vweird.f32 %v3343_v0 }
 0x60e   : > { %v2552_v27 = vsel %vm2549_vm0, %v2551_v48, %v2547_v52  ;;  %3346 = vrcp.f32 %v2519_v23  ;;  %vm2561_vm1 = vmor %vm2559_vm15, %vm2560_vm14  ;;  %v2580_v17 = vand.u32 2147483648, %v2519_v23  ;;  %v2578_v31 = vand.u32 2147483647, %v2519_v23 }
 0x60f   : > { %2645 = vst.msk [vmem:[%s4897_s29 + $0x8] sm:$0xff] %vm1226_vm8, %v2552_v27  ;;  %v2556_v5 = vsub.f32 1.0, %v2555_v33  ;;  %vm2574_vm12 = vweird.f32 %v2519_v23 }
 0x610   : > { %v2581_v14 = vor.u32 1.1754944e-38, %v2580_v17  ;;  %vm2579_vm3 = vcmp.eq.f32.partialorder %v2578_v31, 8.507059e+37 }
 0x611   : > { %v2557_v34 = vmul.f32 %v3343_v0, %v2556_v5 }
 0x612   : > { %v2483_v45 = vpop.f32.mrf.mxu1 }
 0x613   : > { %v3345_v42 = vpop.eup %3344  ;;  %v2558_v1 = vadd.f32 %v3343_v0, %v2557_v34  ;;  %v2818_v36 = vmul.f32 -1.442695, %v2483_v45 }
 0x614   : > { %v3347_v49 = vpop.eup %3346  ;;  %v2520_v19 = vadd.f32 1.0, %v3345_v42 }
 0x615   : > { %v2562_v51 = vsel %vm2561_vm1, %v3343_v0, %v2558_v1  ;;  %v2570_v54 = vmul.f32 %v3347_v49, %v2519_v23  ;;  %3348 = vpow2.f32 %v2818_v36  ;;  %vm2575_vm6 = vweird.f32 %v3347_v49 }
 0x616   : > { %v2567_v58 = vsel %vm2564_vm5, %v2566_v43, %v2562_v51  ;;  %3350 = vrcp.f32 %v2520_v19  ;;  %vm2576_vm2 = vmor %vm2574_vm12, %vm2575_vm6  ;;  %v2595_v30 = vand.u32 2147483648, %v2520_v19  ;;  %v2593_v15 = vand.u32 2147483647, %v2520_v19 }
 0x617   : > { %2646 = vst.msk [vmem:[%s4897_s29 + $0x10] sm:$0xff] %vm1226_vm8, %v2567_v58  ;;  %v2571_v26 = vsub.f32 1.0, %v2570_v54  ;;  %vm2589_vm7 = vweird.f32 %v2520_v19 }
 0x618   : > { %v2596_v46 = vor.u32 1.1754944e-38, %v2595_v30  ;;  %vm2594_vm10 = vcmp.eq.f32.partialorder %v2593_v15, 8.507059e+37 }
 0x619   : > { %v2572_v47 = vmul.f32 %v3347_v49, %v2571_v26 }
 0x61a   : > { %v2486_v25 = vpop.f32.mrf.mxu1 }
 0x61b   : > { %v3349_v8 = vpop.eup %3348  ;;  %v2573_v53 = vadd.f32 %v3347_v49, %v2572_v47  ;;  %v2819_v57 = vmul.f32 -1.442695, %v2486_v25 }
 0x61c   : > { %v3351_v41 = vpop.eup %3350  ;;  %v2521_v50 = vadd.f32 1.0, %v3349_v8 }
 0x61d   : > { %v2577_v59 = vsel %vm2576_vm2, %v3347_v49, %v2573_v53  ;;  %v2585_v20 = vmul.f32 %v3351_v41, %v2520_v19  ;;  %3352 = vpow2.f32 %v2819_v57  ;;  %vm2590_vm4 = vweird.f32 %v3351_v41 }
 0x61e   : > { %v2582_v16 = vsel %vm2579_vm3, %v2581_v14, %v2577_v59  ;;  %3354 = vrcp.f32 %v2521_v50  ;;  %vm2591_vm9 = vmor %vm2589_vm7, %vm2590_vm4  ;;  %v2610_v10 = vand.u32 2147483648, %v2521_v50  ;;  %v2608_v7 = vand.u32 2147483647, %v2521_v50 }
 0x61f   : > { %2647 = vst.msk [vmem:[%s4897_s29 + $0x18] sm:$0xff] %vm1226_vm8, %v2582_v16  ;;  %v2586_v62 = vsub.f32 1.0, %v2585_v20  ;;  %vm2604_vm13 = vweird.f32 %v2521_v50 }
 0x620   : > { %v2611_v32 = vor.u32 1.1754944e-38, %v2610_v10  ;;  %vm2609_vm14 = vcmp.eq.f32.partialorder %v2608_v7, 8.507059e+37 }
 0x621   : > { %v2587_v63 = vmul.f32 %v3351_v41, %v2586_v62 }
 0x622   : > { %v2489_v56 = vpop.f32.mrf.mxu1 }
 0x623   : > { %v3353_v29 = vpop.eup %3352  ;;  %v2588_v28 = vadd.f32 %v3351_v41, %v2587_v63  ;;  %v2820_v24 = vmul.f32 -1.442695, %v2489_v56 }
 0x624   : > { %v3355_v4 = vpop.eup %3354  ;;  %v2522_v9 = vadd.f32 1.0, %v3353_v29 }
 0x625   : > { %v2592_v2 = vsel %vm2591_vm9, %v3351_v41, %v2588_v28  ;;  %v2600_v37 = vmul.f32 %v3355_v4, %v2521_v50  ;;  %3356 = vpow2.f32 %v2820_v24  ;;  %vm2605_vm11 = vweird.f32 %v3355_v4 }
 0x626   : > { %v2597_v39 = vsel %vm2594_vm10, %v2596_v46, %v2592_v2  ;;  %3358 = vrcp.f32 %v2522_v9  ;;  %vm2606_vm0 = vmor %vm2604_vm13, %vm2605_vm11  ;;  %v2625_v18 = vand.u32 2147483648, %v2522_v9  ;;  %v2623_v13 = vand.u32 2147483647, %v2522_v9 }
 0x627   : > { %2648 = vst.msk [vmem:[%s4897_s29 + $0x20] sm:$0xff] %vm1226_vm8, %v2597_v39  ;;  %v2601_v38 = vsub.f32 1.0, %v2600_v37  ;;  %vm2619_vm1 = vweird.f32 %v2522_v9 }
 0x628   : > { %v2626_v23 = vor.u32 1.1754944e-38, %v2625_v18  ;;  %vm2624_vm6 = vcmp.eq.f32.partialorder %v2623_v13, 8.507059e+37 }
 0x629   : > { %v2602_v3 = vmul.f32 %v3355_v4, %v2601_v38 }
 0x62b   : > { %v3357_v6 = vpop.eup %3356  ;;  %v2603_v22 = vadd.f32 %v3355_v4, %v2602_v3 }
 0x62c   : > { %v3359_v61 = vpop.eup %3358  ;;  %v2523_v21 = vadd.f32 1.0, %v3357_v6 }
 0x62d   : > { %v2607_v11 = vsel %vm2606_vm0, %v3355_v4, %v2603_v22  ;;  %v2615_v55 = vmul.f32 %v3359_v61, %v2522_v9  ;;  %vm2620_vm15 = vweird.f32 %v3359_v61 }
 0x62e   : > { %v2612_v44 = vsel %vm2609_vm14, %v2611_v32, %v2607_v11  ;;  %3360 = vrcp.f32 %v2523_v21  ;;  %vm2621_vm5 = vmor %vm2619_vm1, %vm2620_vm15  ;;  %v2640_v35 = vand.u32 2147483648, %v2523_v21  ;;  %v2638_v12 = vand.u32 2147483647, %v2523_v21 }
 0x62f   : > { %2649 = vst.msk [vmem:[%s4897_s29 + $0x28] sm:$0xff] %vm1226_vm8, %v2612_v44  ;;  %v2616_v40 = vsub.f32 1.0, %v2615_v55  ;;  %vm2634_vm2 = vweird.f32 %v2523_v21 }
 0x630   : > { %v2641_v42 = vor.u32 1.1754944e-38, %v2640_v35  ;;  %vm2639_vm4 = vcmp.eq.f32.partialorder %v2638_v12, 8.507059e+37 }
 0x631   : > { %v2617_v60 = vmul.f32 %v3359_v61, %v2616_v40 }
 0x633   : > { %v2618_v0 = vadd.f32 %v3359_v61, %v2617_v60 }
 0x634   : > { %v3361_v48 = vpop.eup %3360 }
 0x635   : > { %v2622_v52 = vsel %vm2621_vm5, %v3359_v61, %v2618_v0  ;;  %v2630_v33 = vmul.f32 %v3361_v48, %v2523_v21  ;;  %vm2635_vm12 = vweird.f32 %v3361_v48 }
 0x636   : > { %v2627_v27 = vsel %vm2624_vm6, %v2626_v23, %v2622_v52  ;;  %vm2636_vm3 = vmor %vm2634_vm2, %vm2635_vm12 }
 0x637   : > { %2650 = vst.msk [vmem:[%s4897_s29 + $0x30] sm:$0xff] %vm1226_vm8, %v2627_v27  ;;  %v2631_v5 = vsub.f32 1.0, %v2630_v33 }
 0x639   : > { %v2632_v34 = vmul.f32 %v3361_v48, %v2631_v5 }
 0x63b   : > { %v2633_v45 = vadd.f32 %v3361_v48, %v2632_v34 }
 0x63d   : > { %v2637_v1 = vsel %vm2636_vm3, %v3361_v48, %v2633_v45 }
 0x63e   : > { %v2642_v36 = vsel %vm2639_vm4, %v2641_v42, %v2637_v1 }
 0x63f   : > { %2651 = vst.msk [vmem:[%s4897_s29 + $0x38] sm:$0xff] %vm1226_vm8, %v2642_v36 }
 0x640   : > { %3390 = shalt.err (!%p3387_p3)
}
 0x641   : > { %s3436_s1 = smov 128   ;;  %s3437_s3 = smov 8  }
 0x642   : > { %2853 = dma.vmem_to_hbm [thread:$0]  (%p3541_p5), %s2666_s25, 1024, %s2668_s18, %s2653_s17, %s3436_s1, %s3436_s1, %s3437_s3  }
 0x643 PF: > { %p2859_p4 = scmp.ge.s32.totalorder %s3425_s24, 2  ;;  %s2682_s20 = sand.u32 1, %s3413_s21  }
 0x644   : > { %s2683_s28 = scalar_lea.sflag [#allocation5], %s2682_s20 }
 0x645   : > { %p2856_p7 = pnand %p2859_p4, %p3545_p6 }
 0x647   : > { %p2857_p8 = pneg %p2856_p7 }
 0x649   : > { %3408 = dma.done.wait (%p2857_p8), %s2683_s28, 1024  }
 0x64a   : > { %3410 = vsyncadd (%p2857_p8), %s2683_s28, 4294966272  ;;  %s5000_s24 = sld [smem:[#allocation8_spill]]  ;;  %s5003_s21 = smov %s3417_s22 }
 0x64b   : > { %s5001_s19 = sld [smem:[#allocation7_spill]] }
 0x64c   : > { %s5002_s23 = sld [smem:[#allocation9_spill]] }
 0x650   : > { %p22_p9 = scmp.ge.s32.totalorder %s5000_s24, 4  }
 0x651   : > { %s5004_s22 = smov %s5001_s19 }
 0x652   :  { %24 = sbr.rel (!%p22_p9) target bundleno = 7 (0x7), region = 111 }
 0x657   :  { %2689 = vsyncpa [#allocation5], 1 }
 0x658   :  { %2691 = vsyncpa [#allocation5 + $0x1], 1 }

</bundles_post_ra>
